<compile_context>
chip_gen: v6e
topology: v6e:2x2x1
jax: 0.10.0
libtpu: 0.0.40
codegen_flags: <defaults>
</compile_context>

<pallas_src>
import functools

import jax
import jax.numpy as jnp
from jax.experimental import pallas as pl
from jax.experimental.pallas import tpu as pltpu

C_PAD = 128  # every channel dim padded to one full lane tile


def fused_gcn_kernel(a_ref, x_ref, w_ref, b_ref, o_ref, h0_ref, h1_ref, *, tm, out_c):
    """Grid = (layer, row_tile). Per step:
         p = A[rows, :] @ H_prev           (bf16 MXU, f32 accumulate)
         h = relu(p @ W_l + b_l)           (f32)
         H_next[rows] = h                  (bf16 ping-pong VMEM scratch)
         out[rows]    = log_softmax(h) on the last layer, else h (overwritten later)
       A, X, the per-layer W/b and the output stay VMEM-resident across the grid."""
    l = pl.program_id(0)
    i = pl.program_id(1)
    num_layers = pl.num_programs(0)

    # Load the input features into the layer-0 "previous H" buffer once.
    @pl.when((l == 0) & (i == 0))
    def _():
        h0_ref[...] = x_ref[...]

    row = pl.multiple_of(i * tm, tm)
    a_tile = a_ref[pl.ds(row, tm), :]  # (tm, n_pad) bf16, from the VMEM-resident A

    def layer_step(src_ref, dst_ref):
        # Propagate-then-transform: (A @ H) @ W  (associativity; A@H is the big matmul).
        p = jnp.dot(a_tile, src_ref[...], preferred_element_type=jnp.float32)
        # Small weight transform + bias in f32 (keeps the f32 accumulator precision).
        h = jnp.dot(p, w_ref[...].astype(jnp.float32),
                    preferred_element_type=jnp.float32) + b_ref[...]
        h = jnp.maximum(h, 0.0)                                   # ReLU (f32 VPU)
        dst_ref[pl.ds(row, tm), :] = h.astype(dst_ref.dtype)      # next layer's input

        # log_softmax over the real out_c lanes (lanes >= out_c are zero padding).
        lane = jax.lax.broadcasted_iota(jnp.int32, h.shape, 1)
        hm = jnp.where(lane < out_c, h, -1e30)
        m = jnp.max(hm, axis=1, keepdims=True)
        z = hm - m
        lse = jnp.log(jnp.sum(jnp.exp(z), axis=1, keepdims=True))
        is_last = l == num_layers - 1
        o_val = jnp.where(is_last, z - lse, h)   # only the last layer's write survives
        o_ref[pl.ds(row, tm), :] = o_val.astype(o_ref.dtype)

    # Ping-pong the H buffers by layer parity (avoids dynamic scratch-buffer indexing).
    @pl.when(l % 2 == 0)
    def _():
        layer_step(h0_ref, h1_ref)

    @pl.when(l % 2 == 1)
    def _():
        layer_step(h1_ref, h0_ref)


def gcn_fused_forward(a_p, x_p, w_stack, b_stack, *, out_c, tm=256):
    """Single fused pallas_call over (layers, row_tiles). Returns padded (n_pad, C_PAD) f32."""
    n_pad = a_p.shape[0]
    tm = min(tm, n_pad)
    num_layers = w_stack.shape[0]
    grid = (num_layers, n_pad // tm)

    kernel = functools.partial(fused_gcn_kernel, tm=tm, out_c=out_c)
    return pl.pallas_call(
        kernel,
        out_shape=jax.ShapeDtypeStruct((n_pad, C_PAD), jnp.float32),
        grid_spec=pltpu.PrefetchScalarGridSpec(
            num_scalar_prefetch=0,
            grid=grid,
            in_specs=[
                pl.BlockSpec((n_pad, n_pad), lambda l, i: (0, 0)),      # A: fetched once, resident
                pl.BlockSpec((n_pad, C_PAD), lambda l, i: (0, 0)),      # X: fetched once, resident
                pl.BlockSpec((None, C_PAD, C_PAD), lambda l, i: (l, 0, 0)),  # W_l (per layer)
                pl.BlockSpec((None, 1, C_PAD), lambda l, i: (l, 0, 0)),      # b_l (per layer)
            ],
            out_specs=pl.BlockSpec((n_pad, C_PAD), lambda l, i: (0, 0)),  # resident, 1 writeback
            scratch_shapes=[
                pltpu.VMEM((n_pad, C_PAD), jnp.bfloat16),   # H ping buffer
                pltpu.VMEM((n_pad, C_PAD), jnp.bfloat16),   # H pong buffer
            ],
        ),
        compiler_params=pltpu.CompilerParams(
            # Layer axis carries a real dependency (H_{l+1} needs all rows of H_l) and row
            # tiles share the per-core H scratch, so neither axis may be core-sharded.
            dimension_semantics=("arbitrary", "arbitrary"),
            vmem_limit_bytes=48 * 1024 * 1024,   # well under v7x's 64 MiB/TC
        ),
    )(a_p, x_p, w_stack, b_stack)


def _pad2(m, rows, cols, dtype):
    buf = jnp.zeros((rows, cols), dtype)
    return buf.at[: m.shape[0], : m.shape[1]].set(m.astype(dtype))


def prepare_gcn_inputs(a_hat, x, weights, biases, *, tm=256):
    """Pad + cast once. Hoisted out of the per-forward path: cache and reuse these buffers."""
    n = x.shape[0]
    n_pad = max(int(pl.cdiv(n, tm)) * tm, tm)

    # Resident-A budget check (bf16 A + X + out + 2 H scratches), leave ample headroom.
    resident_bytes = n_pad * n_pad * 2 + 5 * n_pad * C_PAD * 4
    if resident_bytes > 40 * 1024 * 1024:
        # TODO(synk): stream A in k-tiles (and/or block-sparse skip) for large graphs.
        raise ValueError("Graph too large for the fully VMEM-resident fused kernel.")

    a_p = _pad2(a_hat, n_pad, n_pad, jnp.bfloat16)
    x_p = _pad2(x, n_pad, C_PAD, jnp.bfloat16)
    w_stack = jnp.stack([_pad2(w, C_PAD, C_PAD, jnp.bfloat16) for w in weights])
    b_stack = jnp.stack(
        [_pad2(jnp.reshape(b, (1, -1)), 1, C_PAD, jnp.float32) for b in biases])
    return a_p, x_p, w_stack, b_stack, n_pad


def gcn_forward(a_hat, x, w1, b1, w2, b2, w3, b3, *, tm=256):
    """Forward pass of YourGCN in eval mode (dropout = identity; conv4/conv5 unused)."""
    n = x.shape[0]
    out_c = w3.shape[1]
    a_p, x_p, w_stack, b_stack, _ = prepare_gcn_inputs(
        a_hat, x, (w1, w2, w3), (b1, b2, b3), tm=tm)
    out_pad = gcn_fused_forward(a_p, x_p, w_stack, b_stack, out_c=out_c, tm=tm)
    return out_pad[:n, :out_c]


def build_normalized_adjacency(edge_index, num_nodes):
    # Dense A[i, j] = 1 for an edge (treated as undirected), plus self loops, then
    # symmetric normalization D^-1/2 (A + I) D^-1/2 (matches PyG gcn_norm semantics
    # for a simple graph; duplicate edges are clamped to 1).
    src, dst = edge_index[0], edge_index[1]
    a = jnp.zeros((num_nodes, num_nodes), jnp.float32)
    a = a.at[dst, src].set(1.0)
    a = a.at[src, dst].set(1.0)
    a = a + jnp.eye(num_nodes, dtype=jnp.float32)
    a = jnp.minimum(a, 1.0)
    deg = jnp.sum(a, axis=1)
    d_inv_sqrt = 1.0 / jnp.sqrt(deg)
    return a * d_inv_sqrt[:, None] * d_inv_sqrt[None, :]


if __name__ == "__main__":
    key = jax.random.PRNGKey(0)
    N, IN_C, HID_C, OUT_C, E = 500, 16, 32, 8, 2000
    TM = 256

    (k_x, k_e1, k_e2, k_w1, k_w2, k_w3,
     k_b1, k_b2, k_b3) = jax.random.split(key, 9)

    # node features (data.x): [N, in_c]
    x = jax.random.normal(k_x, (N, IN_C), dtype=jnp.float32)

    # edge_index: [2, E] random graph
    src = jax.random.randint(k_e1, (E,), 0, N)
    dst = jax.random.randint(k_e2, (E,), 0, N)
    edge_index = jnp.stack([src, dst], axis=0)

    a_hat = build_normalized_adjacency(edge_index, N)

    def glorot(k, fan_in, fan_out):
        lim = jnp.sqrt(6.0 / (fan_in + fan_out))
        return jax.random.uniform(k, (fan_in, fan_out), jnp.float32, -lim, lim)

    w1 = glorot(k_w1, IN_C, HID_C)
    b1 = 0.1 * jax.random.normal(k_b1, (1, HID_C), jnp.float32)
    w2 = glorot(k_w2, HID_C, OUT_C)
    b2 = 0.1 * jax.random.normal(k_b2, (1, OUT_C), jnp.float32)
    w3 = glorot(k_w3, OUT_C, OUT_C)
    b3 = 0.1 * jax.random.normal(k_b3, (1, OUT_C), jnp.float32)

    # Padding / casting is hoisted: prepare once, reuse for every forward call.
    a_p, x_p, w_stack, b_stack, _ = prepare_gcn_inputs(
        a_hat, x, (w1, w2, w3), (b1, b2, b3), tm=TM)

    out_pad = gcn_fused_forward(a_p, x_p, w_stack, b_stack, out_c=OUT_C, tm=TM)
    out = out_pad[:N, :OUT_C]
    out = jax.block_until_ready(out)

    assert out.shape == (N, OUT_C)

    # sanity 1: log_softmax rows sum (in prob space) to 1
    row_prob = jnp.sum(jnp.exp(out), axis=1)
    assert bool(jnp.all(jnp.abs(row_prob - 1.0) < 2e-3))

    # sanity 2: match a plain-JAX f32 reference of the same forward pass
    # (loose tolerance accounts for bf16 A and bf16 intermediate H)
    def ref_forward(a, xx, W1, B1, W2, B2, W3, B3):
        h = jnp.maximum(a @ (xx @ W1) + B1, 0.0)
        h = jnp.maximum(a @ (h @ W2) + B2, 0.0)
        h = jnp.maximum(a @ (h @ W3) + B3, 0.0)
        return jax.nn.log_softmax(h, axis=1)

    ref = ref_forward(a_hat, x, w1, b1, w2, b2, w3, b3)
    assert bool(jnp.max(jnp.abs(out - ref)) < 0.15)

    print("KERNEL_OK")
</pallas_src>

<mosaic_0001>
module attributes {stable_mosaic.version = 11 : i64} {
  func.func @fused_gcn_kernel(%arg0: i32, %arg1: i32, %arg2: memref<512x512xbf16, #tpu.memory_space<vmem>>, %arg3: memref<512x128xbf16, #tpu.memory_space<vmem>>, %arg4: memref<1x128x128xbf16, #tpu.memory_space<vmem>>, %arg5: memref<1x1x128xf32, #tpu.memory_space<vmem>>, %arg6: memref<512x128xf32, #tpu.memory_space<vmem>>, %arg7: memref<512x128xbf16, #tpu.memory_space<vmem>>, %arg8: memref<512x128xbf16, #tpu.memory_space<vmem>>) attributes {dimension_semantics = [#tpu.dimension_semantics<arbitrary>, #tpu.dimension_semantics<arbitrary>], iteration_bounds = array<i64: 3, 2>, scalar_prefetch = 0 : i64, scratch_operands = 2 : i64, tpu.core_type = #tpu.core_type<tc>, window_params = [{pipeline_mode = #tpu.pipeline_mode<synchronous>, transform_indices = @transform_0, window_bounds = array<i64: 512, 512>}, {pipeline_mode = #tpu.pipeline_mode<synchronous>, transform_indices = @transform_1, window_bounds = array<i64: 512, 128>}, {transform_indices = @transform_2, window_bounds = array<i64: 1, 128, 128>}, {transform_indices = @transform_3, window_bounds = array<i64: 1, 1, 128>}, {pipeline_mode = #tpu.pipeline_mode<synchronous>, transform_indices = @transform_4, window_bounds = array<i64: 512, 128>}]} {
    %c0_i32 = arith.constant 0 : i32
    %0 = arith.cmpi eq, %arg0, %c0_i32 : i32
    %c0_i32_0 = arith.constant 0 : i32
    %1 = arith.cmpi eq, %arg1, %c0_i32_0 : i32
    %2 = arith.andi %0, %1 : i1
    %3 = arith.extui %2 : i1 to i32
    %c0_i32_1 = arith.constant 0 : i32
    %4 = arith.cmpi ne, %3, %c0_i32_1 : i32
    scf.if %4 {
      %c0_16 = arith.constant 0 : index
      %c0_17 = arith.constant 0 : index
      %35 = vector.load %arg3[%c0_16, %c0_17] : memref<512x128xbf16, #tpu.memory_space<vmem>>, vector<512x128xbf16>
      %c0_18 = arith.constant 0 : index
      %c0_19 = arith.constant 0 : index
      %36 = vector.load %arg7[%c0_18, %c0_19] : memref<512x128xbf16, #tpu.memory_space<vmem>>, vector<512x128xbf16>
      tpu.vector_store %arg7[%c0_18, %c0_19], %35 {strides = array<i32>} : memref<512x128xbf16, #tpu.memory_space<vmem>>, vector<512x128xbf16>,
    } else {
    }
    %c256_i32 = arith.constant 256 : i32
    %5 = arith.muli %arg1, %c256_i32 : i32
    %6 = tpu.assume_multiple %5, 256 : i32
    %7 = arith.index_cast %6 : i32 to index
    %c0 = arith.constant 0 : index
    %8 = vector.load %arg2[%7, %c0] : memref<512x512xbf16, #tpu.memory_space<vmem>>, vector<256x512xbf16>
    %c2_i32 = arith.constant 2 : i32
    %c0_i32_2 = arith.constant 0 : i32
    %9 = arith.cmpi eq, %c2_i32, %c0_i32_2 : i32
    %c1_i32 = arith.constant 1 : i32
    %10 = arith.select %9, %c1_i32, %c2_i32 : i32
    %11 = arith.remsi %arg0, %10 : i32
    %c0_i32_3 = arith.constant 0 : i32
    %12 = arith.cmpi ne, %11, %c0_i32_3 : i32
    %c0_i32_4 = arith.constant 0 : i32
    %13 = arith.cmpi slt, %11, %c0_i32_4 : i32
    %c0_i32_5 = arith.constant 0 : i32
    %14 = arith.cmpi slt, %10, %c0_i32_5 : i32
    %15 = arith.xori %13, %14 : i1
    %16 = arith.andi %15, %12 : i1
    %17 = arith.addi %11, %10 : i32
    %18 = arith.select %16, %17, %11 : i32
    %c0_i32_6 = arith.constant 0 : i32
    %19 = arith.cmpi eq, %18, %c0_i32_6 : i32
    %20 = arith.extui %19 : i1 to i32
    %c0_i32_7 = arith.constant 0 : i32
    %21 = arith.cmpi ne, %20, %c0_i32_7 : i32
    scf.if %21 {
      %c0_16 = arith.constant 0 : index
      %c0_17 = arith.constant 0 : index
      %35 = vector.load %arg7[%c0_16, %c0_17] : memref<512x128xbf16, #tpu.memory_space<vmem>>, vector<512x128xbf16>
      %cst = arith.constant dense<0.000000e+00> : vector<256x128xf32>
      %36 = tpu.matmul %8, %35, %cst {dimension_numbers = #tpu.dot_dimension_numbers<[1], [0], [0], [1], [0, 0, 1, 1], [], []>} : vector<256x512xbf16>, vector<512x128xbf16>, vector<256x128xf32> -> vector<256x128xf32>
      %c0_18 = arith.constant 0 : index
      %c0_19 = arith.constant 0 : index
      %c0_20 = arith.constant 0 : index
      %37 = vector.load %arg4[%c0_18, %c0_19, %c0_20] : memref<1x128x128xbf16, #tpu.memory_space<vmem>>, vector<1x128x128xbf16>
      %38 = vector.shape_cast %37 : vector<1x128x128xbf16> to vector<128x128xbf16>
      %39 = arith.extf %38 : vector<128x128xbf16> to vector<128x128xf32>
      %cst_21 = arith.constant dense<0.000000e+00> : vector<256x128xf32>
      %40 = tpu.matmul %36, %39, %cst_21 {dimension_numbers = #tpu.dot_dimension_numbers<[1], [0], [0], [1], [0, 0, 1, 1], [], []>} : vector<256x128xf32>, vector<128x128xf32>, vector<256x128xf32> -> vector<256x128xf32>
      %c0_22 = arith.constant 0 : index
      %c0_23 = arith.constant 0 : index
      %c0_24 = arith.constant 0 : index
      %41 = vector.load %arg5[%c0_22, %c0_23, %c0_24] : memref<1x1x128xf32, #tpu.memory_space<vmem>>, vector<1x1x128xf32>
      %42 = vector.shape_cast %41 : vector<1x1x128xf32> to vector<1x128xf32>
      %43 = vector.broadcast %42 : vector<1x128xf32> to vector<256x128xf32>
      %44 = arith.addf %40, %43 : vector<256x128xf32>
      %cst_25 = arith.constant 0.000000e+00 : f32
      %45 = vector.broadcast %cst_25 : f32 to vector<256x128xf32>
      %46 = arith.maximumf %44, %45 : vector<256x128xf32>
      %47 = arith.truncf %46 : vector<256x128xf32> to vector<256x128xbf16>
      %48 = arith.index_cast %6 : i32 to index
      %c0_26 = arith.constant 0 : index
      %49 = vector.load %arg8[%48, %c0_26] : memref<512x128xbf16, #tpu.memory_space<vmem>>, vector<256x128xbf16>
      tpu.vector_store %arg8[%48, %c0_26], %47 {strides = array<i32>} : memref<512x128xbf16, #tpu.memory_space<vmem>>, vector<256x128xbf16>,
      %50 = tpu.iota {dimensions = array<i32: 1>} : vector<256x128xi32>
      %c8_i32 = arith.constant 8 : i32
      %51 = vector.broadcast %c8_i32 : i32 to vector<256x128xi32>
      %52 = arith.cmpi slt, %50, %51 : vector<256x128xi32>
      %cst_27 = arith.constant -1.000000e+30 : f32
      %53 = vector.broadcast %cst_27 : f32 to vector<256x128xf32>
      %54 = arith.select %52, %46, %53 : vector<256x128xi1>, vector<256x128xf32>
      %cst_28 = arith.constant dense<0xFF800000> : vector<256xf32>
      %55 = vector.multi_reduction <maximumf>, %54, %cst_28 [1] : vector<256x128xf32> to vector<256xf32>
      %56 = vector.shape_cast %55 : vector<256xf32> to vector<256x1xf32>
      %57 = vector.broadcast %56 : vector<256x1xf32> to vector<256x128xf32>
      %58 = arith.subf %54, %57 : vector<256x128xf32>
      %59 = math.exp %58 : vector<256x128xf32>
      %cst_29 = arith.constant dense<0.000000e+00> : vector<256xf32>
      %60 = vector.multi_reduction <add>, %59, %cst_29 [1] : vector<256x128xf32> to vector<256xf32>
      %61 = vector.shape_cast %60 : vector<256xf32> to vector<256x1xf32>
      %62 = math.log %61 : vector<256x1xf32>
      %c2_i32_30 = arith.constant 2 : i32
      %63 = arith.cmpi eq, %arg0, %c2_i32_30 : i32
      %64 = vector.broadcast %62 : vector<256x1xf32> to vector<256x128xf32>
      %65 = arith.subf %58, %64 : vector<256x128xf32>
      %66 = arith.select %63, %65, %46 : vector<256x128xf32>
      %67 = arith.index_cast %6 : i32 to index
      %c0_31 = arith.constant 0 : index
      %68 = vector.load %arg6[%67, %c0_31] : memref<512x128xf32, #tpu.memory_space<vmem>>, vector<256x128xf32>
      tpu.vector_store %arg6[%67, %c0_31], %66 {strides = array<i32>} : memref<512x128xf32, #tpu.memory_space<vmem>>, vector<256x128xf32>,
    } else {
    }
    %c2_i32_8 = arith.constant 2 : i32
    %c0_i32_9 = arith.constant 0 : i32
    %22 = arith.cmpi eq, %c2_i32_8, %c0_i32_9 : i32
    %c1_i32_10 = arith.constant 1 : i32
    %23 = arith.select %22, %c1_i32_10, %c2_i32_8 : i32
    %24 = arith.remsi %arg0, %23 : i32
    %c0_i32_11 = arith.constant 0 : i32
    %25 = arith.cmpi ne, %24, %c0_i32_11 : i32
    %c0_i32_12 = arith.constant 0 : i32
    %26 = arith.cmpi slt, %24, %c0_i32_12 : i32
    %c0_i32_13 = arith.constant 0 : i32
    %27 = arith.cmpi slt, %23, %c0_i32_13 : i32
    %28 = arith.xori %26, %27 : i1
    %29 = arith.andi %28, %25 : i1
    %30 = arith.addi %24, %23 : i32
    %31 = arith.select %29, %30, %24 : i32
    %c1_i32_14 = arith.constant 1 : i32
    %32 = arith.cmpi eq, %31, %c1_i32_14 : i32
    %33 = arith.extui %32 : i1 to i32
    %c0_i32_15 = arith.constant 0 : i32
    %34 = arith.cmpi ne, %33, %c0_i32_15 : i32
    scf.if %34 {
      %c0_16 = arith.constant 0 : index
      %c0_17 = arith.constant 0 : index
      %35 = vector.load %arg8[%c0_16, %c0_17] : memref<512x128xbf16, #tpu.memory_space<vmem>>, vector<512x128xbf16>
      %cst = arith.constant dense<0.000000e+00> : vector<256x128xf32>
      %36 = tpu.matmul %8, %35, %cst {dimension_numbers = #tpu.dot_dimension_numbers<[1], [0], [0], [1], [0, 0, 1, 1], [], []>} : vector<256x512xbf16>, vector<512x128xbf16>, vector<256x128xf32> -> vector<256x128xf32>
      %c0_18 = arith.constant 0 : index
      %c0_19 = arith.constant 0 : index
      %c0_20 = arith.constant 0 : index
      %37 = vector.load %arg4[%c0_18, %c0_19, %c0_20] : memref<1x128x128xbf16, #tpu.memory_space<vmem>>, vector<1x128x128xbf16>
      %38 = vector.shape_cast %37 : vector<1x128x128xbf16> to vector<128x128xbf16>
      %39 = arith.extf %38 : vector<128x128xbf16> to vector<128x128xf32>
      %cst_21 = arith.constant dense<0.000000e+00> : vector<256x128xf32>
      %40 = tpu.matmul %36, %39, %cst_21 {dimension_numbers = #tpu.dot_dimension_numbers<[1], [0], [0], [1], [0, 0, 1, 1], [], []>} : vector<256x128xf32>, vector<128x128xf32>, vector<256x128xf32> -> vector<256x128xf32>
      %c0_22 = arith.constant 0 : index
      %c0_23 = arith.constant 0 : index
      %c0_24 = arith.constant 0 : index
      %41 = vector.load %arg5[%c0_22, %c0_23, %c0_24] : memref<1x1x128xf32, #tpu.memory_space<vmem>>, vector<1x1x128xf32>
      %42 = vector.shape_cast %41 : vector<1x1x128xf32> to vector<1x128xf32>
      %43 = vector.broadcast %42 : vector<1x128xf32> to vector<256x128xf32>
      %44 = arith.addf %40, %43 : vector<256x128xf32>
      %cst_25 = arith.constant 0.000000e+00 : f32
      %45 = vector.broadcast %cst_25 : f32 to vector<256x128xf32>
      %46 = arith.maximumf %44, %45 : vector<256x128xf32>
      %47 = arith.truncf %46 : vector<256x128xf32> to vector<256x128xbf16>
      %48 = arith.index_cast %6 : i32 to index
      %c0_26 = arith.constant 0 : index
      %49 = vector.load %arg7[%48, %c0_26] : memref<512x128xbf16, #tpu.memory_space<vmem>>, vector<256x128xbf16>
      tpu.vector_store %arg7[%48, %c0_26], %47 {strides = array<i32>} : memref<512x128xbf16, #tpu.memory_space<vmem>>, vector<256x128xbf16>,
      %50 = tpu.iota {dimensions = array<i32: 1>} : vector<256x128xi32>
      %c8_i32 = arith.constant 8 : i32
      %51 = vector.broadcast %c8_i32 : i32 to vector<256x128xi32>
      %52 = arith.cmpi slt, %50, %51 : vector<256x128xi32>
      %cst_27 = arith.constant -1.000000e+30 : f32
      %53 = vector.broadcast %cst_27 : f32 to vector<256x128xf32>
      %54 = arith.select %52, %46, %53 : vector<256x128xi1>, vector<256x128xf32>
      %cst_28 = arith.constant dense<0xFF800000> : vector<256xf32>
      %55 = vector.multi_reduction <maximumf>, %54, %cst_28 [1] : vector<256x128xf32> to vector<256xf32>
      %56 = vector.shape_cast %55 : vector<256xf32> to vector<256x1xf32>
      %57 = vector.broadcast %56 : vector<256x1xf32> to vector<256x128xf32>
      %58 = arith.subf %54, %57 : vector<256x128xf32>
      %59 = math.exp %58 : vector<256x128xf32>
      %cst_29 = arith.constant dense<0.000000e+00> : vector<256xf32>
      %60 = vector.multi_reduction <add>, %59, %cst_29 [1] : vector<256x128xf32> to vector<256xf32>
      %61 = vector.shape_cast %60 : vector<256xf32> to vector<256x1xf32>
      %62 = math.log %61 : vector<256x1xf32>
      %c2_i32_30 = arith.constant 2 : i32
      %63 = arith.cmpi eq, %arg0, %c2_i32_30 : i32
      %64 = vector.broadcast %62 : vector<256x1xf32> to vector<256x128xf32>
      %65 = arith.subf %58, %64 : vector<256x128xf32>
      %66 = arith.select %63, %65, %46 : vector<256x128xf32>
      %67 = arith.index_cast %6 : i32 to index
      %c0_31 = arith.constant 0 : index
      %68 = vector.load %arg6[%67, %c0_31] : memref<512x128xf32, #tpu.memory_space<vmem>>, vector<256x128xf32>
      tpu.vector_store %arg6[%67, %c0_31], %66 {strides = array<i32>} : memref<512x128xf32, #tpu.memory_space<vmem>>, vector<256x128xf32>,
    } else {
    }
    return
  }
  func.func @transform_0(%arg0: i32, %arg1: i32) -> (i32, i32) {
    %c0_i32 = arith.constant 0 : i32
    %c0_i32_0 = arith.constant 0 : i32
    %c0_i32_1 = arith.constant 0 : i32
    return %c0_i32, %c0_i32_0 : i32, i32
  }
  func.func @transform_1(%arg0: i32, %arg1: i32) -> (i32, i32) {
    %c0_i32 = arith.constant 0 : i32
    %c0_i32_0 = arith.constant 0 : i32
    %c0_i32_1 = arith.constant 0 : i32
    return %c0_i32, %c0_i32_0 : i32, i32
  }
  func.func @transform_2(%arg0: i32, %arg1: i32) -> (i32, i32, i32) {
    %c0_i32 = arith.constant 0 : i32
    %c0_i32_0 = arith.constant 0 : i32
    %c0_i32_1 = arith.constant 0 : i32
    return %arg0, %c0_i32, %c0_i32_0 : i32, i32, i32
  }
  func.func @transform_3(%arg0: i32, %arg1: i32) -> (i32, i32, i32) {
    %c0_i32 = arith.constant 0 : i32
    %c0_i32_0 = arith.constant 0 : i32
    %c0_i32_1 = arith.constant 0 : i32
    return %arg0, %c0_i32, %c0_i32_0 : i32, i32, i32
  }
  func.func @transform_4(%arg0: i32, %arg1: i32) -> (i32, i32) {
    %c0_i32 = arith.constant 0 : i32
    %c0_i32_0 = arith.constant 0 : i32
    %c0_i32_1 = arith.constant 0 : i32
    return %c0_i32, %c0_i32_0 : i32, i32
  }
}

</mosaic_0001>

<bundles_post_ra>
// kernel: tpu_custom_call.1
= control target key start
LH: loop header
LB: loop body
LE: loop exit
PB: predicated region body
PF: predicated region fallthrough
CT: control target
= control target key end

     0   :  { %9 = vsyncpa [#allocation5], 0  ;;  %s8148_s0 = inlined_call_operand.hbm [shape: bf16[512,512], index: 0, kind: input, shape index: {}]   ;;  %s8149_s1 = inlined_call_operand.hbm [shape: bf16[512,128], index: 1, kind: input, shape index: {}]   ;;  %s8150_s2 = inlined_call_operand.hbm [shape: bf16[3,128,128], index: 2, kind: input, shape index: {}]   ;;  %s8151_s3 = inlined_call_operand.vmem [shape: f32[3,1,128], index: 3, kind: input, shape index: {}]   ;;  %s8152_s4 = inlined_call_operand.hbm [shape: f32[512,128], index: 4, kind: output, shape index: {}]  }
   0x1   :  { %10 = vsyncpa [#allocation8], 0 }
   0x2   :  { %11 = vsyncpa [#allocation6], 0  ;;  %s6149_s15 = smov 0   ;;  %s6151_s16 = smov 0  }
   0x3   :  { %s6153_s17 = smov 0   ;;  %s6155_s18 = smov 0  }
   0x4   :  { %s6157_s19 = smov 0   ;;  %s6159_s20 = smov 0  }
   0x5   :  { %s6161_s21 = smov 0   ;;  %s6163_s22 = smov 0  }
   0x6 LB: > { %s6188_s23 = sadd.s32 4294967295, %s6112_s22   ;;  %p85_p0 = scmp.ne.s32.totalorder %s6092_s17, %s6088_s16  ;;  %s6112_s22 = sphi %s6163_s22, %s17_s22   ;;  %s6108_s21 = sphi %s6161_s21, %s8518_s21   ;;  %s6104_s20 = sphi %s6159_s20, %s8517_s20   ;;  %s6100_s19 = sphi %s6157_s19, %s8516_s19   ;;  %s6096_s18 = sphi %s6155_s18, %s8515_s18   ;;  %s6092_s17 = sphi %s6153_s17, %s8514_s17   ;;  %s6088_s16 = sphi %s6151_s16, %s8513_s16   ;;  %s6084_s15 = sphi %s6149_s15, %s8512_s15  }
   0x7   : > { %p86_p1 = scmp.eq.s32.totalorder %s6112_s22, 0  ;;  %p91_p2 = scmp.ne.s32.totalorder %s6088_s16, %s6084_s15 }
   0x8   : > { %p8153_p3 = scmp.eq.s32.totalorder %s6188_s23, 0  ;;  %p4152_p5 = scmp.ge.s32.totalorder %s6112_s22, 1 }
   0x9   : > { %p87_p4 = por %p86_p1, %p85_p0  ;;  %p149_p7 = scmp.lt.s32.totalorder %s6112_s22, 7 }
   0xa   : > { %p6198_p6 = por %p8153_p3, %p91_p2  ;;  %s6114_s26 = smov [#allocation4]  }
   0xb   : > { %p6203_p8 = pnand %p4152_p5, %p149_p7  ;;  %s161_s27 = sshll.u32 %s6114_s26, 4  ;;  %s162_s27 = int_to_ptr.vmem [resolvable:$true] %s161_s27 }
   0xc   : > { %s8309_s24 = scalar_select %p6198_p6, 1, 0 }
   0xd   : > { %p5519_p9 = pneg %p6203_p8  ;;  %p5532_p10 = scmp.lt.s32.totalorder %s6112_s22, 6 }
   0xe   : > { %s6115_s30 = smov [#allocation7]   ;;  %s5941_s6 = scalar_lea.vmem %s162_s27, 16384 }
   0xf   : > { %p6212_p11 = pnand %p5519_p9, %p8153_p3  ;;  %p6216_p12 = pnand %p5532_p10, %p87_p4 }
  0x10   : > { %s174_s5 = sshll.u32 %s6115_s30, 4  ;;  %p5942_p0 = scmp.ne.s32.totalorder %s162_s27, %s5941_s6  ;;  %s175_s5 = int_to_ptr.vmem [resolvable:$true] %s174_s5 }
  0x11   : > { %p5932_p13 = pneg %p6212_p11  ;;  %p5949_p5 = scmp.lt.s32.totalorder %s162_s27, %s162_s27 }
  0x12   : > { %p5950_p7 = scmp.lt.s32.totalorder %s5941_s6, %s5941_s6 }
  0x13   : > { %p5944_p1 = pnand %p5942_p0, %p5932_p13 }
  0x14   : > { %p5951_p9 = por %p5950_p7, %p5949_p5 }
  0x15   : > { %p5945_p2 = pneg %p5944_p1 }
  0x17   : > { %p5952_p3 = pnand %p5951_p9, %p5945_p2 }
  0x19   : > { %5955 = shalt.err (!%p5952_p3)
}
  0x1a   : > { %s6116_s7 = smov 256   ;;  %s6117_s8 = smov 16  }
  0x1b   : > { %5522 = dma.hbm_to_vmem [thread:$0]  (!%p6212_p11), %s8148_s0, 16384, %s162_s27, [#allocation5], %s6116_s7, %s6116_s7, %s6117_s8  }
  0x1c   : > { %s5967_s11 = scalar_lea.vmem %s175_s5, 4096  ;;  %p5975_p1 = scmp.lt.s32.totalorder %s175_s5, %s175_s5 }
  0x1d   : > { %p5968_p4 = scmp.ne.s32.totalorder %s175_s5, %s5967_s11  ;;  %p5976_p6 = scmp.lt.s32.totalorder %s5967_s11, %s5967_s11 }
  0x1f   : > { %p5970_p10 = pnand %p5968_p4, %p5932_p13  ;;  %p5977_p5 = por %p5976_p6, %p5975_p1 }
  0x21   : > { %p5971_p0 = pneg %p5970_p10 }
  0x23   : > { %p5978_p2 = pnand %p5977_p5, %p5971_p0 }
  0x25   : > { %5981 = shalt.err (!%p5978_p2)
}
  0x26   : > { %s8155_s12 = smov 64   ;;  %s8156_s13 = smov 4  }
  0x27   : > { %5525 = dma.hbm_to_vmem [thread:$0]  (!%p6212_p11), %s8149_s1, 4096, %s175_s5, [#allocation8], %s8155_s12, %s8155_s12, %s8156_s13  }
  0x28   : > { %s26_s26 = sadd.s32 1, %s6104_s20  ;;  %s29_s27 = sadd.s32 1, %s6108_s21 }
  0x29   : > { %p27_p3 = scmp.ge.s32.totalorder %s26_s26, 2  ;;  %s188_s30 = sand.u32 1, %s6112_s22  }
  0x2a   : > { %s190_s6 = sand.u32 1, %s6092_s17   ;;  %s4435_s28 = sshll.u32 %s6108_s21, 10 }
  0x2b   : > { %s8520_s26 = smov (%p27_p3, %s26_s26), 0  ;;  %s8522_s27 = smov (!%p27_p3, %s29_s27), %s6108_s21 }
  0x2c   : > { %s4156_s7 = sshll.u32 %s190_s6, 6  ;;  %p31_p6 = scmp.ge.s32.totalorder %s8522_s27, 3 }
  0x2d   : > { %s192_s8 = scalar_lea.vmem [#allocation9], %s4156_s7  ;;  %s198_s11 = scalar_lea.hbm %s8150_s2, %s4435_s28 }
  0x2e   : > { %s199_s9 = sshll.u32 %s192_s8, 4  ;;  %s8524_s27 = smov (%p31_p6, %s8522_s27), 0  ;;  %s200_s9 = int_to_ptr.vmem [resolvable:$true] %s199_s9 }
  0x2f   : > { %s78_s14 = sadd.s32 1, %s6092_s17  ;;  %s75_s15 = ssub.s32 %s6108_s21, %s8524_s27 }
  0x30   : > { %p6257_p11 = scmp.eq.s32.totalorder %s75_s15, 0  ;;  %s189_s13 = scalar_lea.sflag [#allocation5], %s188_s30 }
  0x31   : > { %p5984_p13 = pneg %p6216_p12  ;;  %s5995_s6 = scalar_lea.vmem %s200_s9, 1024 }
  0x32   : > { %p5996_p7 = scmp.ne.s32.totalorder %s200_s9, %s5995_s6  ;;  %s6120_s7 = smov [#allocation9]  }
  0x33   : > { %s6000_s8 = sshll.u32 %s6120_s7, 4  ;;  %s6001_s8 = int_to_ptr.vmem [resolvable:$false] %s6000_s8 }
  0x34   : > { %p5998_p9 = pnand %p5996_p7, %p5984_p13  ;;  %s6002_s10 = scalar_lea.vmem %s6001_s8, 2048 }
  0x35   : > { %p6003_p10 = scmp.lt.s32.totalorder %s200_s9, %s6001_s8  ;;  %p6004_p0 = scmp.lt.s32.totalorder %s6002_s10, %s5995_s6 }
  0x36   : > { %p5999_p4 = pneg %p5998_p9 }
  0x37   : > { %p6005_p1 = por %p6004_p0, %p6003_p10 }
  0x39   : > { %p6006_p5 = pnand %p6005_p1, %p5999_p4 }
  0x3b   : > { %6009 = shalt.err (!%p6006_p5)
}
  0x3c   : > { %s8314_s28 = smov 4   ;;  %s8315_s5 = smov 64  }
  0x3d   : > { %5529 = dma.hbm_to_vmem [thread:$0]  (!%p6216_p12), %s198_s11, 1024, %s200_s9, %s189_s13, %s8315_s5, %s8315_s5, %s8314_s28  }
  0x3e   : > { %s6271_s30 = scalar_select %p6257_p11, %s6092_s17, %s78_s14  }
  0x3f   : > { %217 = sbr.rel (%p6203_p8) target bundleno = 1970 (0x7b2), region = 36 }
  0x44   : > { %p8316_p2 = scmp.eq.s32.totalorder %s6188_s23, 0 }
  0x46   : > { %6067 = dma.done.wait (%p8316_p2), [#allocation5], 16384   ;;  %p8317_p3 = pmov %p8316_p2 }
  0x47   : > { %p8318_p6 = pmov %p8316_p2 }
  0x48   : > { %6069 = vsyncadd (%p8317_p3), [#allocation5], 4294950912 }
  0x49   : > { %6071 = dma.done.wait (%p8318_p6), [#allocation8], 4096   ;;  %p8319_p13 = pmov %p8316_p2 }
  0x4a   : > { %s227_s29 = sand.u32 1, %s6188_s23   ;;  %s229_s12 = sand.u32 1, %s6088_s16  }
  0x4b   : > { %6073 = vsyncadd (%p8319_p13), [#allocation8], 4294963200  ;;  %s4162_s13 = sshll.u32 %s229_s12, 6  ;;  %s228_s25 = scalar_lea.sflag [#allocation5], %s227_s29 }
  0x4c   : > { %s6285_s9 = scalar_lea.vmem [#allocation9], %s4162_s13  ;;  %p8320_p8 = scmp.ne.s32.totalorder %s8309_s24, 0 }
  0x4e   : > { %6075 = dma.done.wait (%p8320_p8), %s228_s25, 1024  }
  0x4f   : > { %6077 = vsyncadd (%p8320_p8), %s228_s25, 4294966272  ;;  %p254_p12 = scmp.lt.s32.totalorder %s6100_s19, 2  ;;  %p258_p11 = scmp.eq.s32.totalorder %s6100_s19, 0 }
  0x50   : > { %p259_p7 = scmp.eq.s32.totalorder %s6096_s18, 0 }
  0x51   : > { %s255_s11 = scalar_select %p254_p12, %s6100_s19, 2 }
  0x52   : > { %p260_p9 = pnand %p259_p7, %p258_p11 }
  0x53   : > { %s6298_s6 = scalar_lea.vmem %s8151_s3, %s255_s11 }
  0x54   : > { %263 = sbr.rel (%p260_p9) target bundleno = 106 (0x6a), region = 52 }
  0x59   : > { %v264_v0 = vld [vmem:[#allocation7] sm:$0xff]   ;;  %v266_v1 = vld [vmem:[#allocation7 + $0x8] sm:$0xff]   ;;  %v268_v2 = vld [vmem:[#allocation7 + $0x10] sm:$0xff]  }
  0x5a   : > { %328 = vst [vmem:[#allocation2] sm:$0xff] %v264_v0   ;;  %330 = vst [vmem:[#allocation2 + $0x8] sm:$0xff] %v266_v1   ;;  %v270_v3 = vld [vmem:[#allocation7 + $0x18] sm:$0xff]   ;;  %v272_v4 = vld [vmem:[#allocation7 + $0x20] sm:$0xff]  }
  0x5b   : > { %332 = vst [vmem:[#allocation2 + $0x10] sm:$0xff] %v268_v2   ;;  %v274_v5 = vld [vmem:[#allocation7 + $0x28] sm:$0xff]   ;;  %334 = vst [vmem:[#allocation2 + $0x18] sm:$0xff] %v270_v3   ;;  %v276_v6 = vld [vmem:[#allocation7 + $0x30] sm:$0xff]  }
  0x5c   : > { %336 = vst [vmem:[#allocation2 + $0x20] sm:$0xff] %v272_v4   ;;  %338 = vst [vmem:[#allocation2 + $0x28] sm:$0xff] %v274_v5   ;;  %v278_v7 = vld [vmem:[#allocation7 + $0x38] sm:$0xff]   ;;  %v280_v8 = vld [vmem:[#allocation7 + $0x40] sm:$0xff]  }
  0x5d   : > { %340 = vst [vmem:[#allocation2 + $0x30] sm:$0xff] %v276_v6   ;;  %342 = vst [vmem:[#allocation2 + $0x38] sm:$0xff] %v278_v7   ;;  %v282_v9 = vld [vmem:[#allocation7 + $0x48] sm:$0xff]   ;;  %v284_v10 = vld [vmem:[#allocation7 + $0x50] sm:$0xff]  }
  0x5e   : > { %344 = vst [vmem:[#allocation2 + $0x40] sm:$0xff] %v280_v8   ;;  %v286_v11 = vld [vmem:[#allocation7 + $0x58] sm:$0xff]   ;;  %346 = vst [vmem:[#allocation2 + $0x48] sm:$0xff] %v282_v9   ;;  %v288_v12 = vld [vmem:[#allocation7 + $0x60] sm:$0xff]  }
  0x5f   : > { %348 = vst [vmem:[#allocation2 + $0x50] sm:$0xff] %v284_v10   ;;  %350 = vst [vmem:[#allocation2 + $0x58] sm:$0xff] %v286_v11   ;;  %v290_v13 = vld [vmem:[#allocation7 + $0x68] sm:$0xff]   ;;  %v292_v14 = vld [vmem:[#allocation7 + $0x70] sm:$0xff]  }
  0x60   : > { %352 = vst [vmem:[#allocation2 + $0x60] sm:$0xff] %v288_v12   ;;  %354 = vst [vmem:[#allocation2 + $0x68] sm:$0xff] %v290_v13   ;;  %v294_v15 = vld [vmem:[#allocation7 + $0x78] sm:$0xff]   ;;  %v296_v16 = vld [vmem:[#allocation7 + $0x80] sm:$0xff]  }
  0x61   : > { %356 = vst [vmem:[#allocation2 + $0x70] sm:$0xff] %v292_v14   ;;  %v298_v17 = vld [vmem:[#allocation7 + $0x88] sm:$0xff]   ;;  %358 = vst [vmem:[#allocation2 + $0x78] sm:$0xff] %v294_v15   ;;  %v300_v18 = vld [vmem:[#allocation7 + $0x90] sm:$0xff]  }
  0x62   : > { %360 = vst [vmem:[#allocation2 + $0x80] sm:$0xff] %v296_v16   ;;  %362 = vst [vmem:[#allocation2 + $0x88] sm:$0xff] %v298_v17   ;;  %v302_v19 = vld [vmem:[#allocation7 + $0x98] sm:$0xff]   ;;  %v304_v20 = vld [vmem:[#allocation7 + $0xa0] sm:$0xff]  }
  0x63   : > { %364 = vst [vmem:[#allocation2 + $0x90] sm:$0xff] %v300_v18   ;;  %366 = vst [vmem:[#allocation2 + $0x98] sm:$0xff] %v302_v19   ;;  %v306_v21 = vld [vmem:[#allocation7 + $0xa8] sm:$0xff]   ;;  %v308_v22 = vld [vmem:[#allocation7 + $0xb0] sm:$0xff]  }
  0x64   : > { %368 = vst [vmem:[#allocation2 + $0xa0] sm:$0xff] %v304_v20   ;;  %v310_v23 = vld [vmem:[#allocation7 + $0xb8] sm:$0xff]   ;;  %370 = vst [vmem:[#allocation2 + $0xa8] sm:$0xff] %v306_v21   ;;  %v312_v24 = vld [vmem:[#allocation7 + $0xc0] sm:$0xff]  }
  0x65   : > { %372 = vst [vmem:[#allocation2 + $0xb0] sm:$0xff] %v308_v22   ;;  %374 = vst [vmem:[#allocation2 + $0xb8] sm:$0xff] %v310_v23   ;;  %v314_v25 = vld [vmem:[#allocation7 + $0xc8] sm:$0xff]   ;;  %v316_v26 = vld [vmem:[#allocation7 + $0xd0] sm:$0xff]  }
  0x66   : > { %376 = vst [vmem:[#allocation2 + $0xc0] sm:$0xff] %v312_v24   ;;  %378 = vst [vmem:[#allocation2 + $0xc8] sm:$0xff] %v314_v25   ;;  %v318_v27 = vld [vmem:[#allocation7 + $0xd8] sm:$0xff]   ;;  %v320_v28 = vld [vmem:[#allocation7 + $0xe0] sm:$0xff]  }
  0x67   : > { %380 = vst [vmem:[#allocation2 + $0xd0] sm:$0xff] %v316_v26   ;;  %v322_v29 = vld [vmem:[#allocation7 + $0xe8] sm:$0xff]   ;;  %382 = vst [vmem:[#allocation2 + $0xd8] sm:$0xff] %v318_v27   ;;  %v324_v30 = vld [vmem:[#allocation7 + $0xf0] sm:$0xff]  }
  0x68   : > { %384 = vst [vmem:[#allocation2 + $0xe0] sm:$0xff] %v320_v28   ;;  %386 = vst [vmem:[#allocation2 + $0xe8] sm:$0xff] %v322_v29   ;;  %v326_v31 = vld [vmem:[#allocation7 + $0xf8] sm:$0xff]  }
  0x69   : > { %388 = vst [vmem:[#allocation2 + $0xf0] sm:$0xff] %v324_v30   ;;  %390 = vst [vmem:[#allocation2 + $0xf8] sm:$0xff] %v326_v31  }
  0x6a PF: > { %s6301_s24 = sshll.u32 %s6096_s18, 8  ;;  %p462_p4 = scmp.lt.s32.totalorder %s6100_s19, 0 }
  0x6b   : > { %s6305_s7 = sshra.s32 %s6301_s24, 3  ;;  %s463_s8 = ssub.s32 0, %s6100_s19 }
  0x6c   : > { %s4436_s10 = sshll.u32 %s6305_s7, 4  ;;  %s4166_s28 = smin.u32 %s6100_s19, %s463_s8 }
  0x6d   : > { %s465_s5 = sand.u32 1, %s4166_s28   ;;  %s6310_s29 = scalar_lea.vmem [#allocation4], %s4436_s10 }
  0x6e   : > { %v6313_v32 = vld [vmem:[%s6310_s29] sm:$0xff]  ;;  %v6316_v33 = vld [vmem:[%s6310_s29 + $0x8] sm:$0xff]  ;;  %v6319_v34 = vld [vmem:[%s6310_s29 + $0x10] sm:$0xff]  ;;  %s466_s18 = ssub.s32 0, %s465_s5 }
  0x6f   : > { %8321 = vst [vmem:[#allocation15_spill] sm:$0xff] %v6313_v32  ;;  %8322 = vst [vmem:[#allocation16_spill] sm:$0xff] %v6316_v33  ;;  %v6322_v35 = vld [vmem:[%s6310_s29 + $0x18] sm:$0xff]  ;;  %v6325_v36 = vld [vmem:[%s6310_s29 + $0x20] sm:$0xff]  ;;  %s8526_s18 = smov (!%p462_p4, %s466_s18), %s465_s5 }
  0x70   : > { %8323 = vst [vmem:[#allocation17_spill] sm:$0xff] %v6319_v34  ;;  %8324 = vst [vmem:[#allocation18_spill] sm:$0xff] %v6322_v35  ;;  %v6328_v37 = vld [vmem:[%s6310_s29 + $0x28] sm:$0xff]  ;;  %v6333_v38 = vld [vmem:[%s6310_s29 + $0x30] sm:$0xff]  ;;  %p4168_p10 = scmp.lt.s32.totalorder %s8526_s18, 0  ;;  %s472_s12 = sadd.s32 2, %s8526_s18 }
  0x71   : > { %8325 = vst [vmem:[#allocation19_spill] sm:$0xff] %v6325_v36  ;;  %8326 = vst [vmem:[#allocation20_spill] sm:$0xff] %v6328_v37  ;;  %v6336_v39 = vld [vmem:[%s6310_s29 + $0x38] sm:$0xff]  ;;  %v6339_v40 = vld [vmem:[%s6310_s29 + $0x40] sm:$0xff] }
  0x72   : > { %8327 = vst [vmem:[#allocation21_spill] sm:$0xff] %v6333_v38  ;;  %8328 = vst [vmem:[#allocation22_spill] sm:$0xff] %v6336_v39  ;;  %v6342_v41 = vld [vmem:[%s6310_s29 + $0x48] sm:$0xff]  ;;  %v6345_v42 = vld [vmem:[%s6310_s29 + $0x50] sm:$0xff]  ;;  %s8528_s12 = smov (!%p4168_p10, %s472_s12), %s8526_s18 }
  0x73   : > { %8329 = vst [vmem:[#allocation23_spill] sm:$0xff] %v6339_v40  ;;  %8330 = vst [vmem:[#allocation24_spill] sm:$0xff] %v6342_v41  ;;  %v6348_v43 = vld [vmem:[%s6310_s29 + $0x58] sm:$0xff]  ;;  %v6351_v44 = vld [vmem:[%s6310_s29 + $0x60] sm:$0xff]  ;;  %p4169_p0 = scmp.ne.s32.totalorder %s8528_s12, 0 }
  0x74   : > { %8331 = vst [vmem:[#allocation25_spill] sm:$0xff] %v6345_v42  ;;  %8332 = vst [vmem:[#allocation26_spill] sm:$0xff] %v6348_v43  ;;  %v6354_v45 = vld [vmem:[%s6310_s29 + $0x68] sm:$0xff]  ;;  %v6357_v46 = vld [vmem:[%s6310_s29 + $0x70] sm:$0xff] }
  0x75   : > { %8333 = vst [vmem:[#allocation27_spill] sm:$0xff] %v6351_v44  ;;  %8334 = vst [vmem:[#allocation28_spill] sm:$0xff] %v6354_v45  ;;  %v6360_v47 = vld [vmem:[%s6310_s29 + $0x78] sm:$0xff]  ;;  %v6363_v48 = vld [vmem:[%s6310_s29 + $0x80] sm:$0xff] }
  0x76   : > { %8335 = vst [vmem:[#allocation29_spill] sm:$0xff] %v6357_v46  ;;  %8336 = vst [vmem:[#allocation30_spill] sm:$0xff] %v6360_v47  ;;  %v6366_v49 = vld [vmem:[%s6310_s29 + $0x88] sm:$0xff]  ;;  %v6371_v50 = vld [vmem:[%s6310_s29 + $0x90] sm:$0xff] }
  0x77   : > { %8337 = vst [vmem:[#allocation31_spill] sm:$0xff] %v6363_v48  ;;  %8338 = vst [vmem:[#allocation32_spill] sm:$0xff] %v6366_v49  ;;  %v6374_v51 = vld [vmem:[%s6310_s29 + $0x98] sm:$0xff]  ;;  %v6377_v52 = vld [vmem:[%s6310_s29 + $0xa0] sm:$0xff] }
  0x78   : > { %8339 = vst [vmem:[#allocation33_spill] sm:$0xff] %v6371_v50  ;;  %8340 = vst [vmem:[#allocation34_spill] sm:$0xff] %v6374_v51  ;;  %v6380_v53 = vld [vmem:[%s6310_s29 + $0xa8] sm:$0xff]  ;;  %v6383_v54 = vld [vmem:[%s6310_s29 + $0xb0] sm:$0xff] }
  0x79   : > { %8341 = vst [vmem:[#allocation35_spill] sm:$0xff] %v6377_v52  ;;  %8342 = vst [vmem:[#allocation36_spill] sm:$0xff] %v6380_v53  ;;  %v6386_v55 = vld [vmem:[%s6310_s29 + $0xb8] sm:$0xff]  ;;  %v6389_v56 = vld [vmem:[%s6310_s29 + $0xc0] sm:$0xff] }
  0x7a   : > { %8343 = vst [vmem:[#allocation37_spill] sm:$0xff] %v6383_v54  ;;  %8344 = vst [vmem:[#allocation38_spill] sm:$0xff] %v6386_v55  ;;  %v6392_v57 = vld [vmem:[%s6310_s29 + $0xc8] sm:$0xff]  ;;  %v6395_v58 = vld [vmem:[%s6310_s29 + $0xd0] sm:$0xff] }
  0x7b   : > { %8345 = vst [vmem:[#allocation39_spill] sm:$0xff] %v6389_v56  ;;  %8346 = vst [vmem:[#allocation40_spill] sm:$0xff] %v6392_v57  ;;  %v6398_v59 = vld [vmem:[%s6310_s29 + $0xd8] sm:$0xff]  ;;  %v6401_v60 = vld [vmem:[%s6310_s29 + $0xe0] sm:$0xff] }
  0x7c   : > { %8347 = vst [vmem:[#allocation41_spill] sm:$0xff] %v6395_v58  ;;  %8348 = vst [vmem:[#allocation42_spill] sm:$0xff] %v6398_v59  ;;  %v6404_v61 = vld [vmem:[%s6310_s29 + $0xe8] sm:$0xff]  ;;  %v6407_v62 = vld [vmem:[%s6310_s29 + $0xf0] sm:$0xff] }
  0x7d   : > { %8349 = vst [vmem:[#allocation43_spill] sm:$0xff] %v6401_v60  ;;  %8350 = vst [vmem:[#allocation44_spill] sm:$0xff] %v6404_v61  ;;  %v6410_v63 = vld [vmem:[%s6310_s29 + $0xf8] sm:$0xff]  ;;  %v6413_v0 = vld [vmem:[%s6310_s29 + $0x100] sm:$0xff] }
  0x7e   : > { %8351 = vst [vmem:[#allocation45_spill] sm:$0xff] %v6407_v62  ;;  %8352 = vst [vmem:[#allocation46_spill] sm:$0xff] %v6410_v63  ;;  %v6416_v1 = vld [vmem:[%s6310_s29 + $0x108] sm:$0xff]  ;;  %v6419_v2 = vld [vmem:[%s6310_s29 + $0x110] sm:$0xff] }
  0x7f   : > { %8353 = vst [vmem:[#allocation47_spill] sm:$0xff] %v6413_v0  ;;  %8354 = vst [vmem:[#allocation48_spill] sm:$0xff] %v6416_v1  ;;  %v6422_v3 = vld [vmem:[%s6310_s29 + $0x118] sm:$0xff]  ;;  %v6425_v4 = vld [vmem:[%s6310_s29 + $0x120] sm:$0xff] }
  0x80   : > { %8355 = vst [vmem:[#allocation49_spill] sm:$0xff] %v6419_v2  ;;  %8356 = vst [vmem:[#allocation50_spill] sm:$0xff] %v6422_v3  ;;  %v6428_v5 = vld [vmem:[%s6310_s29 + $0x128] sm:$0xff]  ;;  %v6431_v6 = vld [vmem:[%s6310_s29 + $0x130] sm:$0xff] }
  0x81   : > { %8357 = vst [vmem:[#allocation51_spill] sm:$0xff] %v6425_v4  ;;  %8358 = vst [vmem:[#allocation52_spill] sm:$0xff] %v6428_v5  ;;  %v6434_v7 = vld [vmem:[%s6310_s29 + $0x138] sm:$0xff]  ;;  %v6437_v8 = vld [vmem:[%s6310_s29 + $0x140] sm:$0xff] }
  0x82   : > { %8359 = vst [vmem:[#allocation53_spill] sm:$0xff] %v6431_v6  ;;  %8360 = vst [vmem:[#allocation54_spill] sm:$0xff] %v6434_v7  ;;  %v6440_v9 = vld [vmem:[%s6310_s29 + $0x148] sm:$0xff]  ;;  %v6443_v10 = vld [vmem:[%s6310_s29 + $0x150] sm:$0xff] }
  0x83   : > { %8361 = vst [vmem:[#allocation55_spill] sm:$0xff] %v6437_v8  ;;  %8362 = vst [vmem:[#allocation56_spill] sm:$0xff] %v6440_v9  ;;  %v6446_v11 = vld [vmem:[%s6310_s29 + $0x158] sm:$0xff]  ;;  %v6449_v12 = vld [vmem:[%s6310_s29 + $0x160] sm:$0xff] }
  0x84   : > { %8363 = vst [vmem:[#allocation57_spill] sm:$0xff] %v6443_v10  ;;  %8364 = vst [vmem:[#allocation58_spill] sm:$0xff] %v6446_v11  ;;  %v6452_v13 = vld [vmem:[%s6310_s29 + $0x168] sm:$0xff]  ;;  %v6455_v14 = vld [vmem:[%s6310_s29 + $0x170] sm:$0xff] }
  0x85   : > { %8365 = vst [vmem:[#allocation59_spill] sm:$0xff] %v6449_v12  ;;  %8366 = vst [vmem:[#allocation60_spill] sm:$0xff] %v6452_v13  ;;  %v6458_v15 = vld [vmem:[%s6310_s29 + $0x178] sm:$0xff]  ;;  %v6461_v16 = vld [vmem:[%s6310_s29 + $0x180] sm:$0xff] }
  0x86   : > { %8367 = vst [vmem:[#allocation61_spill] sm:$0xff] %v6455_v14  ;;  %8368 = vst [vmem:[#allocation62_spill] sm:$0xff] %v6458_v15  ;;  %v6464_v17 = vld [vmem:[%s6310_s29 + $0x188] sm:$0xff]  ;;  %v6467_v18 = vld [vmem:[%s6310_s29 + $0x190] sm:$0xff] }
  0x87   : > { %8369 = vst [vmem:[#allocation63_spill] sm:$0xff] %v6461_v16  ;;  %8370 = vst [vmem:[#allocation64_spill] sm:$0xff] %v6464_v17  ;;  %v6470_v19 = vld [vmem:[%s6310_s29 + $0x198] sm:$0xff]  ;;  %v6473_v20 = vld [vmem:[%s6310_s29 + $0x1a0] sm:$0xff] }
  0x88   : > { %8371 = vst [vmem:[#allocation65_spill] sm:$0xff] %v6467_v18  ;;  %8372 = vst [vmem:[#allocation66_spill] sm:$0xff] %v6470_v19  ;;  %v6476_v21 = vld [vmem:[%s6310_s29 + $0x1a8] sm:$0xff]  ;;  %v6479_v22 = vld [vmem:[%s6310_s29 + $0x1b0] sm:$0xff] }
  0x89   : > { %8373 = vst [vmem:[#allocation67_spill] sm:$0xff] %v6473_v20  ;;  %8374 = vst [vmem:[#allocation68_spill] sm:$0xff] %v6476_v21  ;;  %v6482_v23 = vld [vmem:[%s6310_s29 + $0x1b8] sm:$0xff]  ;;  %v6485_v24 = vld [vmem:[%s6310_s29 + $0x1c0] sm:$0xff] }
  0x8a   : > { %8375 = vst [vmem:[#allocation69_spill] sm:$0xff] %v6479_v22  ;;  %8376 = vst [vmem:[#allocation70_spill] sm:$0xff] %v6482_v23  ;;  %v6488_v25 = vld [vmem:[%s6310_s29 + $0x1c8] sm:$0xff]  ;;  %v6491_v26 = vld [vmem:[%s6310_s29 + $0x1d0] sm:$0xff]  ;;  %477 = sbr.rel (%p4169_p0) target bundleno = 1045 (0x415), region = 56 }
  0x8b   : > { %8377 = vst [vmem:[#allocation71_spill] sm:$0xff] %v6485_v24  ;;  %8378 = vst [vmem:[#allocation72_spill] sm:$0xff] %v6488_v25  ;;  %v6494_v27 = vld [vmem:[%s6310_s29 + $0x1d8] sm:$0xff]  ;;  %v6497_v28 = vld [vmem:[%s6310_s29 + $0x1e0] sm:$0xff] }
  0x8c   : > { %8379 = vst [vmem:[#allocation73_spill] sm:$0xff] %v6491_v26  ;;  %8380 = vst [vmem:[#allocation74_spill] sm:$0xff] %v6494_v27  ;;  %v6500_v29 = vld [vmem:[%s6310_s29 + $0x1e8] sm:$0xff]  ;;  %v6503_v30 = vld [vmem:[%s6310_s29 + $0x1f0] sm:$0xff] }
  0x8d   : > { %8381 = vst [vmem:[#allocation75_spill] sm:$0xff] %v6497_v28  ;;  %8382 = vst [vmem:[#allocation76_spill] sm:$0xff] %v6500_v29  ;;  %v6506_v31 = vld [vmem:[%s6310_s29 + $0x1f8] sm:$0xff] }
  0x8e   : > { %8383 = vst [vmem:[#allocation77_spill] sm:$0xff] %v6503_v30  ;;  %8384 = vst [vmem:[#allocation78_spill] sm:$0xff] %v6506_v31 }
  0x8f   : > { %v5610_v21 = vld [vmem:[#allocation2 + $0x78] sm:$0xff]   ;;  %v4219_v23 = vcombine.high %v6461_v16, %v6467_v18  ;;  %v5612_v17 = vld [vmem:[#allocation2 + $0x70] sm:$0xff]   ;;  %v4171_v27 = vcombine.high %v6313_v32, %v6319_v34  ;;  %v5614_v19 = vld [vmem:[#allocation2 + $0x68] sm:$0xff]   ;;  %s4299_s13 = sshll.u32 %s6305_s7, 2  ;;  %p2157_p1 = scmp.eq.s32.totalorder %s6100_s19, 2 }
  0x90   : > { %v5611_v25 = vld [vmem:[#allocation2 + $0x38] sm:$0xff]   ;;  %5473 = vmatprep.subr.bf16.mxu1 %v5610_v21  ;;  %v5613_v29 = vld [vmem:[#allocation2 + $0x30] sm:$0xff]   ;;  %4769 = vmatprep.subr.bf16.mxu0 %v5610_v21  ;;  %v5615_v31 = vld [vmem:[#allocation2 + $0x28] sm:$0xff]   ;;  %s6690_s25 = scalar_lea.vmem [#allocation3], %s4299_s13  ;;  %s7152_s14 = scalar_lea.vmem [#allocation10], %s6301_s24 }
  0x91   : > { %1182 = vmatprep.mubr.bf16.mxu1 %v4219_v23  ;;  %5481 = vmatpush3.bf16.msra.mxu1 %v5611_v25  ;;  %v5616_v13 = vld [vmem:[#allocation2 + $0x60] sm:$0xff]   ;;  %v5618_v23 = vld [vmem:[#allocation2 + $0x58] sm:$0xff]   ;;  %v5620_v21 = vld [vmem:[#allocation2 + $0x50] sm:$0xff]   ;;  %s2190_s11 = scalar_select %p2157_p1, 1, 0 }
  0x92   : > { %5474 = vmatprep.subr.bf16.mxu1 %v5612_v17  ;;  %4770 = vmatpush3.bf16.msra.mxu0 %v5611_v25  ;;  %v5617_v15 = vld [vmem:[#allocation2 + $0x20] sm:$0xff]   ;;  %v5619_v9 = vld [vmem:[#allocation2 + $0x18] sm:$0xff]   ;;  %v5622_v25 = vld [vmem:[#allocation2 + $0x48] sm:$0xff]  }
  0x93   : > { %4771 = vmatprep.subr.bf16.mxu0 %v5612_v17  ;;  %1086 = vmatprep.mubr.bf16.mxu0 %v4171_v27  ;;  %v5621_v17 = vld [vmem:[#allocation2 + $0x10] sm:$0xff]   ;;  %v5624_v27 = vld [vmem:[#allocation2 + $0x40] sm:$0xff]  }
  0x95   : > { %5482 = vmatpush3.bf16.msra.mxu1 %v5613_v29 }
  0x96   : > { %5475 = vmatprep.subr.bf16.mxu1 %v5614_v19  ;;  %4772 = vmatpush3.bf16.msra.mxu0 %v5613_v29  ;;  %v5626_v29 = vld [vmem:[#allocation2 + $0xf8] sm:$0xff]  }
  0x97   : > { %4773 = vmatprep.subr.bf16.mxu0 %v5614_v19  ;;  %v5623_v19 = vld [vmem:[#allocation2 + $0x8] sm:$0xff]  }
  0x99   : > { %5483 = vmatpush3.bf16.msra.mxu1 %v5615_v31 }
  0x9a   : > { %5476 = vmatprep.subr.bf16.mxu1 %v5616_v13  ;;  %4774 = vmatpush3.bf16.msra.mxu0 %v5615_v31  ;;  %v5627_v31 = vld [vmem:[#allocation2 + $0xb8] sm:$0xff]  }
  0x9b   : > { %4775 = vmatprep.subr.bf16.mxu0 %v5616_v13  ;;  %v5625_v13 = vld [vmem:[#allocation2] sm:$0xff]  }
  0x9d   : > { %5484 = vmatpush3.bf16.msra.mxu1 %v5617_v15 }
  0x9e   : > { %5477 = vmatprep.subr.bf16.mxu1 %v5618_v23  ;;  %4776 = vmatpush3.bf16.msra.mxu0 %v5617_v15  ;;  %v4218_v15 = vcombine.low %v6461_v16, %v6467_v18 }
  0x9f   : > { %4777 = vmatprep.subr.bf16.mxu0 %v5618_v23  ;;  %v5628_v23 = vld [vmem:[#allocation2 + $0xf0] sm:$0xff]  }
  0xa1   : > { %5485 = vmatpush3.bf16.msra.mxu1 %v5619_v9 }
  0xa2   : > { %5478 = vmatprep.subr.bf16.mxu1 %v5620_v21  ;;  %4778 = vmatpush3.bf16.msra.mxu0 %v5619_v9  ;;  %v4223_v9 = vcombine.high %v6473_v20, %v6479_v22 }
  0xa3   : > { %4779 = vmatprep.subr.bf16.mxu0 %v5620_v21  ;;  %v4170_v21 = vcombine.low %v6313_v32, %v6319_v34  ;;  %v5632_v32 = vld [vmem:[#allocation2 + $0xe0] sm:$0xff]  }
  0xa5   : > { %5486 = vmatpush3.bf16.msra.mxu1 %v5621_v17 }
  0xa6   : > { %5479 = vmatprep.subr.bf16.mxu1 %v5622_v25  ;;  %4780 = vmatpush3.bf16.msra.mxu0 %v5621_v17  ;;  %v4175_v17 = vcombine.high %v6325_v36, %v6333_v38 }
  0xa7   : > { %4781 = vmatprep.subr.bf16.mxu0 %v5622_v25  ;;  %v5629_v25 = vld [vmem:[#allocation2 + $0xb0] sm:$0xff]  }
  0xa9   : > { %5487 = vmatpush3.bf16.msra.mxu1 %v5623_v19 }
  0xaa   : > { %5480 = vmatprep.subr.bf16.mxu1 %v5624_v27  ;;  %4782 = vmatpush3.bf16.msra.mxu0 %v5623_v19  ;;  %v5630_v19 = vld [vmem:[#allocation2 + $0xe8] sm:$0xff]  }
  0xab   : > { %4783 = vmatprep.subr.bf16.mxu0 %v5624_v27  ;;  %v4222_v27 = vcombine.low %v6473_v20, %v6479_v22 }
  0xad   : > { %5488 = vmatpush3.bf16.msra.mxu1 %v5625_v13 }
  0xae   : > { %4881 = vmatprep.subr.bf16.mxu1 %v5626_v29  ;;  %4784 = vmatpush3.bf16.msra.mxu0 %v5625_v13  ;;  %v5631_v29 = vld [vmem:[#allocation2 + $0xa8] sm:$0xff]   ;;  %v4227_v13 = vcombine.high %v6485_v24, %v6491_v26 }
  0xb0   : > { %1183 = vmatmul.mubr.bf16.vlgmr.msra.gmra.mxu1 %v4218_v15  ;;  %v4174_v15 = vcombine.low %v6325_v36, %v6333_v38 }
  0xb1   : > { %4882 = vmatpush3.bf16.msra.mxu1 %v5627_v31  ;;  %1190 = vmatprep.mubr.bf16.mxu1 %v4223_v9  ;;  %v4179_v31 = vcombine.high %v6339_v40, %v6345_v42  ;;  %v5633_v9 = vld [vmem:[#allocation2 + $0xa0] sm:$0xff]  }
  0xb2   : > { %4883 = vmatprep.subr.bf16.mxu1 %v5628_v23  ;;  %1087 = vmatmul.mubr.bf16.vlgmr.msra.gmra.mxu0 %v4170_v21  ;;  %v5634_v23 = vld [vmem:[#allocation2 + $0xd8] sm:$0xff]   ;;  %v4226_v21 = vcombine.low %v6485_v24, %v6491_v26 }
  0xb3   : > { %1094 = vmatprep.mubr.bf16.mxu0 %v4175_v17  ;;  %v5635_v17 = vld [vmem:[#allocation2 + $0x98] sm:$0xff]  }
  0xb5   : > { %4884 = vmatpush3.bf16.msra.mxu1 %v5629_v25  ;;  %v4231_v25 = vcombine.high %v6497_v28, %v6503_v30 }
  0xb6   : > { %4885 = vmatprep.subr.bf16.mxu1 %v5630_v19  ;;  %v5636_v19 = vld [vmem:[#allocation2 + $0xd0] sm:$0xff]  }
  0xb8   : > { %1191 = vmatmul.mubr.bf16.gmra.mxu1 %v4222_v27  ;;  %v4178_v27 = vcombine.low %v6339_v40, %v6345_v42 }
  0xb9   : > { %4886 = vmatpush3.bf16.msra.mxu1 %v5631_v29  ;;  %1198 = vmatprep.mubr.bf16.mxu1 %v4227_v13  ;;  %v4183_v29 = vcombine.high %v6351_v44, %v6357_v46  ;;  %v5638_v13 = vld [vmem:[#allocation2 + $0xc8] sm:$0xff]  }
  0xba   : > { %4887 = vmatprep.subr.bf16.mxu1 %v5632_v32  ;;  %1095 = vmatmul.mubr.bf16.gmra.mxu0 %v4174_v15  ;;  %v5637_v32 = vld [vmem:[#allocation2 + $0x90] sm:$0xff]   ;;  %v4230_v15 = vcombine.low %v6497_v28, %v6503_v30 }
  0xbb   : > { %1102 = vmatprep.mubr.bf16.mxu0 %v4179_v31  ;;  %v5639_v31 = vld [vmem:[#allocation2 + $0x88] sm:$0xff]  }
  0xbd   : > { %4888 = vmatpush3.bf16.msra.mxu1 %v5633_v9  ;;  %v4173_v9 = vcombine.high %v6316_v33, %v6322_v35 }
  0xbe   : > { %4889 = vmatprep.subr.bf16.mxu1 %v5634_v23  ;;  %v5640_v23 = vld [vmem:[#allocation2 + $0xc0] sm:$0xff]  }
  0xc0   : > { %1199 = vmatmul.mubr.bf16.gmra.mxu1 %v4226_v21  ;;  %v4182_v21 = vcombine.low %v6351_v44, %v6357_v46 }
  0xc1   : > { %4890 = vmatpush3.bf16.msra.mxu1 %v5635_v17  ;;  %1206 = vmatprep.mubr.bf16.mxu1 %v4231_v25  ;;  %v4187_v17 = vcombine.high %v6363_v48, %v6371_v50  ;;  %v5641_v25 = vld [vmem:[#allocation2 + $0x80] sm:$0xff]  }
  0xc2   : > { %4891 = vmatprep.subr.bf16.mxu1 %v5636_v19  ;;  %1103 = vmatmul.mubr.bf16.gmra.mxu0 %v4178_v27  ;;  %v4172_v19 = vcombine.low %v6316_v33, %v6322_v35  ;;  %v4177_v27 = vcombine.high %v6328_v37, %v6336_v39 }
  0xc3   : > { %1110 = vmatprep.mubr.bf16.mxu0 %v4183_v29  ;;  %v4186_v29 = vcombine.low %v6363_v48, %v6371_v50 }
  0xc5   : > { %4892 = vmatpush3.bf16.msra.mxu1 %v5637_v32  ;;  %v4191_v32 = vcombine.high %v6377_v52, %v6383_v54 }
  0xc6   : > { %4893 = vmatprep.subr.bf16.mxu1 %v5638_v13  ;;  %v4176_v13 = vcombine.low %v6328_v37, %v6336_v39 }
  0xc8   : > { %1207 = vmatmul.mubr.bf16.gmra.mxu1 %v4230_v15  ;;  %v4181_v15 = vcombine.high %v6342_v41, %v6348_v43 }
  0xc9   : > { %4894 = vmatpush3.bf16.msra.mxu1 %v5639_v31  ;;  %1247 = vmatprep.mubr.bf16.mxu1 %v4173_v9  ;;  %v4190_v31 = vcombine.low %v6377_v52, %v6383_v54  ;;  %v4195_v9 = vcombine.high %v6389_v56, %v6395_v58 }
  0xca   : > { %4895 = vmatprep.subr.bf16.mxu1 %v5640_v23  ;;  %1111 = vmatmul.mubr.bf16.gmra.mxu0 %v4182_v21  ;;  %v4180_v23 = vcombine.low %v6342_v41, %v6348_v43  ;;  %v4185_v21 = vcombine.high %v6354_v45, %v6360_v47 }
  0xcb   : > { %1118 = vmatprep.mubr.bf16.mxu0 %v4187_v17  ;;  %v4194_v17 = vcombine.low %v6389_v56, %v6395_v58 }
  0xcd   : > { %4896 = vmatpush3.bf16.msra.mxu1 %v5641_v25  ;;  %v4199_v25 = vcombine.high %v6401_v60, %v6407_v62 }
  0xd0   : > { %1248 = vmatmul.mubr.bf16.vlgmr.msra.gmra.mxu1 %v4172_v19  ;;  %v4184_v19 = vcombine.low %v6354_v45, %v6360_v47 }
  0xd1   : > { %1255 = vmatprep.mubr.bf16.mxu1 %v4177_v27  ;;  %v4189_v27 = vcombine.high %v6366_v49, %v6374_v51 }
  0xd2   : > { %1119 = vmatmul.mubr.bf16.gmra.mxu0 %v4186_v29  ;;  %v4198_v29 = vcombine.low %v6401_v60, %v6407_v62 }
  0xd3   : > { %1126 = vmatprep.mubr.bf16.mxu0 %v4191_v32  ;;  %v4203_v32 = vcombine.high %v6413_v0, %v6419_v2 }
  0xd8   : > { %1256 = vmatmul.mubr.bf16.gmra.mxu1 %v4176_v13  ;;  %v4188_v13 = vcombine.low %v6366_v49, %v6374_v51 }
  0xd9   : > { %1263 = vmatprep.mubr.bf16.mxu1 %v4181_v15  ;;  %v4193_v15 = vcombine.high %v6380_v53, %v6386_v55 }
  0xda   : > { %1127 = vmatmul.mubr.bf16.gmra.mxu0 %v4190_v31  ;;  %v4202_v31 = vcombine.low %v6413_v0, %v6419_v2 }
  0xdb   : > { %1134 = vmatprep.mubr.bf16.mxu0 %v4195_v9  ;;  %v4207_v9 = vcombine.high %v6425_v4, %v6431_v6 }
  0xe0   : > { %1264 = vmatmul.mubr.bf16.gmra.mxu1 %v4180_v23  ;;  %v4192_v23 = vcombine.low %v6380_v53, %v6386_v55 }
  0xe1   : > { %1271 = vmatprep.mubr.bf16.mxu1 %v4185_v21  ;;  %v4731_v21 = vld [vmem:[%s6285_s9 + $0x38] sm:$0xff]  }
  0xe2   : > { %1135 = vmatmul.mubr.bf16.gmra.mxu0 %v4194_v17  ;;  %v4197_v17 = vcombine.high %v6392_v57, %v6398_v59 }
  0xe3   : > { %1142 = vmatprep.mubr.bf16.mxu0 %v4199_v25  ;;  %v4532_v25 = vunpack.c.h.bf16 %v4731_v21 }
  0xe5   : > { %5313 = vmatprep.subr.mxu0 %v4532_v25 }
  0xe6   : > { %5314 = vmatpush3.msra.mxu0 %v4532_v25 }
  0xe8   : > { %1272 = vmatmul.mubr.bf16.gmra.mxu1 %v4184_v19  ;;  %v4206_v19 = vcombine.low %v6425_v4, %v6431_v6 }
  0xe9   : > { %1279 = vmatprep.mubr.bf16.mxu1 %v4189_v27  ;;  %v4211_v27 = vcombine.high %v6437_v8, %v6443_v10 }
  0xea   : > { %1143 = vmatmul.mubr.bf16.gmra.mxu0 %v4198_v29  ;;  %v4531_v29 = vunpack.c.l.bf16 %v4731_v21  ;;  %v4729_v21 = vld [vmem:[%s6285_s9 + $0x28] sm:$0xff]  }
  0xeb   : > { %1150 = vmatprep.mubr.bf16.mxu0 %v4203_v32  ;;  %v4196_v32 = vcombine.low %v6392_v57, %v6398_v59  ;;  %v4524_v25 = vunpack.c.h.bf16 %v4729_v21 }
  0xec   : > { %5315 = vmatprep.subr.mxu0 %v4531_v29 }
  0xed   : > { %5316 = vmatpush3.msra.mxu0 %v4531_v29  ;;  %v4728_v29 = vld [vmem:[%s6285_s9 + $0x20] sm:$0xff]  }
  0xf0   : > { %1280 = vmatmul.mubr.bf16.gmra.mxu1 %v4188_v13  ;;  %v4730_v13 = vld [vmem:[%s6285_s9 + $0x30] sm:$0xff]  }
  0xf1   : > { %1287 = vmatprep.mubr.bf16.mxu1 %v4193_v15  ;;  %v4201_v15 = vcombine.high %v6404_v61, %v6410_v63 }
  0xf2   : > { %1151 = vmatmul.mubr.bf16.gmra.mxu0 %v4202_v31  ;;  %v4528_v31 = vunpack.c.h.bf16 %v4730_v13 }
  0xf3   : > { %1158 = vmatprep.mubr.bf16.mxu0 %v4207_v9  ;;  %v4210_v9 = vcombine.low %v6437_v8, %v6443_v10  ;;  %v4205_v8 = vcombine.high %v6416_v1, %v6422_v3 }
  0xf4   : > { %5317 = vmatprep.subr.mxu0 %v4528_v31 }
  0xf5   : > { %5318 = vmatpush3.msra.mxu0 %v4528_v31  ;;  %v4727_v31 = vld [vmem:[%s6285_s9 + $0x18] sm:$0xff]  }
  0xf8   : > { %1288 = vmatmul.mubr.bf16.gmra.mxu1 %v4192_v23  ;;  %v4215_v23 = vcombine.high %v6449_v12, %v6455_v14 }
  0xf9   : > { %1295 = vmatprep.mubr.bf16.mxu1 %v4197_v17  ;;  %v4527_v17 = vunpack.c.l.bf16 %v4730_v13  ;;  %v4214_v13 = vcombine.low %v6449_v12, %v6455_v14 }
  0xfa   : > { %1159 = vmatmul.mubr.bf16.gmra.mxu0 %v4206_v19  ;;  %v4523_v19 = vunpack.c.l.bf16 %v4729_v21  ;;  %v4726_v21 = vld [vmem:[%s6285_s9 + $0x10] sm:$0xff]  }
  0xfb   : > { %1166 = vmatprep.mubr.bf16.mxu0 %v4211_v27  ;;  %5319 = vmatprep.subr.mxu0 %v4527_v17  ;;  %v4200_v27 = vcombine.low %v6404_v61, %v6410_v63 }
  0xfc   : > { %5320 = vmatpush3.msra.mxu0 %v4527_v17  ;;  %v4204_v17 = vcombine.low %v6416_v1, %v6422_v3 }
  0xfd   : > { %5321 = vmatprep.subr.mxu0 %v4524_v25 }
  0xfe   : > { %5322 = vmatpush3.msra.mxu0 %v4524_v25  ;;  %v4209_v25 = vcombine.high %v6428_v5, %v6434_v7 }
  0xff   : > { %5323 = vmatprep.subr.mxu0 %v4523_v19 }
 0x100   : > { %1296 = vmatmul.mubr.bf16.gmra.mxu1 %v4196_v32  ;;  %v4520_v32 = vunpack.c.h.bf16 %v4728_v29  ;;  %5324 = vmatpush3.msra.mxu0 %v4523_v19  ;;  %v4512_v19 = vunpack.c.h.bf16 %v4726_v21 }
 0x101   : > { %1303 = vmatprep.mubr.bf16.mxu1 %v4201_v15  ;;  %v4519_v15 = vunpack.c.l.bf16 %v4728_v29 }
 0x102   : > { %1167 = vmatmul.mubr.bf16.gmra.mxu0 %v4210_v9  ;;  %5325 = vmatprep.subr.mxu0 %v4520_v32  ;;  %v4516_v9 = vunpack.c.h.bf16 %v4727_v31 }
 0x103   : > { %1174 = vmatprep.mubr.bf16.mxu0 %v4215_v23  ;;  %5326 = vmatpush3.msra.mxu0 %v4520_v32  ;;  %v4515_v23 = vunpack.c.l.bf16 %v4727_v31  ;;  %v8385_v31 = vld [vmem:[#allocation56_spill] sm:$0xff] }
 0x104   : > { %5327 = vmatprep.subr.mxu0 %v4519_v15 }
 0x105   : > { %5328 = vmatpush3.msra.mxu0 %v4519_v15  ;;  %v4502_v15 = vld [vmem:[%s6285_s9] sm:$0xff]  }
 0x106   : > { %5329 = vmatprep.subr.mxu0 %v4516_v9 }
 0x107   : > { %5330 = vmatpush3.msra.mxu0 %v4516_v9  ;;  %v4213_v9 = vcombine.high %v8385_v31, %v6446_v11 }
 0x108   : > { %1304 = vmatmul.mubr.bf16.gmra.mxu1 %v4200_v27  ;;  %5331 = vmatprep.subr.mxu0 %v4515_v23  ;;  %v4725_v27 = vld [vmem:[%s6285_s9 + $0x8] sm:$0xff]  }
 0x109   : > { %1311 = vmatprep.mubr.bf16.mxu1 %v4205_v8  ;;  %5332 = vmatpush3.msra.mxu0 %v4515_v23  ;;  %v4511_v8 = vunpack.c.l.bf16 %v4726_v21  ;;  %v4508_v29 = vunpack.c.h.bf16 %v4725_v27  ;;  %v4507_v32 = vunpack.c.l.bf16 %v4725_v27  ;;  %v4504_v23 = vunpack.c.h.bf16 %v4502_v15 }
 0x10a   : > { %1175 = vmatmul.mubr.bf16.gmra.mxu0 %v4214_v13  ;;  %5333 = vmatprep.subr.mxu0 %v4512_v19  ;;  %v4208_v13 = vcombine.low %v6428_v5, %v6434_v7  ;;  %v4212_v21 = vcombine.low %v8385_v31, %v6446_v11 }
 0x10b   : > { %5334 = vmatpush3.msra.mxu0 %v4512_v19  ;;  %v8387_v19 = vld [vmem:[#allocation60_spill] sm:$0xff] }
 0x10c   : > { %5335 = vmatprep.subr.mxu0 %v4511_v8 }
 0x10d   : > { %5336 = vmatpush3.msra.mxu0 %v4511_v8 }
 0x10e   : > { %5337 = vmatprep.subr.mxu0 %v4508_v29 }
 0x10f   : > { %5338 = vmatpush3.msra.mxu0 %v4508_v29  ;;  %v8388_v29 = vld [vmem:[#allocation66_spill] sm:$0xff] }
 0x110   : > { %1312 = vmatmul.mubr.bf16.gmra.mxu1 %v4204_v17  ;;  %5339 = vmatprep.subr.mxu0 %v4507_v32  ;;  %v4503_v17 = vunpack.c.l.bf16 %v4502_v15 }
 0x111   : > { %1319 = vmatprep.mubr.bf16.mxu1 %v4209_v25  ;;  %5340 = vmatpush3.msra.mxu0 %v4507_v32  ;;  %v8386_v25 = vld [vmem:[#allocation62_spill] sm:$0xff]  ;;  %v8389_v32 = vld [vmem:[#allocation64_spill] sm:$0xff] }
 0x112   : > { %5341 = vmatprep.subr.mxu0 %v4504_v23  ;;  %v4217_v8 = vcombine.high %v8387_v19, %v8386_v25  ;;  %v4216_v27 = vcombine.low %v8387_v19, %v8386_v25  ;;  %v4221_v15 = vcombine.high %v8389_v32, %v8388_v29  ;;  %v8394_v19 = vld [vmem:[#allocation78_spill] sm:$0xff] }
 0x113   : > { %5342 = vmatpush3.msra.mxu0 %v4504_v23  ;;  %v8391_v23 = vld [vmem:[#allocation68_spill] sm:$0xff] }
 0x114   : > { %5343 = vmatprep.subr.mxu0 %v4503_v17 }
 0x115   : > { %5344 = vmatpush3.msra.mxu0 %v4503_v17 }
 0x118   : > { %1320 = vmatmul.mubr.bf16.gmra.mxu1 %v4208_v13  ;;  %v4220_v13 = vcombine.low %v8389_v32, %v8388_v29 }
 0x119   : > { %1327 = vmatprep.mubr.bf16.mxu1 %v4213_v9  ;;  %v8390_v9 = vld [vmem:[#allocation70_spill] sm:$0xff] }
 0x11a   : > { %v4225_v17 = vcombine.high %v8391_v23, %v8390_v9  ;;  %v4224_v31 = vcombine.low %v8391_v23, %v8390_v9 }
 0x120   : > { %1328 = vmatmul.mubr.bf16.gmra.mxu1 %v4212_v21  ;;  %v8392_v21 = vld [vmem:[#allocation74_spill] sm:$0xff] }
 0x121   : > { %1335 = vmatprep.mubr.bf16.mxu1 %v4217_v8  ;;  %v8393_v8 = vld [vmem:[#allocation72_spill] sm:$0xff] }
 0x122   : > { %v4229_v11 = vcombine.high %v8393_v8, %v8392_v21  ;;  %v4228_v25 = vcombine.low %v8393_v8, %v8392_v21 }
 0x128   : > { %1336 = vmatmul.mubr.bf16.gmra.mxu1 %v4216_v27  ;;  %v8395_v27 = vld [vmem:[#allocation76_spill] sm:$0xff] }
 0x129   : > { %1343 = vmatprep.mubr.bf16.mxu1 %v4221_v15  ;;  %v4233_v15 = vcombine.high %v8395_v27, %v8394_v19  ;;  %v4232_v29 = vcombine.low %v8395_v27, %v8394_v19 }
 0x130   : > { %1344 = vmatmul.mubr.bf16.gmra.mxu1 %v4220_v13 }
 0x131   : > { %1351 = vmatprep.mubr.bf16.mxu1 %v4225_v17 }
 0x138   : > { %1352 = vmatmul.mubr.bf16.gmra.mxu1 %v4224_v31 }
 0x139   : > { %1359 = vmatprep.mubr.bf16.mxu1 %v4229_v11 }
 0x140   : > { %1360 = vmatmul.mubr.bf16.gmra.mxu1 %v4228_v25 }
 0x141   : > { %1367 = vmatprep.mubr.bf16.mxu1 %v4233_v15 }
 0x148   : > { %1368 = vmatmul.mubr.bf16.gmra.mxu1 %v4232_v29 }
 0x170   : > { %v4857_v32 = vpop.f32.mrf.mxu1 }
 0x172   : > { %v4858_v13 = vpop.f32.mrf.mxu1  ;;  %v4785_v9 = vpop.f32.mrf.mxu0 }
 0x173   : > { %v6645_v23 = vadd.f32 %v4858_v13, %v4857_v32 }
 0x174   : > { %v4860_v17 = vpop.f32.mrf.mxu1  ;;  %v4786_v31 = vpop.f32.mrf.mxu0 }
 0x175   : > { %v4787_v49 = vadd.f32 %v4786_v31, %v4785_v9 }
 0x176   : > { %v4861_v11 = vpop.f32.mrf.mxu1  ;;  %v4788_v5 = vpop.f32.mrf.mxu0 }
 0x177   : > { %v6647_v7 = vadd.f32 %v4861_v11, %v4860_v17 }
 0x178   : > { %v4863_v21 = vpop.f32.mrf.mxu1  ;;  %v4789_v8 = vpop.f32.mrf.mxu0 }
 0x179   : > { %v4790_v47 = vadd.f32 %v4789_v8, %v4788_v5 }
 0x17a   : > { %v4864_v1 = vpop.f32.mrf.mxu1  ;;  %v4791_v25 = vpop.f32.mrf.mxu0 }
 0x17b   : > { %v6649_v15 = vadd.f32 %v4864_v1, %v4863_v21 }
 0x17c   : > { %v4866_v3 = vpop.f32.mrf.mxu1  ;;  %v4792_v19 = vpop.f32.mrf.mxu0 }
 0x17d   : > { %v4793_v52 = vadd.f32 %v4792_v19, %v4791_v25 }
 0x17e   : > { %v4867_v27 = vpop.f32.mrf.mxu1  ;;  %v4794_v29 = vpop.f32.mrf.mxu0 }
 0x17f   : > { %v6651_v12 = vadd.f32 %v4867_v27, %v4866_v3 }
 0x180   : > { %v4869_v32 = vpop.f32.mrf.mxu1  ;;  %v4795_v13 = vpop.f32.mrf.mxu0 }
 0x182   : > { %v4870_v14 = vpop.f32.mrf.mxu1  ;;  %v4797_v61 = vpop.f32.mrf.mxu0 }
 0x183   : > { %v6653_v63 = vadd.f32 %v4870_v14, %v4869_v32 }
 0x184   : > { %v4872_v17 = vpop.f32.mrf.mxu1  ;;  %v4798_v11 = vpop.f32.mrf.mxu0 }
 0x186   : > { %v4873_v10 = vpop.f32.mrf.mxu1  ;;  %v4800_v57 = vpop.f32.mrf.mxu0 }
 0x187   : > { %v6655_v59 = vadd.f32 %v4873_v10, %v4872_v17 }
 0x188   : > { %v4875_v1 = vpop.f32.mrf.mxu1  ;;  %v4801_v21 = vpop.f32.mrf.mxu0 }
 0x18a   : > { %v4876_v4 = vpop.f32.mrf.mxu1  ;;  %v4803_v6 = vpop.f32.mrf.mxu0 }
 0x18b   : > { %v6657_v53 = vadd.f32 %v4876_v4, %v4875_v1 }
 0x18c   : > { %v4878_v3 = vpop.f32.mrf.mxu1  ;;  %v4804_v27 = vpop.f32.mrf.mxu0 }
 0x18e   : > { %v4879_v55 = vpop.f32.mrf.mxu1  ;;  %v4806_v0 = vpop.f32.mrf.mxu0 }
 0x18f   : > { %v6659_v2 = vadd.f32 %v4879_v55, %v4878_v3 }
 0x190   : > { %v4897_v14 = vpop.f32.mrf.mxu1  ;;  %v4807_v32 = vpop.f32.mrf.mxu0 }
 0x192   : > { %v4898_v51 = vpop.f32.mrf.mxu1  ;;  %v4809_v60 = vpop.f32.mrf.mxu0 }
 0x193   : > { %v4899_v62 = vadd.f32 %v4898_v51, %v4897_v14  ;;  %v4796_v51 = vadd.f32 %v4795_v13, %v4794_v29 }
 0x194   : > { %v4900_v10 = vpop.f32.mrf.mxu1  ;;  %v4810_v17 = vpop.f32.mrf.mxu0 }
 0x195   : > { %v1250_v45 = vadd.f32 %v4899_v62, %v4787_v49 }
 0x196   : > { %v4901_v56 = vpop.f32.mrf.mxu1  ;;  %v4812_v58 = vpop.f32.mrf.mxu0 }
 0x197   : > { %v4902_v4 = vadd.f32 %v4901_v56, %v4900_v10  ;;  %5345 = vmatprep.mubr.f32.mxu0 %v1250_v45  ;;  %v4799_v45 = vadd.f32 %v4798_v11, %v4797_v61 }
 0x198   : > { %v4903_v1 = vpop.f32.mrf.mxu1  ;;  %v4813_v41 = vpop.f32.mrf.mxu0 }
 0x199   : > { %v1253_v43 = vadd.f32 %v4902_v4, %v4790_v47 }
 0x19a   : > { %v4904_v55 = vpop.f32.mrf.mxu1  ;;  %v4815_v3 = vpop.f32.mrf.mxu0 }
 0x19b   : > { %v4905_v54 = vadd.f32 %v4904_v55, %v4903_v1  ;;  %5346 = vmatmul.mubr.f32.vlgmr.msra.gmra.mxu0 %v1253_v43  ;;  %v4802_v43 = vadd.f32 %v4801_v21, %v4800_v57 }
 0x19c   : > { %v4906_v9 = vpop.f32.mrf.mxu1  ;;  %v4816_v31 = vpop.f32.mrf.mxu0 }
 0x19d   : > { %v1258_v37 = vadd.f32 %v4905_v54, %v4793_v52 }
 0x19e   : > { %v4907_v14 = vpop.f32.mrf.mxu1  ;;  %v4818_v39 = vpop.f32.mrf.mxu0 }
 0x19f   : > { %v4908_v49 = vadd.f32 %v4907_v14, %v4906_v9  ;;  %5348 = vmatprep.mubr.f32.mxu0 %v1258_v37  ;;  %v4805_v37 = vadd.f32 %v4804_v27, %v4803_v6 }
 0x1a0   : > { %v4909_v62 = vpop.f32.mrf.mxu1  ;;  %v4819_v5 = vpop.f32.mrf.mxu0 }
 0x1a1   : > { %v1261_v56 = vadd.f32 %v4908_v49, %v4796_v51 }
 0x1a2   : > { %v4910_v8 = vpop.f32.mrf.mxu1  ;;  %v4821_v10 = vpop.f32.mrf.mxu0 }
 0x1a3   : > { %v4911_v47 = vadd.f32 %v4910_v8, %v4909_v62  ;;  %5349 = vmatmul.mubr.f32.gmra.mxu0 %v1261_v56  ;;  %v4808_v62 = vadd.f32 %v4807_v32, %v4806_v0 }
 0x1a4   : > { %v4912_v25 = vpop.f32.mrf.mxu1  ;;  %v4822_v19 = vpop.f32.mrf.mxu0 }
 0x1a5   : > { %v1266_v4 = vadd.f32 %v4911_v47, %v4799_v45 }
 0x1a6   : > { %v4913_v1 = vpop.f32.mrf.mxu1  ;;  %v4824_v55 = vpop.f32.mrf.mxu0 }
 0x1a7   : > { %v4914_v52 = vadd.f32 %v4913_v1, %v4912_v25  ;;  %5351 = vmatprep.mubr.f32.mxu0 %v1266_v4  ;;  %v4811_v25 = vadd.f32 %v4810_v17, %v4809_v60 }
 0x1a8   : > { %v4915_v54 = vpop.f32.mrf.mxu1  ;;  %v4825_v29 = vpop.f32.mrf.mxu0 }
 0x1a9   : > { %v1269_v13 = vadd.f32 %v4914_v52, %v4802_v43 }
 0x1aa   : > { %v4916_v9 = vpop.f32.mrf.mxu1  ;;  %v4827_v14 = vpop.f32.mrf.mxu0 }
 0x1ab   : > { %v4917_v51 = vadd.f32 %v4916_v9, %v4915_v54  ;;  %5352 = vmatmul.mubr.f32.gmra.mxu0 %v1269_v13  ;;  %v4814_v54 = vadd.f32 %v4813_v41, %v4812_v58  ;;  %v4823_v58 = vadd.f32 %v4822_v19, %v4821_v10 }
 0x1ac   : > { %v4918_v61 = vpop.f32.mrf.mxu1  ;;  %v4828_v11 = vpop.f32.mrf.mxu0 }
 0x1ad   : > { %v1274_v49 = vadd.f32 %v4917_v51, %v4805_v37  ;;  %v4817_v51 = vadd.f32 %v4816_v31, %v4815_v3  ;;  %v4826_v31 = vadd.f32 %v4825_v29, %v4824_v55 }
 0x1ae   : > { %v4919_v56 = vpop.f32.mrf.mxu1  ;;  %v4830_v8 = vpop.f32.mrf.mxu0 }
 0x1af   : > { %v4920_v45 = vadd.f32 %v4919_v56, %v4918_v61  ;;  %5354 = vmatprep.mubr.f32.mxu0 %v1274_v49 }
 0x1b0   : > { %v4921_v57 = vpop.f32.mrf.mxu1  ;;  %v4831_v21 = vpop.f32.mrf.mxu0 }
 0x1b1   : > { %v1277_v47 = vadd.f32 %v4920_v45, %v4808_v62  ;;  %v4820_v62 = vadd.f32 %v4819_v5, %v4818_v39  ;;  %v4829_v5 = vadd.f32 %v4828_v11, %v4827_v14  ;;  %v4832_v19 = vadd.f32 %v4831_v21, %v4830_v8 }
 0x1b2   : > { %v4922_v4 = vpop.f32.mrf.mxu1  ;;  %v4833_v1 = vpop.f32.mrf.mxu0 }
 0x1b3   : > { %v4923_v43 = vadd.f32 %v4922_v4, %v4921_v57  ;;  %5355 = vmatmul.mubr.f32.gmra.mxu0 %v1277_v47 }
 0x1b4   : > { %v4924_v6 = vpop.f32.mrf.mxu1  ;;  %v4834_v27 = vpop.f32.mrf.mxu0 }
 0x1b5   : > { %v1282_v52 = vadd.f32 %v4923_v43, %v4811_v25  ;;  %v4835_v29 = vadd.f32 %v4834_v27, %v4833_v1 }
 0x1b6   : > { %v4925_v13 = vpop.f32.mrf.mxu1  ;;  %v4836_v9 = vpop.f32.mrf.mxu0 }
 0x1b7   : > { %v4926_v37 = vadd.f32 %v4925_v13, %v4924_v6  ;;  %5357 = vmatprep.mubr.f32.mxu0 %v1282_v52 }
 0x1b8   : > { %v4927_v0 = vpop.f32.mrf.mxu1  ;;  %v4837_v49 = vpop.f32.mrf.mxu0 }
 0x1b9   : > { %v1285_v32 = vadd.f32 %v4926_v37, %v4814_v54  ;;  %v4838_v11 = vadd.f32 %v4837_v49, %v4836_v9 }
 0x1ba   : > { %v4928_v61 = vpop.f32.mrf.mxu1  ;;  %v4839_v57 = vpop.f32.mrf.mxu0 }
 0x1bb   : > { %v4929_v56 = vadd.f32 %v4928_v61, %v4927_v0  ;;  %5358 = vmatmul.mubr.f32.gmra.mxu0 %v1285_v32 }
 0x1bc   : > { %v4930_v60 = vpop.f32.mrf.mxu1  ;;  %v4840_v43 = vpop.f32.mrf.mxu0 }
 0x1bd   : > { %v1290_v17 = vadd.f32 %v4929_v56, %v4817_v51  ;;  %v4841_v21 = vadd.f32 %v4840_v43, %v4839_v57 }
 0x1be   : > { %v4931_v45 = vpop.f32.mrf.mxu1  ;;  %v4842_v13 = vpop.f32.mrf.mxu0 }
 0x1bf   : > { %v4932_v47 = vadd.f32 %v4931_v45, %v4930_v60  ;;  %5360 = vmatprep.mubr.f32.mxu0 %v1290_v17 }
 0x1c0   : > { %v4933_v25 = vpop.f32.mrf.mxu1  ;;  %v4843_v51 = vpop.f32.mrf.mxu0 }
 0x1c1   : > { %v1293_v41 = vadd.f32 %v4932_v47, %v4820_v62  ;;  %v4844_v27 = vadd.f32 %v4843_v51, %v4842_v13 }
 0x1c2   : > { %v4934_v4 = vpop.f32.mrf.mxu1  ;;  %v4845_v17 = vpop.f32.mrf.mxu0 }
 0x1c3   : > { %v4935_v6 = vadd.f32 %v4934_v4, %v4933_v25  ;;  %5361 = vmatmul.mubr.f32.gmra.mxu0 %v1293_v41 }
 0x1c4   : > { %v4936_v52 = vpop.f32.mrf.mxu1  ;;  %v4846_v25 = vpop.f32.mrf.mxu0 }
 0x1c5   : > { %v1298_v3 = vadd.f32 %v4935_v6, %v4823_v58  ;;  %v4847_v49 = vadd.f32 %v4846_v25, %v4845_v17 }
 0x1c6   : > { %v4937_v54 = vpop.f32.mrf.mxu1  ;;  %v4848_v6 = vpop.f32.mrf.mxu0 }
 0x1c7   : > { %v4938_v37 = vadd.f32 %v4937_v54, %v4936_v52  ;;  %5363 = vmatprep.mubr.f32.mxu0 %v1298_v3 }
 0x1c8   : > { %v4939_v0 = vpop.f32.mrf.mxu1  ;;  %v4849_v54 = vpop.f32.mrf.mxu0 }
 0x1c9   : > { %v1301_v39 = vadd.f32 %v4938_v37, %v4826_v31  ;;  %v4850_v43 = vadd.f32 %v4849_v54, %v4848_v6 }
 0x1ca   : > { %v4940_v32 = vpop.f32.mrf.mxu1 }
 0x1cb   : > { %v4941_v61 = vadd.f32 %v4940_v32, %v4939_v0  ;;  %5364 = vmatmul.mubr.f32.gmra.mxu0 %v1301_v39 }
 0x1cc   : > { %v4942_v56 = vpop.f32.mrf.mxu1 }
 0x1cd   : > { %v1306_v10 = vadd.f32 %v4941_v61, %v4829_v5  ;;  %v4851_v5 = vpop.f32.mrf.mxu0 }
 0x1ce   : > { %v4943_v60 = vpop.f32.mrf.mxu1 }
 0x1cf   : > { %v4944_v62 = vadd.f32 %v4943_v60, %v4942_v56  ;;  %5366 = vmatprep.mubr.f32.mxu0 %v1306_v10  ;;  %v4852_v10 = vpop.f32.mrf.mxu0 }
 0x1d0   : > { %v4945_v45 = vpop.f32.mrf.mxu1  ;;  %v4853_v51 = vadd.f32 %v4852_v10, %v4851_v5 }
 0x1d1   : > { %v1309_v55 = vadd.f32 %v4944_v62, %v4832_v19 }
 0x1d2   : > { %v4946_v47 = vpop.f32.mrf.mxu1 }
 0x1d3   : > { %v4947_v41 = vadd.f32 %v4946_v47, %v4945_v45  ;;  %5367 = vmatmul.mubr.f32.gmra.mxu0 %v1309_v55  ;;  %v4854_v45 = vpop.f32.mrf.mxu0 }
 0x1d4   : > { %v4948_v58 = vpop.f32.mrf.mxu1 }
 0x1d5   : > { %v1314_v14 = vadd.f32 %v4947_v41, %v4835_v29  ;;  %v4855_v41 = vpop.f32.mrf.mxu0 }
 0x1d6   : > { %v4949_v4 = vpop.f32.mrf.mxu1  ;;  %v4856_v25 = vadd.f32 %v4855_v41, %v4854_v45 }
 0x1d7   : > { %v4950_v52 = vadd.f32 %v4949_v4, %v4948_v58  ;;  %5369 = vmatprep.mubr.f32.mxu0 %v1314_v14 }
 0x1d8   : > { %v4951_v3 = vpop.f32.mrf.mxu1 }
 0x1d9   : > { %v1317_v8 = vadd.f32 %v4950_v52, %v4838_v11 }
 0x1da   : > { %v4952_v31 = vpop.f32.mrf.mxu1 }
 0x1db   : > { %v4953_v37 = vadd.f32 %v4952_v31, %v4951_v3  ;;  %5370 = vmatmul.mubr.f32.gmra.mxu0 %v1317_v8 }
 0x1dc   : > { %v4954_v0 = vpop.f32.mrf.mxu1 }
 0x1dd   : > { %v1322_v1 = vadd.f32 %v4953_v37, %v4841_v21 }
 0x1de   : > { %v4955_v39 = vpop.f32.mrf.mxu1 }
 0x1df   : > { %v4956_v32 = vadd.f32 %v4955_v39, %v4954_v0  ;;  %5372 = vmatprep.mubr.f32.mxu0 %v1322_v1 }
 0x1e0   : > { %v4957_v61 = vpop.f32.mrf.mxu1 }
 0x1e1   : > { %v1325_v9 = vadd.f32 %v4956_v32, %v4844_v27 }
 0x1e2   : > { %v4958_v56 = vpop.f32.mrf.mxu1 }
 0x1e3   : > { %v4959_v19 = vadd.f32 %v4958_v56, %v4957_v61  ;;  %5373 = vmatmul.mubr.f32.gmra.mxu0 %v1325_v9 }
 0x1e4   : > { %v4960_v60 = vpop.f32.mrf.mxu1 }
 0x1e5   : > { %v1330_v57 = vadd.f32 %v4959_v19, %v4847_v49 }
 0x1e6   : > { %v4961_v62 = vpop.f32.mrf.mxu1 }
 0x1e7   : > { %v4962_v55 = vadd.f32 %v4961_v62, %v4960_v60  ;;  %5375 = vmatprep.mubr.f32.mxu0 %v1330_v57 }
 0x1e8   : > { %v4963_v29 = vpop.f32.mrf.mxu1 }
 0x1e9   : > { %v1333_v13 = vadd.f32 %v4962_v55, %v4850_v43 }
 0x1ea   : > { %v4964_v47 = vpop.f32.mrf.mxu1 }
 0x1eb   : > { %v4965_v58 = vadd.f32 %v4964_v47, %v4963_v29  ;;  %5376 = vmatmul.mubr.f32.gmra.mxu0 %v1333_v13  ;;  %v6670_v47 = vld [vmem:[%s6298_s6] ss:$0 sm:$0xff] }
 0x1ec   : > { %v4966_v14 = vpop.f32.mrf.mxu1 }
 0x1ed   : > { %v1338_v17 = vadd.f32 %v4965_v58, %v4853_v51 }
 0x1ee   : > { %v4967_v11 = vpop.f32.mrf.mxu1 }
 0x1ef   : > { %v4968_v4 = vadd.f32 %v4967_v11, %v4966_v14  ;;  %5378 = vmatprep.mubr.f32.mxu0 %v1338_v17 }
 0x1f0   : > { %v4969_v52 = vpop.f32.mrf.mxu1 }
 0x1f1   : > { %v1341_v3 = vadd.f32 %v4968_v4, %v4856_v25 }
 0x1f2   : > { %v4970_v6 = vpop.f32.mrf.mxu1 }
 0x1f3   : > { %v4971_v8 = vadd.f32 %v4970_v6, %v4969_v52  ;;  %5379 = vmatmul.mubr.f32.gmra.mxu0 %v1341_v3 }
 0x1f4   : > { %v4972_v21 = vpop.f32.mrf.mxu1 }
 0x1f5   : > { %v1346_v31 = vadd.f32 %v4971_v8, %v6645_v23 }
 0x1f6   : > { %v4973_v54 = vpop.f32.mrf.mxu1 }
 0x1f7   : > { %v4974_v37 = vadd.f32 %v4973_v54, %v4972_v21  ;;  %5381 = vmatprep.mubr.f32.mxu0 %v1346_v31 }
 0x1f8   : > { %v4975_v0 = vpop.f32.mrf.mxu1 }
 0x1f9   : > { %v1349_v1 = vadd.f32 %v4974_v37, %v6647_v7 }
 0x1fa   : > { %v4976_v27 = vpop.f32.mrf.mxu1 }
 0x1fb   : > { %v4977_v39 = vadd.f32 %v4976_v27, %v4975_v0  ;;  %5382 = vmatmul.mubr.f32.gmra.mxu0 %v1349_v1 }
 0x1fc   : > { %v4978_v5 = vpop.f32.mrf.mxu1 }
 0x1fd   : > { %v1354_v32 = vadd.f32 %v4977_v39, %v6649_v15 }
 0x1fe   : > { %v4979_v61 = vpop.f32.mrf.mxu1 }
 0x1ff   : > { %v4980_v9 = vadd.f32 %v4979_v61, %v4978_v5  ;;  %5384 = vmatprep.mubr.f32.mxu0 %v1354_v32 }
 0x200   : > { %v4981_v49 = vpop.f32.mrf.mxu1 }
 0x201   : > { %v1357_v56 = vadd.f32 %v4980_v9, %v6651_v12 }
 0x202   : > { %v4982_v10 = vpop.f32.mrf.mxu1 }
 0x203   : > { %v4983_v23 = vadd.f32 %v4982_v10, %v4981_v49  ;;  %5385 = vmatmul.mubr.f32.gmra.mxu0 %v1357_v56 }
 0x204   : > { %v4984_v19 = vpop.f32.mrf.mxu1 }
 0x205   : > { %v1362_v60 = vadd.f32 %v4983_v23, %v6653_v63  ;;  %v1834_v63 = vlaneseq }
 0x206   : > { %v4985_v57 = vpop.f32.mrf.mxu1 }
 0x207   : > { %v4986_v7 = vadd.f32 %v4985_v57, %v4984_v19  ;;  %5387 = vmatprep.mubr.f32.mxu0 %v1362_v60  ;;  %v6672_v41 = vand.u32 127, %v1834_v63 }
 0x208   : > { %v4987_v43 = vpop.f32.mrf.mxu1 }
 0x209   : > { %v1365_v62 = vadd.f32 %v4986_v7, %v6655_v59  ;;  %vm1836_vm0 = vcmp.lt.s32.totalorder %v6672_v41, 8 }
 0x20a   : > { %v4988_v15 = vpop.f32.mrf.mxu1 }
 0x20b   : > { %v4989_v45 = vadd.f32 %v4988_v15, %v4987_v43  ;;  %5388 = vmatmul.mubr.f32.gmra.mxu0 %v1365_v62 }
 0x20c   : > { %v4990_v55 = vpop.f32.mrf.mxu1 }
 0x20d   : > { %v1370_v12 = vadd.f32 %v4989_v45, %v6657_v53 }
 0x20e   : > { %v4991_v29 = vpop.f32.mrf.mxu1 }
 0x20f   : > { %v4992_v13 = vadd.f32 %v4991_v29, %v4990_v55  ;;  %5390 = vmatprep.mubr.f32.mxu0 %v1370_v12 }
 0x211   : > { %v1373_v51 = vadd.f32 %v4992_v13, %v6659_v2 }
 0x213   : > { %5391 = vmatmul.mubr.f32.gmra.mxu0 %v1373_v51 }
 0x25b   : > { %v5347_v58 = vpop.f32.mrf.mxu0 }
 0x25c   : > { %v1487_v59 = vadd.f32 %v5347_v58, %v6670_v47 }
 0x25d   : > { %v1481_v14 = vpop.f32.mrf.mxu0 }
 0x25e   : > { %v6676_v17 = vmax.f32 %v1487_v59, 0.0  ;;  %v1482_v53 = vadd.f32 %v6670_v47, %v1481_v14 }
 0x260   : > { %v6680_v25 = vmax.f32 %v1482_v53, 0.0  ;;  %v6685_v2 = vsel %vm1836_vm0, %v6676_v17, -1e+30 }
 0x261   : > { %1871 = vmax.xlane.f32.xlu0 %v6685_v2 }
 0x262   : > { %v4536_v11 = vpack.c.bf16 %v6676_v17, %v6680_v25  ;;  %v6697_v3 = vsel %vm1836_vm0, %v6680_v25, -1e+30 }
 0x263   : > { %v5350_v4 = vpop.f32.mrf.mxu0 }
 0x264   : > { %4537 = vst [vmem:[%s6690_s25] sm:$0xff] %v4536_v11   ;;  %v1497_v52 = vadd.f32 %v5350_v4, %v6670_v47 }
 0x265   : > { %v1491_v6 = vpop.f32.mrf.mxu0  ;;  %1869 = vmax.xlane.f32.xlu0 %v6697_v3 }
 0x266   : > { %v6700_v8 = vmax.f32 %v1497_v52, 0.0  ;;  %v1492_v21 = vadd.f32 %v6670_v47, %v1491_v6 }
 0x268   : > { %v6703_v31 = vmax.f32 %v1492_v21, 0.0  ;;  %v6708_v54 = vsel %vm1836_vm0, %v6700_v8, -1e+30 }
 0x269   : > { %1875 = vmax.xlane.f32.xlu1 %v6708_v54 }
 0x26a   : > { %v4541_v37 = vpack.c.bf16 %v6700_v8, %v6703_v31  ;;  %v6718_v27 = vsel %vm1836_vm0, %v6703_v31, -1e+30 }
 0x26b   : > { %v5353_v0 = vpop.f32.mrf.mxu0 }
 0x26c   : > { %4732 = vst [vmem:[%s6690_s25 + $0x8] sm:$0xff] %v4541_v37   ;;  %v1507_v1 = vadd.f32 %v5353_v0, %v6670_v47 }
 0x26d   : > { %v1501_v39 = vpop.f32.mrf.mxu0  ;;  %1873 = vmax.xlane.f32.xlu1 %v6718_v27 }
 0x26e   : > { %v6721_v5 = vmax.f32 %v1507_v1, 0.0  ;;  %v1502_v32 = vadd.f32 %v6670_v47, %v1501_v39 }
 0x270   : > { %v6724_v61 = vmax.f32 %v1502_v32, 0.0  ;;  %v6729_v9 = vsel %vm1836_vm0, %v6721_v5, -1e+30 }
 0x271   : > { %1879 = vmax.xlane.f32.xlu1 %v6729_v9 }
 0x272   : > { %v4546_v49 = vpack.c.bf16 %v6721_v5, %v6724_v61  ;;  %v6737_v56 = vsel %vm1836_vm0, %v6724_v61, -1e+30 }
 0x273   : > { %v5356_v10 = vpop.f32.mrf.mxu0  ;;  %1877 = vmax.xlane.f32.xlu0 %v6737_v56 }
 0x274   : > { %4733 = vst [vmem:[%s6690_s25 + $0x10] sm:$0xff] %v4546_v49   ;;  %v1517_v23 = vadd.f32 %v5356_v10, %v6670_v47 }
 0x275   : > { %v1511_v19 = vpop.f32.mrf.mxu0 }
 0x276   : > { %v6742_v60 = vmax.f32 %v1517_v23, 0.0  ;;  %v1512_v57 = vadd.f32 %v6670_v47, %v1511_v19 }
 0x278   : > { %v6745_v7 = vmax.f32 %v1512_v57, 0.0  ;;  %v6750_v43 = vsel %vm1836_vm0, %v6742_v60, -1e+30 }
 0x279   : > { %1883 = vmax.xlane.f32.xlu1 %v6750_v43 }
 0x27a   : > { %v4551_v62 = vpack.c.bf16 %v6742_v60, %v6745_v7  ;;  %v6758_v15 = vsel %vm1836_vm0, %v6745_v7, -1e+30 }
 0x27b   : > { %v5359_v45 = vpop.f32.mrf.mxu0  ;;  %1881 = vmax.xlane.f32.xlu0 %v6758_v15 }
 0x27c   : > { %4734 = vst [vmem:[%s6690_s25 + $0x18] sm:$0xff] %v4551_v62   ;;  %v1527_v55 = vadd.f32 %v5359_v45, %v6670_v47 }
 0x27d   : > { %v1521_v12 = vpop.f32.mrf.mxu0 }
 0x27e   : > { %v6763_v29 = vmax.f32 %v1527_v55, 0.0  ;;  %v1522_v13 = vadd.f32 %v6670_v47, %v1521_v12 }
 0x280   : > { %v6766_v51 = vmax.f32 %v1522_v13, 0.0  ;;  %v6771_v63 = vsel %vm1836_vm0, %v6763_v29, -1e+30 }
 0x281   : > { %1887 = vmax.xlane.f32.xlu1 %v6771_v63 }
 0x282   : > { %v4556_v58 = vpack.c.bf16 %v6763_v29, %v6766_v51  ;;  %v6779_v59 = vsel %vm1836_vm0, %v6766_v51, -1e+30 }
 0x283   : > { %v5362_v14 = vpop.f32.mrf.mxu0  ;;  %1885 = vmax.xlane.f32.xlu0 %v6779_v59 }
 0x284   : > { %4735 = vst [vmem:[%s6690_s25 + $0x20] sm:$0xff] %v4556_v58   ;;  %v1537_v53 = vadd.f32 %v5362_v14, %v6670_v47 }
 0x285   : > { %v1531_v11 = vpop.f32.mrf.mxu0 }
 0x286   : > { %v6784_v4 = vmax.f32 %v1537_v53, 0.0  ;;  %v1532_v52 = vadd.f32 %v6670_v47, %v1531_v11 }
 0x288   : > { %v6787_v6 = vmax.f32 %v1532_v52, 0.0  ;;  %v6792_v21 = vsel %vm1836_vm0, %v6784_v4, -1e+30 }
 0x289   : > { %1891 = vmax.xlane.f32.xlu1 %v6792_v21 }
 0x28a   : > { %v4561_v37 = vpack.c.bf16 %v6784_v4, %v6787_v6  ;;  %v6800_v0 = vsel %vm1836_vm0, %v6787_v6, -1e+30 }
 0x28b   : > { %v5365_v1 = vpop.f32.mrf.mxu0  ;;  %1889 = vmax.xlane.f32.xlu0 %v6800_v0 }
 0x28c   : > { %4736 = vst [vmem:[%s6690_s25 + $0x28] sm:$0xff] %v4561_v37   ;;  %v1547_v39 = vadd.f32 %v5365_v1, %v6670_v47 }
 0x28d   : > { %v1541_v32 = vpop.f32.mrf.mxu0 }
 0x28e   : > { %v6805_v49 = vmax.f32 %v1547_v39, 0.0  ;;  %v1542_v10 = vadd.f32 %v6670_v47, %v1541_v32 }
 0x290   : > { %v6808_v23 = vmax.f32 %v1542_v10, 0.0  ;;  %v6813_v19 = vsel %vm1836_vm0, %v6805_v49, -1e+30 }
 0x291   : > { %1895 = vmax.xlane.f32.xlu1 %v6813_v19 }
 0x292   : > { %v4566_v57 = vpack.c.bf16 %v6805_v49, %v6808_v23  ;;  %v6821_v62 = vsel %vm1836_vm0, %v6808_v23, -1e+30 }
 0x293   : > { %v5368_v45 = vpop.f32.mrf.mxu0  ;;  %1893 = vmax.xlane.f32.xlu0 %v6821_v62 }
 0x294   : > { %4737 = vst [vmem:[%s6690_s25 + $0x30] sm:$0xff] %v4566_v57   ;;  %v1557_v55 = vadd.f32 %v5368_v45, %v6670_v47 }
 0x295   : > { %v1551_v12 = vpop.f32.mrf.mxu0 }
 0x296   : > { %v6826_v13 = vmax.f32 %v1557_v55, 0.0  ;;  %v1552_v58 = vadd.f32 %v6670_v47, %v1551_v12 }
 0x298   : > { %v6829_v14 = vmax.f32 %v1552_v58, 0.0  ;;  %v6834_v53 = vsel %vm1836_vm0, %v6826_v13, -1e+30 }
 0x299   : > { %1899 = vmax.xlane.f32.xlu1 %v6834_v53 }
 0x29a   : > { %v4571_v11 = vpack.c.bf16 %v6826_v13, %v6829_v14  ;;  %v6842_v52 = vsel %vm1836_vm0, %v6829_v14, -1e+30 }
 0x29b   : > { %v5371_v37 = vpop.f32.mrf.mxu0  ;;  %1897 = vmax.xlane.f32.xlu0 %v6842_v52 }
 0x29c   : > { %4738 = vst [vmem:[%s6690_s25 + $0x38] sm:$0xff] %v4571_v11   ;;  %v1567_v1 = vadd.f32 %v5371_v37, %v6670_v47 }
 0x29d   : > { %v1561_v39 = vpop.f32.mrf.mxu0 }
 0x29e   : > { %v6847_v32 = vmax.f32 %v1567_v1, 0.0  ;;  %v1562_v10 = vadd.f32 %v6670_v47, %v1561_v39 }
 0x2a0   : > { %v6850_v57 = vmax.f32 %v1562_v10, 0.0  ;;  %v6855_v45 = vsel %vm1836_vm0, %v6847_v32, -1e+30 }
 0x2a1   : > { %1903 = vmax.xlane.f32.xlu1 %v6855_v45 }
 0x2a2   : > { %v4576_v55 = vpack.c.bf16 %v6847_v32, %v6850_v57  ;;  %v6863_v12 = vsel %vm1836_vm0, %v6850_v57, -1e+30 }
 0x2a3   : > { %v5374_v58 = vpop.f32.mrf.mxu0  ;;  %1901 = vmax.xlane.f32.xlu0 %v6863_v12 }
 0x2a4   : > { %4739 = vst [vmem:[%s6690_s25 + $0x40] sm:$0xff] %v4576_v55   ;;  %v1577_v11 = vadd.f32 %v5374_v58, %v6670_v47 }
 0x2a5   : > { %v1571_v37 = vpop.f32.mrf.mxu0 }
 0x2a6   : > { %v6868_v1 = vmax.f32 %v1577_v11, 0.0  ;;  %v1572_v39 = vadd.f32 %v6670_v47, %v1571_v37 }
 0x2a8   : > { %v6871_v10 = vmax.f32 %v1572_v39, 0.0  ;;  %v6876_v48 = vsel %vm1836_vm0, %v6868_v1, -1e+30 }
 0x2a9   : > { %1907 = vmax.xlane.f32.xlu1 %v6876_v48 }
 0x2aa   : > { %v4581_v50 = vpack.c.bf16 %v6868_v1, %v6871_v10  ;;  %v6884_v55 = vsel %vm1836_vm0, %v6871_v10, -1e+30 }
 0x2ab   : > { %v5377_v58 = vpop.f32.mrf.mxu0  ;;  %1905 = vmax.xlane.f32.xlu0 %v6884_v55 }
 0x2ac   : > { %4740 = vst [vmem:[%s6690_s25 + $0x48] sm:$0xff] %v4581_v50   ;;  %v1587_v11 = vadd.f32 %v5377_v58, %v6670_v47 }
 0x2ad   : > { %v1581_v37 = vpop.f32.mrf.mxu0 }
 0x2ae   : > { %v6889_v39 = vmax.f32 %v1587_v11, 0.0  ;;  %v1582_v33 = vadd.f32 %v6670_v47, %v1581_v37 }
 0x2b0   : > { %8396 = vst [vmem:[#allocation79_spill] sm:$0xff] %v6889_v39  ;;  %v6892_v35 = vmax.f32 %v1582_v33, 0.0  ;;  %v6897_v44 = vsel %vm1836_vm0, %v6889_v39, -1e+30 }
 0x2b1   : > { %1911 = vmax.xlane.f32.xlu1 %v6897_v44 }
 0x2b2   : > { %8397 = vst [vmem:[#allocation80_spill] sm:$0xff] %v6892_v35  ;;  %v4586_v46 = vpack.c.bf16 %v6889_v39, %v6892_v35  ;;  %v6905_v50 = vsel %vm1836_vm0, %v6892_v35, -1e+30 }
 0x2b3   : > { %v5380_v58 = vpop.f32.mrf.mxu0  ;;  %1909 = vmax.xlane.f32.xlu0 %v6905_v50 }
 0x2b4   : > { %4741 = vst [vmem:[%s6690_s25 + $0x50] sm:$0xff] %v4586_v46   ;;  %v1597_v33 = vadd.f32 %v5380_v58, %v6670_v47 }
 0x2b5   : > { %v1591_v11 = vpop.f32.mrf.mxu0 }
 0x2b6   : > { %v6910_v37 = vmax.f32 %v1597_v33, 0.0  ;;  %v1592_v28 = vadd.f32 %v6670_v47, %v1591_v11 }
 0x2b8   : > { %8398 = vst [vmem:[#allocation81_spill] sm:$0xff] %v6910_v37  ;;  %v6913_v30 = vmax.f32 %v1592_v28, 0.0  ;;  %v6918_v40 = vsel %vm1836_vm0, %v6910_v37, -1e+30 }
 0x2b9   : > { %1915 = vmax.xlane.f32.xlu1 %v6918_v40 }
 0x2ba   : > { %8399 = vst [vmem:[#allocation82_spill] sm:$0xff] %v6913_v30  ;;  %v4591_v42 = vpack.c.bf16 %v6910_v37, %v6913_v30  ;;  %v6926_v46 = vsel %vm1836_vm0, %v6913_v30, -1e+30 }
 0x2bb   : > { %v5383_v58 = vpop.f32.mrf.mxu0  ;;  %1913 = vmax.xlane.f32.xlu0 %v6926_v46 }
 0x2bc   : > { %4742 = vst [vmem:[%s6690_s25 + $0x58] sm:$0xff] %v4591_v42   ;;  %v1607_v28 = vadd.f32 %v5383_v58, %v6670_v47 }
 0x2bd   : > { %v1601_v33 = vpop.f32.mrf.mxu0 }
 0x2be   : > { %v6931_v11 = vmax.f32 %v1607_v28, 0.0  ;;  %v1602_v24 = vadd.f32 %v6670_v47, %v1601_v33 }
 0x2c0   : > { %8400 = vst [vmem:[#allocation83_spill] sm:$0xff] %v6931_v11  ;;  %v6934_v26 = vmax.f32 %v1602_v24, 0.0  ;;  %v6939_v36 = vsel %vm1836_vm0, %v6931_v11, -1e+30 }
 0x2c1   : > { %1919 = vmax.xlane.f32.xlu1 %v6939_v36 }
 0x2c2   : > { %8401 = vst [vmem:[#allocation84_spill] sm:$0xff] %v6934_v26  ;;  %v4596_v38 = vpack.c.bf16 %v6931_v11, %v6934_v26  ;;  %v6947_v42 = vsel %vm1836_vm0, %v6934_v26, -1e+30 }
 0x2c3   : > { %v5386_v58 = vpop.f32.mrf.mxu0  ;;  %1917 = vmax.xlane.f32.xlu0 %v6947_v42 }
 0x2c4   : > { %4743 = vst [vmem:[%s6690_s25 + $0x60] sm:$0xff] %v4596_v38   ;;  %v1617_v24 = vadd.f32 %v5386_v58, %v6670_v47 }
 0x2c5   : > { %v1611_v28 = vpop.f32.mrf.mxu0 }
 0x2c6   : > { %v6952_v33 = vmax.f32 %v1617_v24, 0.0  ;;  %v1612_v20 = vadd.f32 %v6670_v47, %v1611_v28 }
 0x2c8   : > { %8402 = vst [vmem:[#allocation85_spill] sm:$0xff] %v6952_v33  ;;  %v6955_v22 = vmax.f32 %v1612_v20, 0.0  ;;  %v6960_v34 = vsel %vm1836_vm0, %v6952_v33, -1e+30 }
 0x2c9   : > { %1923 = vmax.xlane.f32.xlu1 %v6960_v34 }
 0x2ca   : > { %8403 = vst [vmem:[#allocation86_spill] sm:$0xff] %v6955_v22  ;;  %v4601_v16 = vpack.c.bf16 %v6952_v33, %v6955_v22  ;;  %v6968_v38 = vsel %vm1836_vm0, %v6955_v22, -1e+30 }
 0x2cb   : > { %v5389_v58 = vpop.f32.mrf.mxu0  ;;  %1921 = vmax.xlane.f32.xlu0 %v6968_v38 }
 0x2cc   : > { %4744 = vst [vmem:[%s6690_s25 + $0x68] sm:$0xff] %v4601_v16   ;;  %v1627_v20 = vadd.f32 %v5389_v58, %v6670_v47 }
 0x2cd   : > { %v1621_v24 = vpop.f32.mrf.mxu0 }
 0x2ce   : > { %v6973_v28 = vmax.f32 %v1627_v20, 0.0  ;;  %v1622_v18 = vadd.f32 %v6670_v47, %v1621_v24 }
 0x2d0   : > { %8404 = vst [vmem:[#allocation87_spill] sm:$0xff] %v6973_v28  ;;  %v6976_v26 = vmax.f32 %v1622_v18, 0.0  ;;  %v6981_v33 = vsel %vm1836_vm0, %v6973_v28, -1e+30 }
 0x2d1   : > { %1927 = vmax.xlane.f32.xlu1 %v6981_v33 }
 0x2d2   : > { %8405 = vst [vmem:[#allocation88_spill] sm:$0xff] %v6976_v26  ;;  %v4606_v16 = vpack.c.bf16 %v6973_v28, %v6976_v26  ;;  %v6989_v58 = vsel %vm1836_vm0, %v6976_v26, -1e+30 }
 0x2d3   : > { %v5392_v20 = vpop.f32.mrf.mxu0  ;;  %1925 = vmax.xlane.f32.xlu0 %v6989_v58 }
 0x2d4   : > { %4745 = vst [vmem:[%s6690_s25 + $0x70] sm:$0xff] %v4606_v16   ;;  %v1637_v18 = vadd.f32 %v5392_v20, %v6670_v47 }
 0x2d5   : > { %v1631_v24 = vpop.f32.mrf.mxu0 }
 0x2d6   : > { %v6994_v22 = vmax.f32 %v1637_v18, 0.0  ;;  %v1632_v11 = vadd.f32 %v6670_v47, %v1631_v24 }
 0x2d8   : > { %8406 = vst [vmem:[#allocation89_spill] sm:$0xff] %v6994_v22  ;;  %v6997_v30 = vmax.f32 %v1632_v11, 0.0  ;;  %v7002_v28 = vsel %vm1836_vm0, %v6994_v22, -1e+30 }
 0x2d9   : > { %1931 = vmax.xlane.f32.xlu1 %v7002_v28 }
 0x2da   : > { %8407 = vst [vmem:[#allocation90_spill] sm:$0xff] %v6997_v30  ;;  %v4611_v26 = vpack.c.bf16 %v6994_v22, %v6997_v30  ;;  %v7010_v16 = vsel %vm1836_vm0, %v6997_v30, -1e+30 }
 0x2db   : > { %1929 = vmax.xlane.f32.xlu0 %v7010_v16 }
 0x2dc   : > { %4746 = vst [vmem:[%s6690_s25 + $0x78] sm:$0xff] %v4611_v26  }
 0x2ea   : > { %v1872_v47 = vpop.xlane.xlu0 %1871 }
 0x2eb   : > { %v7015_v11 = vsub.f32 %v6685_v2, %v1872_v47 }
 0x2ed   : > { %v1967_v20 = vmul.f32 1.442695, %v7015_v11 }
 0x2ee   : > { %v1870_v18 = vpop.xlane.xlu0 %1869 }
 0x2ef   : > { %5642 = vpow2.f32 %v1967_v20  ;;  %v7019_v24 = vsub.f32 %v6697_v3, %v1870_v18 }
 0x2f1   : > { %v1965_v22 = vmul.f32 1.442695, %v7019_v24 }
 0x2f2   : > { %v1876_v37 = vpop.xlane.xlu1 %1875 }
 0x2f3   : > { %5644 = vpow2.f32 %v1965_v22  ;;  %v7023_v41 = vsub.f32 %v6708_v54, %v1876_v37 }
 0x2f5   : > { %v1971_v26 = vmul.f32 1.442695, %v7023_v41 }
 0x2f6   : > { %v1874_v30 = vpop.xlane.xlu1 %1873 }
 0x2f7   : > { %5646 = vpow2.f32 %v1971_v26  ;;  %v7027_v2 = vsub.f32 %v6718_v27, %v1874_v30 }
 0x2f9   : > { %v1969_v47 = vmul.f32 1.442695, %v7027_v2 }
 0x2fa   : > { %v1880_v20 = vpop.xlane.xlu1 %1879 }
 0x2fb   : > { %5648 = vpow2.f32 %v1969_v47  ;;  %v7031_v3 = vsub.f32 %v6729_v9, %v1880_v20 }
 0x2fc   : > { %v5643_v18 = vpop.eup %5642  ;;  %v1878_v35 = vpop.xlane.xlu0 %1877 }
 0x2fd   : > { %v1975_v22 = vmul.f32 1.442695, %v7031_v3  ;;  %v7035_v54 = vsub.f32 %v6737_v56, %v1878_v35  ;;  %2031 = vadd.xlane.f32.xlu1 %v5643_v18 }
 0x2ff   : > { %5650 = vpow2.f32 %v1975_v22  ;;  %v1973_v37 = vmul.f32 1.442695, %v7035_v54 }
 0x300   : > { %v5645_v30 = vpop.eup %5644 }
 0x301   : > { %5652 = vpow2.f32 %v1973_v37  ;;  %2029 = vadd.xlane.f32.xlu0 %v5645_v30 }
 0x302   : > { %v1884_v27 = vpop.xlane.xlu1 %1883 }
 0x303   : > { %v7039_v26 = vsub.f32 %v6750_v43, %v1884_v27 }
 0x304   : > { %v5647_v9 = vpop.eup %5646  ;;  %v1882_v47 = vpop.xlane.xlu0 %1881 }
 0x305   : > { %v1979_v20 = vmul.f32 1.442695, %v7039_v26  ;;  %v7043_v39 = vsub.f32 %v6758_v15, %v1882_v47  ;;  %2035 = vadd.xlane.f32.xlu1 %v5647_v9 }
 0x307   : > { %5654 = vpow2.f32 %v1979_v20  ;;  %v1977_v35 = vmul.f32 1.442695, %v7043_v39 }
 0x308   : > { %v5649_v56 = vpop.eup %5648 }
 0x309   : > { %5656 = vpow2.f32 %v1977_v35  ;;  %2033 = vadd.xlane.f32.xlu0 %v5649_v56 }
 0x30a   : > { %v1888_v18 = vpop.xlane.xlu1 %1887 }
 0x30b   : > { %v7047_v22 = vsub.f32 %v6771_v63, %v1888_v18 }
 0x30c   : > { %v5651_v43 = vpop.eup %5650  ;;  %v1886_v37 = vpop.xlane.xlu0 %1885 }
 0x30d   : > { %v1983_v30 = vmul.f32 1.442695, %v7047_v22  ;;  %v7051_v27 = vsub.f32 %v6779_v59, %v1886_v37  ;;  %2039 = vadd.xlane.f32.xlu1 %v5651_v43 }
 0x30e   : > { %v5653_v15 = vpop.eup %5652 }
 0x30f   : > { %5658 = vpow2.f32 %v1983_v30  ;;  %v1981_v9 = vmul.f32 1.442695, %v7051_v27  ;;  %2037 = vadd.xlane.f32.xlu0 %v5653_v15 }
 0x311   : > { %5660 = vpow2.f32 %v1981_v9 }
 0x312   : > { %v1892_v47 = vpop.xlane.xlu1 %1891 }
 0x313   : > { %v7055_v20 = vsub.f32 %v6792_v21, %v1892_v47 }
 0x314   : > { %v5655_v63 = vpop.eup %5654  ;;  %v1890_v35 = vpop.xlane.xlu0 %1889 }
 0x315   : > { %v1987_v56 = vmul.f32 1.442695, %v7055_v20  ;;  %v7059_v18 = vsub.f32 %v6800_v0, %v1890_v35  ;;  %2043 = vadd.xlane.f32.xlu1 %v5655_v63 }
 0x316   : > { %v5657_v59 = vpop.eup %5656 }
 0x317   : > { %5662 = vpow2.f32 %v1987_v56  ;;  %v1985_v43 = vmul.f32 1.442695, %v7059_v18  ;;  %2041 = vadd.xlane.f32.xlu0 %v5657_v59 }
 0x319   : > { %5664 = vpow2.f32 %v1985_v43 }
 0x31a   : > { %v1896_v37 = vpop.xlane.xlu1 %1895 }
 0x31b   : > { %v7063_v30 = vsub.f32 %v6813_v19, %v1896_v37 }
 0x31c   : > { %v5659_v21 = vpop.eup %5658  ;;  %v1894_v15 = vpop.xlane.xlu0 %1893 }
 0x31d   : > { %v1991_v9 = vmul.f32 1.442695, %v7063_v30  ;;  %v7067_v47 = vsub.f32 %v6821_v62, %v1894_v15  ;;  %2047 = vadd.xlane.f32.xlu1 %v5659_v21 }
 0x31e   : > { %v5661_v0 = vpop.eup %5660 }
 0x31f   : > { %5666 = vpow2.f32 %v1991_v9  ;;  %v1989_v63 = vmul.f32 1.442695, %v7067_v47  ;;  %2045 = vadd.xlane.f32.xlu0 %v5661_v0 }
 0x321   : > { %5668 = vpow2.f32 %v1989_v63 }
 0x322   : > { %v1900_v35 = vpop.xlane.xlu1 %1899 }
 0x323   : > { %v7071_v56 = vsub.f32 %v6834_v53, %v1900_v35 }
 0x324   : > { %v5663_v19 = vpop.eup %5662  ;;  %v1898_v59 = vpop.xlane.xlu0 %1897 }
 0x325   : > { %v1995_v43 = vmul.f32 1.442695, %v7071_v56  ;;  %v7075_v37 = vsub.f32 %v6842_v52, %v1898_v59  ;;  %2051 = vadd.xlane.f32.xlu1 %v5663_v19 }
 0x326   : > { %v5665_v62 = vpop.eup %5664 }
 0x327   : > { %5670 = vpow2.f32 %v1995_v43  ;;  %v1993_v21 = vmul.f32 1.442695, %v7075_v37  ;;  %2049 = vadd.xlane.f32.xlu0 %v5665_v62 }
 0x329   : > { %5672 = vpow2.f32 %v1993_v21 }
 0x32a   : > { %v1904_v15 = vpop.xlane.xlu1 %1903 }
 0x32b   : > { %v7079_v9 = vsub.f32 %v6855_v45, %v1904_v15 }
 0x32c   : > { %v5667_v53 = vpop.eup %5666  ;;  %v1902_v0 = vpop.xlane.xlu0 %1901 }
 0x32d   : > { %v1999_v63 = vmul.f32 1.442695, %v7079_v9  ;;  %v7083_v35 = vsub.f32 %v6863_v12, %v1902_v0  ;;  %2055 = vadd.xlane.f32.xlu1 %v5667_v53 }
 0x32e   : > { %v5669_v52 = vpop.eup %5668 }
 0x32f   : > { %5674 = vpow2.f32 %v1999_v63  ;;  %v1997_v19 = vmul.f32 1.442695, %v7083_v35  ;;  %2053 = vadd.xlane.f32.xlu0 %v5669_v52 }
 0x331   : > { %5676 = vpow2.f32 %v1997_v19 }
 0x332   : > { %v1908_v59 = vpop.xlane.xlu1 %1907 }
 0x333   : > { %v7087_v43 = vsub.f32 %v6876_v48, %v1908_v59 }
 0x334   : > { %v5671_v45 = vpop.eup %5670  ;;  %v1906_v62 = vpop.xlane.xlu0 %1905 }
 0x335   : > { %v2003_v21 = vmul.f32 1.442695, %v7087_v43  ;;  %v7091_v15 = vsub.f32 %v6884_v55, %v1906_v62  ;;  %2059 = vadd.xlane.f32.xlu1 %v5671_v45 }
 0x336   : > { %v5673_v12 = vpop.eup %5672 }
 0x337   : > { %5678 = vpow2.f32 %v2003_v21  ;;  %v2001_v53 = vmul.f32 1.442695, %v7091_v15  ;;  %2057 = vadd.xlane.f32.xlu0 %v5673_v12 }
 0x339   : > { %5680 = vpow2.f32 %v2001_v53 }
 0x33a   : > { %v1912_v0 = vpop.xlane.xlu1 %1911 }
 0x33b   : > { %v7095_v63 = vsub.f32 %v6897_v44, %v1912_v0 }
 0x33c   : > { %v5675_v48 = vpop.eup %5674  ;;  %v1910_v52 = vpop.xlane.xlu0 %1909 }
 0x33d   : > { %v2007_v19 = vmul.f32 1.442695, %v7095_v63  ;;  %v7099_v59 = vsub.f32 %v6905_v50, %v1910_v52  ;;  %2063 = vadd.xlane.f32.xlu1 %v5675_v48 }
 0x33e   : > { %v5677_v55 = vpop.eup %5676 }
 0x33f   : > { %5682 = vpow2.f32 %v2007_v19  ;;  %v2005_v45 = vmul.f32 1.442695, %v7099_v59  ;;  %2061 = vadd.xlane.f32.xlu0 %v5677_v55 }
 0x341   : > { %5684 = vpow2.f32 %v2005_v45 }
 0x342   : > { %v1916_v62 = vpop.xlane.xlu1 %1915 }
 0x343   : > { %v7103_v21 = vsub.f32 %v6918_v40, %v1916_v62 }
 0x344   : > { %v5679_v44 = vpop.eup %5678  ;;  %v1914_v12 = vpop.xlane.xlu0 %1913 }
 0x345   : > { %v2011_v53 = vmul.f32 1.442695, %v7103_v21  ;;  %v7107_v0 = vsub.f32 %v6926_v46, %v1914_v12  ;;  %2067 = vadd.xlane.f32.xlu1 %v5679_v44 }
 0x346   : > { %v5681_v50 = vpop.eup %5680 }
 0x347   : > { %5686 = vpow2.f32 %v2011_v53  ;;  %v2009_v48 = vmul.f32 1.442695, %v7107_v0  ;;  %2065 = vadd.xlane.f32.xlu0 %v5681_v50 }
 0x349   : > { %5688 = vpow2.f32 %v2009_v48 }
 0x34a   : > { %v1920_v52 = vpop.xlane.xlu1 %1919 }
 0x34b   : > { %v7111_v19 = vsub.f32 %v6939_v36, %v1920_v52 }
 0x34c   : > { %v5683_v40 = vpop.eup %5682  ;;  %v1918_v55 = vpop.xlane.xlu0 %1917 }
 0x34d   : > { %v2015_v45 = vmul.f32 1.442695, %v7111_v19  ;;  %v7115_v62 = vsub.f32 %v6947_v42, %v1918_v55  ;;  %2071 = vadd.xlane.f32.xlu1 %v5683_v40 }
 0x34e   : > { %v5685_v46 = vpop.eup %5684 }
 0x34f   : > { %5690 = vpow2.f32 %v2015_v45  ;;  %v2013_v44 = vmul.f32 1.442695, %v7115_v62  ;;  %2069 = vadd.xlane.f32.xlu0 %v5685_v46 }
 0x351   : > { %5692 = vpow2.f32 %v2013_v44 }
 0x352   : > { %v1924_v12 = vpop.xlane.xlu1 %1923 }
 0x353   : > { %v7119_v53 = vsub.f32 %v6960_v34, %v1924_v12 }
 0x354   : > { %v5687_v36 = vpop.eup %5686  ;;  %v1922_v50 = vpop.xlane.xlu0 %1921 }
 0x355   : > { %v2019_v48 = vmul.f32 1.442695, %v7119_v53  ;;  %v7123_v52 = vsub.f32 %v6968_v38, %v1922_v50  ;;  %2075 = vadd.xlane.f32.xlu1 %v5687_v36 }
 0x356   : > { %v5689_v42 = vpop.eup %5688 }
 0x357   : > { %5694 = vpow2.f32 %v2019_v48  ;;  %v2017_v40 = vmul.f32 1.442695, %v7123_v52  ;;  %2073 = vadd.xlane.f32.xlu0 %v5689_v42 }
 0x359   : > { %5696 = vpow2.f32 %v2017_v40 }
 0x35a   : > { %v1928_v55 = vpop.xlane.xlu1 %1927 }
 0x35b   : > { %v7127_v45 = vsub.f32 %v6981_v33, %v1928_v55 }
 0x35c   : > { %v5691_v34 = vpop.eup %5690  ;;  %v1926_v46 = vpop.xlane.xlu0 %1925 }
 0x35d   : > { %v2023_v44 = vmul.f32 1.442695, %v7127_v45  ;;  %v7131_v12 = vsub.f32 %v6989_v58, %v1926_v46  ;;  %2079 = vadd.xlane.f32.xlu1 %v5691_v34 }
 0x35e   : > { %v5693_v38 = vpop.eup %5692 }
 0x35f   : > { %5698 = vpow2.f32 %v2023_v44  ;;  %v2021_v36 = vmul.f32 1.442695, %v7131_v12  ;;  %2077 = vadd.xlane.f32.xlu0 %v5693_v38 }
 0x361   : > { %5700 = vpow2.f32 %v2021_v36 }
 0x362   : > { %v1932_v50 = vpop.xlane.xlu1 %1931 }
 0x363   : > { %v7135_v48 = vsub.f32 %v7002_v28, %v1932_v50 }
 0x364   : > { %v5695_v33 = vpop.eup %5694  ;;  %v1930_v42 = vpop.xlane.xlu0 %1929 }
 0x365   : > { %v2027_v40 = vmul.f32 1.442695, %v7135_v48  ;;  %v7139_v55 = vsub.f32 %v7010_v16, %v1930_v42  ;;  %2083 = vadd.xlane.f32.xlu1 %v5695_v33  ;;  %v2191_v42 = vstv %s2190_s11 }
 0x366   : > { %v5697_v58 = vpop.eup %5696  ;;  %vm7143_vm1 = vcmp.eq.s32.totalorder %v2191_v42, 1 }
 0x367   : > { %5702 = vpow2.f32 %v2027_v40  ;;  %v2025_v34 = vmul.f32 1.442695, %v7139_v55  ;;  %2081 = vadd.xlane.f32.xlu0 %v5697_v58 }
 0x369   : > { %5704 = vpow2.f32 %v2025_v34 }
 0x36c   : > { %v5699_v46 = vpop.eup %5698 }
 0x36d   : > { %2087 = vadd.xlane.f32.xlu1 %v5699_v46 }
 0x36e   : > { %v5701_v44 = vpop.eup %5700 }
 0x36f   : > { %2085 = vadd.xlane.f32.xlu0 %v5701_v44 }
 0x374   : > { %v5703_v28 = vpop.eup %5702 }
 0x375   : > { %2091 = vadd.xlane.f32.xlu1 %v5703_v28 }
 0x376   : > { %v5705_v38 = vpop.eup %5704 }
 0x377   : > { %2089 = vadd.xlane.f32.xlu0 %v5705_v38 }
 0x386   : > { %v2032_v36 = vpop.xlane.xlu1 %2031 }
 0x387   : > { %5706 = vlog2.f32 %v2032_v36 }
 0x38a   : > { %v2030_v16 = vpop.xlane.xlu0 %2029 }
 0x38b   : > { %5708 = vlog2.f32 %v2030_v16 }
 0x38e   : > { %v2036_v50 = vpop.xlane.xlu1 %2035 }
 0x38f   : > { %5710 = vlog2.f32 %v2036_v50 }
 0x392   : > { %v2034_v33 = vpop.xlane.xlu0 %2033 }
 0x393   : > { %5712 = vlog2.f32 %v2034_v33 }
 0x394   : > { %v5707_v40 = vpop.eup %5706 }
 0x395   : > { %v2096_v58 = vmul.f32 0.6931472, %v5707_v40 }
 0x396   : > { %v2040_v46 = vpop.xlane.xlu1 %2039 }
 0x397   : > { %v2159_v44 = vsub.f32 %v7015_v11, %v2096_v58  ;;  %5714 = vlog2.f32 %v2040_v46 }
 0x398   : > { %v5709_v28 = vpop.eup %5708  ;;  %v2038_v38 = vpop.xlane.xlu0 %2037 }
 0x399   : > { %v2194_v36 = vsel %vm7143_vm1, %v2159_v44, %v6676_v17  ;;  %v2094_v16 = vmul.f32 0.6931472, %v5709_v28  ;;  %5716 = vlog2.f32 %v2038_v38 }
 0x39a   : > { %2227 = vst [vmem:[%s7152_s14 + $0x8] sm:$0xff] %v2194_v36 }
 0x39b   : > { %v2158_v50 = vsub.f32 %v7019_v24, %v2094_v16 }
 0x39c   : > { %v5711_v33 = vpop.eup %5710 }
 0x39d   : > { %v2193_v11 = vsel %vm7143_vm1, %v2158_v50, %v6680_v25  ;;  %v2100_v42 = vmul.f32 0.6931472, %v5711_v33 }
 0x39e   : > { %2226 = vst [vmem:[%s7152_s14] sm:$0xff] %v2193_v11  ;;  %v2044_v40 = vpop.xlane.xlu1 %2043 }
 0x39f   : > { %v2161_v17 = vsub.f32 %v7023_v41, %v2100_v42  ;;  %5718 = vlog2.f32 %v2044_v40 }
 0x3a0   : > { %v5713_v58 = vpop.eup %5712  ;;  %v2042_v46 = vpop.xlane.xlu0 %2041 }
 0x3a1   : > { %v2196_v44 = vsel %vm7143_vm1, %v2161_v17, %v6700_v8  ;;  %v2098_v28 = vmul.f32 0.6931472, %v5713_v58  ;;  %5720 = vlog2.f32 %v2042_v46 }
 0x3a2   : > { %2229 = vst [vmem:[%s7152_s14 + $0x18] sm:$0xff] %v2196_v44 }
 0x3a3   : > { %v2160_v24 = vsub.f32 %v7027_v2, %v2098_v28 }
 0x3a4   : > { %v5715_v25 = vpop.eup %5714 }
 0x3a5   : > { %v2195_v38 = vsel %vm7143_vm1, %v2160_v24, %v6703_v31  ;;  %v2104_v41 = vmul.f32 0.6931472, %v5715_v25 }
 0x3a6   : > { %v5717_v36 = vpop.eup %5716  ;;  %2228 = vst [vmem:[%s7152_s14 + $0x10] sm:$0xff] %v2195_v38  ;;  %v2048_v16 = vpop.xlane.xlu1 %2047 }
 0x3a7   : > { %v2163_v50 = vsub.f32 %v7031_v3, %v2104_v41  ;;  %v2102_v33 = vmul.f32 0.6931472, %v5717_v36  ;;  %5722 = vlog2.f32 %v2048_v16 }
 0x3a8   : > { %v2046_v8 = vpop.xlane.xlu0 %2045 }
 0x3a9   : > { %v2198_v11 = vsel %vm7143_vm1, %v2163_v50, %v6721_v5  ;;  %v2162_v2 = vsub.f32 %v7035_v54, %v2102_v33  ;;  %5724 = vlog2.f32 %v2046_v8 }
 0x3aa   : > { %2231 = vst [vmem:[%s7152_s14 + $0x28] sm:$0xff] %v2198_v11 }
 0x3ab   : > { %v2197_v31 = vsel %vm7143_vm1, %v2162_v2, %v6724_v61 }
 0x3ac   : > { %v5719_v42 = vpop.eup %5718  ;;  %2230 = vst [vmem:[%s7152_s14 + $0x20] sm:$0xff] %v2197_v31 }
 0x3ad   : > { %v2108_v3 = vmul.f32 0.6931472, %v5719_v42 }
 0x3ae   : > { %v5721_v40 = vpop.eup %5720  ;;  %v2052_v17 = vpop.xlane.xlu1 %2051 }
 0x3af   : > { %v2165_v58 = vsub.f32 %v7039_v26, %v2108_v3  ;;  %v2106_v46 = vmul.f32 0.6931472, %v5721_v40  ;;  %5726 = vlog2.f32 %v2052_v17 }
 0x3b0   : > { %v2050_v5 = vpop.xlane.xlu0 %2049 }
 0x3b1   : > { %v2200_v54 = vsel %vm7143_vm1, %v2165_v58, %v6742_v60  ;;  %v2164_v44 = vsub.f32 %v7043_v39, %v2106_v46  ;;  %5728 = vlog2.f32 %v2050_v5 }
 0x3b2   : > { %2233 = vst [vmem:[%s7152_s14 + $0x38] sm:$0xff] %v2200_v54 }
 0x3b3   : > { %v2199_v61 = vsel %vm7143_vm1, %v2164_v44, %v6745_v7 }
 0x3b4   : > { %v5723_v28 = vpop.eup %5722  ;;  %2232 = vst [vmem:[%s7152_s14 + $0x30] sm:$0xff] %v2199_v61 }
 0x3b5   : > { %v2112_v26 = vmul.f32 0.6931472, %v5723_v28 }
 0x3b6   : > { %v5725_v24 = vpop.eup %5724  ;;  %v2056_v25 = vpop.xlane.xlu1 %2055 }
 0x3b7   : > { %v2167_v38 = vsub.f32 %v7047_v22, %v2112_v26  ;;  %v2110_v41 = vmul.f32 0.6931472, %v5725_v24  ;;  %5730 = vlog2.f32 %v2056_v25 }
 0x3b8   : > { %v2054_v60 = vpop.xlane.xlu0 %2053 }
 0x3b9   : > { %v2202_v39 = vsel %vm7143_vm1, %v2167_v38, %v6763_v29  ;;  %v2166_v36 = vsub.f32 %v7051_v27, %v2110_v41  ;;  %5732 = vlog2.f32 %v2054_v60 }
 0x3ba   : > { %2235 = vst [vmem:[%s7152_s14 + $0x48] sm:$0xff] %v2202_v39 }
 0x3bb   : > { %v2201_v7 = vsel %vm7143_vm1, %v2166_v36, %v6766_v51 }
 0x3bc   : > { %v5727_v16 = vpop.eup %5726  ;;  %2234 = vst [vmem:[%s7152_s14 + $0x40] sm:$0xff] %v2201_v7 }
 0x3bd   : > { %v2116_v22 = vmul.f32 0.6931472, %v5727_v16 }
 0x3be   : > { %v5729_v50 = vpop.eup %5728  ;;  %v2060_v33 = vpop.xlane.xlu1 %2059 }
 0x3bf   : > { %v2169_v8 = vsub.f32 %v7055_v20, %v2116_v22  ;;  %v2114_v11 = vmul.f32 0.6931472, %v5729_v50  ;;  %5734 = vlog2.f32 %v2060_v33 }
 0x3c0   : > { %v2058_v29 = vpop.xlane.xlu0 %2057 }
 0x3c1   : > { %v2204_v27 = vsel %vm7143_vm1, %v2169_v8, %v6784_v4  ;;  %v2168_v2 = vsub.f32 %v7059_v18, %v2114_v11  ;;  %5736 = vlog2.f32 %v2058_v29 }
 0x3c2   : > { %2237 = vst [vmem:[%s7152_s14 + $0x58] sm:$0xff] %v2204_v27 }
 0x3c3   : > { %v2203_v51 = vsel %vm7143_vm1, %v2168_v2, %v6787_v6  ;;  %v8410_v2 = vld [vmem:[#allocation79_spill] sm:$0xff] }
 0x3c4   : > { %v5731_v31 = vpop.eup %5730  ;;  %2236 = vst [vmem:[%s7152_s14 + $0x50] sm:$0xff] %v2203_v51 }
 0x3c5   : > { %v2120_v20 = vmul.f32 0.6931472, %v5731_v31 }
 0x3c6   : > { %v5733_v42 = vpop.eup %5732  ;;  %v2064_v3 = vpop.xlane.xlu1 %2063 }
 0x3c7   : > { %v2171_v40 = vsub.f32 %v7063_v30, %v2120_v20  ;;  %v2118_v17 = vmul.f32 0.6931472, %v5733_v42  ;;  %5738 = vlog2.f32 %v2064_v3 }
 0x3c8   : > { %v2062_v4 = vpop.xlane.xlu0 %2061 }
 0x3c9   : > { %v2206_v18 = vsel %vm7143_vm1, %v2171_v40, %v6805_v49  ;;  %v2170_v58 = vsub.f32 %v7067_v47, %v2118_v17  ;;  %5740 = vlog2.f32 %v2062_v4 }
 0x3ca   : > { %2239 = vst [vmem:[%s7152_s14 + $0x68] sm:$0xff] %v2206_v18  ;;  %v8412_v18 = vld [vmem:[#allocation81_spill] sm:$0xff] }
 0x3cb   : > { %v2205_v6 = vsel %vm7143_vm1, %v2170_v58, %v6808_v23 }
 0x3cc   : > { %v5735_v46 = vpop.eup %5734  ;;  %2238 = vst [vmem:[%s7152_s14 + $0x60] sm:$0xff] %v2205_v6  ;;  %v8413_v6 = vld [vmem:[#allocation82_spill] sm:$0xff] }
 0x3cd   : > { %v2124_v30 = vmul.f32 0.6931472, %v5735_v46 }
 0x3ce   : > { %v5737_v5 = vpop.eup %5736  ;;  %v2068_v54 = vpop.xlane.xlu1 %2067 }
 0x3cf   : > { %v2173_v44 = vsub.f32 %v7071_v56, %v2124_v30  ;;  %v2122_v61 = vmul.f32 0.6931472, %v5737_v5  ;;  %5742 = vlog2.f32 %v2068_v54 }
 0x3d0   : > { %v2066_v49 = vpop.xlane.xlu0 %2065 }
 0x3d1   : > { %v2208_v47 = vsel %vm7143_vm1, %v2173_v44, %v6826_v13  ;;  %v2172_v28 = vsub.f32 %v7075_v37, %v2122_v61  ;;  %5744 = vlog2.f32 %v2066_v49 }
 0x3d2   : > { %2241 = vst [vmem:[%s7152_s14 + $0x78] sm:$0xff] %v2208_v47  ;;  %v8414_v47 = vld [vmem:[#allocation83_spill] sm:$0xff] }
 0x3d3   : > { %v2207_v23 = vsel %vm7143_vm1, %v2172_v28, %v6829_v14 }
 0x3d4   : > { %v5739_v26 = vpop.eup %5738  ;;  %2240 = vst [vmem:[%s7152_s14 + $0x70] sm:$0xff] %v2207_v23  ;;  %v8415_v23 = vld [vmem:[#allocation84_spill] sm:$0xff] }
 0x3d5   : > { %v2128_v56 = vmul.f32 0.6931472, %v5739_v26 }
 0x3d6   : > { %v5741_v24 = vpop.eup %5740  ;;  %v2072_v25 = vpop.xlane.xlu1 %2071 }
 0x3d7   : > { %v2175_v38 = vsub.f32 %v7079_v9, %v2128_v56  ;;  %v2126_v41 = vmul.f32 0.6931472, %v5741_v24  ;;  %5746 = vlog2.f32 %v2072_v25 }
 0x3d8   : > { %v2070_v13 = vpop.xlane.xlu0 %2069 }
 0x3d9   : > { %v2210_v37 = vsel %vm7143_vm1, %v2175_v38, %v6847_v32  ;;  %v2174_v60 = vsub.f32 %v7083_v35, %v2126_v41  ;;  %5748 = vlog2.f32 %v2070_v13 }
 0x3da   : > { %2243 = vst [vmem:[%s7152_s14 + $0x88] sm:$0xff] %v2210_v37 }
 0x3db   : > { %v2209_v14 = vsel %vm7143_vm1, %v2174_v60, %v6850_v57 }
 0x3dc   : > { %v5743_v39 = vpop.eup %5742  ;;  %2242 = vst [vmem:[%s7152_s14 + $0x80] sm:$0xff] %v2209_v14  ;;  %v8417_v14 = vld [vmem:[#allocation86_spill] sm:$0xff] }
 0x3dd   : > { %v2132_v9 = vmul.f32 0.6931472, %v5743_v39 }
 0x3de   : > { %v5745_v36 = vpop.eup %5744  ;;  %v2076_v7 = vpop.xlane.xlu1 %2075 }
 0x3df   : > { %v2177_v16 = vsub.f32 %v7087_v43, %v2132_v9  ;;  %v2130_v22 = vmul.f32 0.6931472, %v5745_v36  ;;  %5750 = vlog2.f32 %v2076_v7 }
 0x3e0   : > { %v2074_v32 = vpop.xlane.xlu0 %2073 }
 0x3e1   : > { %v2212_v35 = vsel %vm7143_vm1, %v2177_v16, %v6868_v1  ;;  %v2176_v50 = vsub.f32 %v7091_v15, %v2130_v22  ;;  %5752 = vlog2.f32 %v2074_v32  ;;  %v8418_v22 = vld [vmem:[#allocation87_spill] sm:$0xff] }
 0x3e2   : > { %2245 = vst [vmem:[%s7152_s14 + $0x98] sm:$0xff] %v2212_v35  ;;  %v8419_v35 = vld [vmem:[#allocation88_spill] sm:$0xff] }
 0x3e3   : > { %v2211_v57 = vsel %vm7143_vm1, %v2176_v50, %v6871_v10  ;;  %v8411_v10 = vld [vmem:[#allocation80_spill] sm:$0xff] }
 0x3e4   : > { %v5747_v33 = vpop.eup %5746  ;;  %2244 = vst [vmem:[%s7152_s14 + $0x90] sm:$0xff] %v2211_v57 }
 0x3e5   : > { %v2136_v43 = vmul.f32 0.6931472, %v5747_v33 }
 0x3e6   : > { %v5749_v8 = vpop.eup %5748  ;;  %v2080_v11 = vpop.xlane.xlu1 %2079 }
 0x3e7   : > { %v2179_v29 = vsub.f32 %v7095_v63, %v2136_v43  ;;  %v2134_v27 = vmul.f32 0.6931472, %v5749_v8  ;;  %5754 = vlog2.f32 %v2080_v11  ;;  %v8420_v11 = vld [vmem:[#allocation89_spill] sm:$0xff] }
 0x3e8   : > { %v2078_v1 = vpop.xlane.xlu0 %2077 }
 0x3e9   : > { %v2214_v15 = vsel %vm7143_vm1, %v2179_v29, %v8410_v2  ;;  %v2178_v51 = vsub.f32 %v7099_v59, %v2134_v27  ;;  %5756 = vlog2.f32 %v2078_v1 }
 0x3ea   : > { %2247 = vst [vmem:[%s7152_s14 + $0xa8] sm:$0xff] %v2214_v15 }
 0x3eb   : > { %v2213_v31 = vsel %vm7143_vm1, %v2178_v51, %v8411_v10 }
 0x3ec   : > { %v5751_v20 = vpop.eup %5750  ;;  %2246 = vst [vmem:[%s7152_s14 + $0xa0] sm:$0xff] %v2213_v31 }
 0x3ed   : > { %v2140_v63 = vmul.f32 0.6931472, %v5751_v20 }
 0x3ee   : > { %v5753_v42 = vpop.eup %5752  ;;  %v2084_v3 = vpop.xlane.xlu1 %2083 }
 0x3ef   : > { %v2181_v40 = vsub.f32 %v7103_v21, %v2140_v63  ;;  %v2138_v17 = vmul.f32 0.6931472, %v5753_v42  ;;  %5758 = vlog2.f32 %v2084_v3 }
 0x3f0   : > { %v2082_v4 = vpop.xlane.xlu0 %2081 }
 0x3f1   : > { %v2216_v59 = vsel %vm7143_vm1, %v2181_v40, %v8412_v18  ;;  %v2180_v58 = vsub.f32 %v7107_v0, %v2138_v17  ;;  %5760 = vlog2.f32 %v2082_v4 }
 0x3f2   : > { %2249 = vst [vmem:[%s7152_s14 + $0xb8] sm:$0xff] %v2216_v59 }
 0x3f3   : > { %v2215_v46 = vsel %vm7143_vm1, %v2180_v58, %v8413_v6 }
 0x3f4   : > { %v5755_v30 = vpop.eup %5754  ;;  %2248 = vst [vmem:[%s7152_s14 + $0xb0] sm:$0xff] %v2215_v46 }
 0x3f5   : > { %v2144_v21 = vmul.f32 0.6931472, %v5755_v30 }
 0x3f6   : > { %v5757_v5 = vpop.eup %5756  ;;  %v2088_v54 = vpop.xlane.xlu1 %2087 }
 0x3f7   : > { %v2183_v44 = vsub.f32 %v7111_v19, %v2144_v21  ;;  %v2142_v61 = vmul.f32 0.6931472, %v5757_v5  ;;  %5762 = vlog2.f32 %v2088_v54 }
 0x3f8   : > { %v2086_v49 = vpop.xlane.xlu0 %2085 }
 0x3f9   : > { %v2218_v0 = vsel %vm7143_vm1, %v2183_v44, %v8414_v47  ;;  %v2182_v28 = vsub.f32 %v7115_v62, %v2142_v61  ;;  %5764 = vlog2.f32 %v2086_v49  ;;  %v8416_v62 = vld [vmem:[#allocation85_spill] sm:$0xff] }
 0x3fa   : > { %2251 = vst [vmem:[%s7152_s14 + $0xc8] sm:$0xff] %v2218_v0 }
 0x3fb   : > { %v2217_v26 = vsel %vm7143_vm1, %v2182_v28, %v8415_v23 }
 0x3fc   : > { %v5759_v56 = vpop.eup %5758  ;;  %2250 = vst [vmem:[%s7152_s14 + $0xc0] sm:$0xff] %v2217_v26 }
 0x3fd   : > { %v2148_v19 = vmul.f32 0.6931472, %v5759_v56 }
 0x3fe   : > { %v5761_v24 = vpop.eup %5760  ;;  %v2092_v25 = vpop.xlane.xlu1 %2091 }
 0x3ff   : > { %v2185_v38 = vsub.f32 %v7119_v53, %v2148_v19  ;;  %v2146_v41 = vmul.f32 0.6931472, %v5761_v24  ;;  %5766 = vlog2.f32 %v2092_v25 }
 0x400   : > { %v2090_v13 = vpop.xlane.xlu0 %2089 }
 0x401   : > { %v2220_v37 = vsel %vm7143_vm1, %v2185_v38, %v8416_v62  ;;  %v2184_v60 = vsub.f32 %v7123_v52, %v2146_v41  ;;  %5768 = vlog2.f32 %v2090_v13 }
 0x402   : > { %2253 = vst [vmem:[%s7152_s14 + $0xd8] sm:$0xff] %v2220_v37 }
 0x403   : > { %v2219_v39 = vsel %vm7143_vm1, %v2184_v60, %v8417_v14 }
 0x404   : > { %v5763_v9 = vpop.eup %5762  ;;  %2252 = vst [vmem:[%s7152_s14 + $0xd0] sm:$0xff] %v2219_v39 }
 0x405   : > { %v2152_v53 = vmul.f32 0.6931472, %v5763_v9 }
 0x406   : > { %v5765_v36 = vpop.eup %5764 }
 0x407   : > { %v2187_v7 = vsub.f32 %v7127_v45, %v2152_v53  ;;  %v2150_v16 = vmul.f32 0.6931472, %v5765_v36 }
 0x409   : > { %v2222_v32 = vsel %vm7143_vm1, %v2187_v7, %v8418_v22  ;;  %v2186_v52 = vsub.f32 %v7131_v12, %v2150_v16  ;;  %v8421_v12 = vld [vmem:[#allocation90_spill] sm:$0xff] }
 0x40a   : > { %2255 = vst [vmem:[%s7152_s14 + $0xe8] sm:$0xff] %v2222_v32 }
 0x40b   : > { %v2221_v50 = vsel %vm7143_vm1, %v2186_v52, %v8419_v35 }
 0x40c   : > { %v5767_v57 = vpop.eup %5766  ;;  %2254 = vst [vmem:[%s7152_s14 + $0xe0] sm:$0xff] %v2221_v50 }
 0x40d   : > { %v2156_v33 = vmul.f32 0.6931472, %v5767_v57 }
 0x40e   : > { %v5769_v43 = vpop.eup %5768 }
 0x40f   : > { %v2189_v8 = vsub.f32 %v7135_v48, %v2156_v33  ;;  %v2154_v45 = vmul.f32 0.6931472, %v5769_v43 }
 0x411   : > { %v2224_v29 = vsel %vm7143_vm1, %v2189_v8, %v8420_v11  ;;  %v2188_v27 = vsub.f32 %v7139_v55, %v2154_v45 }
 0x412   : > { %2257 = vst [vmem:[%s7152_s14 + $0xf8] sm:$0xff] %v2224_v29 }
 0x413   : > { %v2223_v1 = vsel %vm7143_vm1, %v2188_v27, %v8421_v12 }
 0x414   : > { %2256 = vst [vmem:[%s7152_s14 + $0xf0] sm:$0xff] %v2223_v1 }
 0x415 PF: > { %p4300_p5 = scmp.ne.s32.totalorder %s8528_s12, 1 }
 0x417   : > { %2261 = sbr.rel (%p4300_p5) target bundleno = 1954 (0x7a2), region = 60 }
 0x41c   : > { %v5770_v2 = vld [vmem:[#allocation3 + $0x78] sm:$0xff]   ;;  %v8422_v15 = vld [vmem:[#allocation65_spill] sm:$0xff]  ;;  %v8423_v48 = vld [vmem:[#allocation63_spill] sm:$0xff]  ;;  %p3941_p2 = scmp.eq.s32.totalorder %s6100_s19, 2  ;;  %s7954_s19 = scalar_lea.vmem [#allocation10], %s6301_s24 }
 0x41d   : > { %v4350_v51 = vcombine.high %v8423_v48, %v8422_v15  ;;  %v5771_v10 = vld [vmem:[#allocation3 + $0x38] sm:$0xff]   ;;  %5489 = vmatprep.subr.bf16.mxu1 %v5770_v2  ;;  %v5772_v31 = vld [vmem:[#allocation3 + $0x70] sm:$0xff]   ;;  %v8425_v55 = vld [vmem:[#allocation15_spill] sm:$0xff]  ;;  %5041 = vmatprep.subr.bf16.mxu0 %v5770_v2  ;;  %v4349_v54 = vcombine.low %v8423_v48, %v8422_v15 }
 0x41e   : > { %v8424_v20 = vld [vmem:[#allocation17_spill] sm:$0xff]  ;;  %5497 = vmatpush3.bf16.msra.mxu1 %v5771_v10  ;;  %v5774_v34 = vld [vmem:[#allocation3 + $0x68] sm:$0xff]   ;;  %5042 = vmatpush3.bf16.msra.mxu0 %v5771_v10  ;;  %v5776_v40 = vld [vmem:[#allocation3 + $0x60] sm:$0xff]  }
 0x41f   : > { %2966 = vmatprep.mubr.bf16.mxu1 %v4350_v51  ;;  %v4302_v63 = vcombine.high %v8425_v55, %v8424_v20  ;;  %v5773_v42 = vld [vmem:[#allocation3 + $0x30] sm:$0xff]   ;;  %5490 = vmatprep.subr.bf16.mxu1 %v5772_v31  ;;  %v5775_v3 = vld [vmem:[#allocation3 + $0x28] sm:$0xff]   ;;  %v5777_v17 = vld [vmem:[#allocation3 + $0x20] sm:$0xff]   ;;  %v4301_v28 = vcombine.low %v8425_v55, %v8424_v20 }
 0x420   : > { %5043 = vmatprep.subr.bf16.mxu0 %v5772_v31  ;;  %v5778_v4 = vld [vmem:[#allocation3 + $0x58] sm:$0xff]   ;;  %v5780_v59 = vld [vmem:[#allocation3 + $0x50] sm:$0xff]   ;;  %v5782_v6 = vld [vmem:[#allocation3 + $0x48] sm:$0xff]  }
 0x421   : > { %2870 = vmatprep.mubr.bf16.mxu0 %v4302_v63  ;;  %v5779_v18 = vld [vmem:[#allocation3 + $0x18] sm:$0xff]   ;;  %v5781_v58 = vld [vmem:[#allocation3 + $0x10] sm:$0xff]   ;;  %v5783_v46 = vld [vmem:[#allocation3 + $0x8] sm:$0xff]  }
 0x422   : > { %5498 = vmatpush3.bf16.msra.mxu1 %v5773_v42  ;;  %5044 = vmatpush3.bf16.msra.mxu0 %v5773_v42  ;;  %v5784_v30 = vld [vmem:[#allocation3 + $0x40] sm:$0xff]   ;;  %v5786_v5 = vld [vmem:[#allocation3 + $0xf8] sm:$0xff]   ;;  %v8426_v61 = vld [vmem:[#allocation69_spill] sm:$0xff] }
 0x423   : > { %5491 = vmatprep.subr.bf16.mxu1 %v5774_v34  ;;  %5045 = vmatprep.subr.bf16.mxu0 %v5774_v34  ;;  %v5785_v21 = vld [vmem:[#allocation3] sm:$0xff]   ;;  %v5787_v44 = vld [vmem:[#allocation3 + $0xb8] sm:$0xff]   ;;  %v5788_v0 = vld [vmem:[#allocation3 + $0xf0] sm:$0xff]  }
 0x424   : > { %v8427_v49 = vld [vmem:[#allocation67_spill] sm:$0xff]  ;;  %v8428_v23 = vld [vmem:[#allocation21_spill] sm:$0xff]  ;;  %v5790_v24 = vld [vmem:[#allocation3 + $0xe8] sm:$0xff]  }
 0x425   : > { %v4354_v47 = vcombine.high %v8427_v49, %v8426_v61  ;;  %v8429_v26 = vld [vmem:[#allocation19_spill] sm:$0xff]  ;;  %v5789_v19 = vld [vmem:[#allocation3 + $0xb0] sm:$0xff]   ;;  %v4353_v25 = vcombine.low %v8427_v49, %v8426_v61  ;;  %v5791_v38 = vld [vmem:[#allocation3 + $0xa8] sm:$0xff]  }
 0x426   : > { %5499 = vmatpush3.bf16.msra.mxu1 %v5775_v3  ;;  %5046 = vmatpush3.bf16.msra.mxu0 %v5775_v3  ;;  %v4306_v56 = vcombine.high %v8429_v26, %v8428_v23  ;;  %v8430_v41 = vld [vmem:[#allocation73_spill] sm:$0xff]  ;;  %v8431_v13 = vld [vmem:[#allocation71_spill] sm:$0xff]  ;;  %v4305_v60 = vcombine.low %v8429_v26, %v8428_v23  ;;  %v5794_v36 = vld [vmem:[#allocation3 + $0xd8] sm:$0xff]  }
 0x427   : > { %5492 = vmatprep.subr.bf16.mxu1 %v5776_v40  ;;  %5047 = vmatprep.subr.bf16.mxu0 %v5776_v40  ;;  %v4358_v62 = vcombine.high %v8431_v13, %v8430_v41  ;;  %v5792_v37 = vld [vmem:[#allocation3 + $0xe0] sm:$0xff]   ;;  %v8432_v14 = vld [vmem:[#allocation25_spill] sm:$0xff]  ;;  %v4357_v7 = vcombine.low %v8431_v13, %v8430_v41  ;;  %v5795_v16 = vld [vmem:[#allocation3 + $0x98] sm:$0xff]  }
 0x428   : > { %v8433_v39 = vld [vmem:[#allocation23_spill] sm:$0xff]  ;;  %v8434_v22 = vld [vmem:[#allocation77_spill] sm:$0xff]  ;;  %v5798_v45 = vld [vmem:[#allocation3 + $0xc8] sm:$0xff]  }
 0x429   : > { %v4310_v9 = vcombine.high %v8433_v39, %v8432_v14  ;;  %v5793_v53 = vld [vmem:[#allocation3 + $0xa0] sm:$0xff]   ;;  %v5796_v35 = vld [vmem:[#allocation3 + $0xd0] sm:$0xff]   ;;  %v4309_v50 = vcombine.low %v8433_v39, %v8432_v14  ;;  %v5799_v29 = vld [vmem:[#allocation3 + $0x88] sm:$0xff]  }
 0x42a   : > { %5500 = vmatpush3.bf16.msra.mxu1 %v5777_v17  ;;  %5048 = vmatpush3.bf16.msra.mxu0 %v5777_v17  ;;  %v8435_v32 = vld [vmem:[#allocation75_spill] sm:$0xff]  ;;  %v8436_v57 = vld [vmem:[#allocation29_spill] sm:$0xff]  ;;  %v8438_v27 = vld [vmem:[#allocation18_spill] sm:$0xff] }
 0x42b   : > { %5493 = vmatprep.subr.bf16.mxu1 %v5778_v4  ;;  %5049 = vmatprep.subr.bf16.mxu0 %v5778_v4  ;;  %v4362_v52 = vcombine.high %v8435_v32, %v8434_v22  ;;  %v8437_v33 = vld [vmem:[#allocation27_spill] sm:$0xff]  ;;  %v5797_v8 = vld [vmem:[#allocation3 + $0x90] sm:$0xff]   ;;  %v4361_v11 = vcombine.low %v8435_v32, %v8434_v22  ;;  %v8439_v12 = vld [vmem:[#allocation16_spill] sm:$0xff] }
 0x42c   : > { %v4314_v43 = vcombine.high %v8437_v33, %v8436_v57  ;;  %v4304_v1 = vcombine.high %v8439_v12, %v8438_v27  ;;  %v5800_v2 = vld [vmem:[#allocation3 + $0xc0] sm:$0xff]   ;;  %v4313_v15 = vcombine.low %v8437_v33, %v8436_v57  ;;  %v8440_v48 = vld [vmem:[#allocation33_spill] sm:$0xff]  ;;  %v4303_v20 = vcombine.low %v8439_v12, %v8438_v27  ;;  %v8442_v55 = vld [vmem:[#allocation22_spill] sm:$0xff] }
 0x42d   : > { %v8441_v51 = vld [vmem:[#allocation31_spill] sm:$0xff]  ;;  %v8443_v63 = vld [vmem:[#allocation20_spill] sm:$0xff]  ;;  %v8444_v3 = vld [vmem:[#allocation37_spill] sm:$0xff] }
 0x42e   : > { %5501 = vmatpush3.bf16.msra.mxu1 %v5779_v18  ;;  %5050 = vmatpush3.bf16.msra.mxu0 %v5779_v18  ;;  %v4318_v10 = vcombine.high %v8441_v51, %v8440_v48  ;;  %v5801_v31 = vld [vmem:[#allocation3 + $0x80] sm:$0xff]   ;;  %v4308_v42 = vcombine.high %v8443_v63, %v8442_v55  ;;  %v4317_v34 = vcombine.low %v8441_v51, %v8440_v48  ;;  %v8446_v18 = vld [vmem:[#allocation26_spill] sm:$0xff]  ;;  %v8460_v39 = vld [vmem:[#allocation53_spill] sm:$0xff] }
 0x42f   : > { %5494 = vmatprep.subr.bf16.mxu1 %v5780_v59  ;;  %5051 = vmatprep.subr.bf16.mxu0 %v5780_v59  ;;  %v8445_v40 = vld [vmem:[#allocation35_spill] sm:$0xff]  ;;  %v4307_v4 = vcombine.low %v8443_v63, %v8442_v55  ;;  %v8447_v59 = vld [vmem:[#allocation24_spill] sm:$0xff]  ;;  %v8454_v26 = vld [vmem:[#allocation34_spill] sm:$0xff] }
 0x430   : > { %v4322_v17 = vcombine.high %v8445_v40, %v8444_v3  ;;  %v8463_v22 = vld [vmem:[#allocation40_spill] sm:$0xff]  ;;  %v8465_v57 = vld [vmem:[#allocation55_spill] sm:$0xff] }
 0x431   : > { %v4750_v63 = vld [vmem:[%s6285_s9 + $0x20] sm:$0xff]  }
 0x432   : > { %5502 = vmatpush3.bf16.msra.mxu1 %v5781_v58  ;;  %5052 = vmatpush3.bf16.msra.mxu0 %v5781_v58  ;;  %v4312_v58 = vcombine.high %v8447_v59, %v8446_v18 }
 0x433   : > { %5495 = vmatprep.subr.bf16.mxu1 %v5782_v6  ;;  %5053 = vmatprep.subr.bf16.mxu0 %v5782_v6  ;;  %v4321_v6 = vcombine.low %v8445_v40, %v8444_v3  ;;  %v4632_v40 = vunpack.c.h.bf16 %v4750_v63 }
 0x436   : > { %5503 = vmatpush3.bf16.msra.mxu1 %v5783_v46  ;;  %5054 = vmatpush3.bf16.msra.mxu0 %v5783_v46  ;;  %v8448_v46 = vld [vmem:[#allocation41_spill] sm:$0xff] }
 0x437   : > { %5496 = vmatprep.subr.bf16.mxu1 %v5784_v30  ;;  %5055 = vmatprep.subr.bf16.mxu0 %v5784_v30  ;;  %v8449_v30 = vld [vmem:[#allocation39_spill] sm:$0xff] }
 0x438   : > { %v4325_v49 = vcombine.low %v8449_v30, %v8448_v46 }
 0x43a   : > { %5504 = vmatpush3.bf16.msra.mxu1 %v5785_v21  ;;  %5056 = vmatpush3.bf16.msra.mxu0 %v5785_v21  ;;  %v4326_v21 = vcombine.high %v8449_v30, %v8448_v46  ;;  %v4748_v46 = vld [vmem:[%s6285_s9 + $0x10] sm:$0xff]   ;;  %v8472_v30 = vld [vmem:[#allocation54_spill] sm:$0xff] }
 0x43b   : > { %5153 = vmatprep.subr.bf16.mxu1 %v5786_v5  ;;  %v4311_v5 = vcombine.low %v8447_v59, %v8446_v18  ;;  %v4749_v18 = vld [vmem:[%s6285_s9 + $0x18] sm:$0xff]  }
 0x43c   : > { %v4628_v59 = vunpack.c.h.bf16 %v4749_v18 }
 0x43d   : > { %2967 = vmatmul.mubr.bf16.vlgmr.msra.gmra.mxu1 %v4349_v54  ;;  %2871 = vmatmul.mubr.bf16.vlgmr.msra.gmra.mxu0 %v4301_v28  ;;  %v8450_v54 = vld [vmem:[#allocation30_spill] sm:$0xff] }
 0x43e   : > { %5154 = vmatpush3.bf16.msra.mxu1 %v5787_v44  ;;  %2974 = vmatprep.mubr.bf16.mxu1 %v4354_v47  ;;  %v8451_v44 = vld [vmem:[#allocation28_spill] sm:$0xff]  ;;  %v8452_v47 = vld [vmem:[#allocation45_spill] sm:$0xff] }
 0x43f   : > { %5155 = vmatprep.subr.bf16.mxu1 %v5788_v0  ;;  %2878 = vmatprep.mubr.bf16.mxu0 %v4306_v56  ;;  %v4316_v61 = vcombine.high %v8451_v44, %v8450_v54  ;;  %v8453_v0 = vld [vmem:[#allocation43_spill] sm:$0xff]  ;;  %v4315_v23 = vcombine.low %v8451_v44, %v8450_v54  ;;  %v8455_v56 = vld [vmem:[#allocation32_spill] sm:$0xff]  ;;  %v4624_v54 = vunpack.c.h.bf16 %v4748_v46  ;;  %v4623_v44 = vunpack.c.l.bf16 %v4748_v46 }
 0x440   : > { %v4330_v28 = vcombine.high %v8453_v0, %v8452_v47  ;;  %v4319_v13 = vcombine.low %v8455_v56, %v8454_v26 }
 0x442   : > { %5156 = vmatpush3.bf16.msra.mxu1 %v5789_v19  ;;  %v4320_v19 = vcombine.high %v8455_v56, %v8454_v26  ;;  %v8475_v26 = vld [vmem:[#allocation56_spill] sm:$0xff] }
 0x443   : > { %5157 = vmatprep.subr.bf16.mxu1 %v5790_v24  ;;  %v4329_v24 = vcombine.low %v8453_v0, %v8452_v47 }
 0x445   : > { %2975 = vmatmul.mubr.bf16.gmra.mxu1 %v4353_v25  ;;  %2879 = vmatmul.mubr.bf16.gmra.mxu0 %v4305_v60  ;;  %v8456_v25 = vld [vmem:[#allocation49_spill] sm:$0xff] }
 0x446   : > { %5158 = vmatpush3.bf16.msra.mxu1 %v5791_v38  ;;  %2982 = vmatprep.mubr.bf16.mxu1 %v4358_v62  ;;  %v8457_v38 = vld [vmem:[#allocation47_spill] sm:$0xff]  ;;  %v8458_v62 = vld [vmem:[#allocation38_spill] sm:$0xff] }
 0x447   : > { %5159 = vmatprep.subr.bf16.mxu1 %v5792_v37  ;;  %2886 = vmatprep.mubr.bf16.mxu0 %v4310_v9  ;;  %v4334_v41 = vcombine.high %v8457_v38, %v8456_v25  ;;  %v8459_v37 = vld [vmem:[#allocation36_spill] sm:$0xff]  ;;  %v4333_v14 = vcombine.low %v8457_v38, %v8456_v25  ;;  %v8461_v9 = vld [vmem:[#allocation51_spill] sm:$0xff]  ;;  %v8476_v38 = vld [vmem:[#allocation62_spill] sm:$0xff] }
 0x448   : > { %v4324_v60 = vcombine.high %v8459_v37, %v8458_v62 }
 0x44a   : > { %5160 = vmatpush3.bf16.msra.mxu1 %v5793_v53  ;;  %v4338_v53 = vcombine.high %v8461_v9, %v8460_v39 }
 0x44b   : > { %5161 = vmatprep.subr.bf16.mxu1 %v5794_v36  ;;  %v4323_v36 = vcombine.low %v8459_v37, %v8458_v62  ;;  %v8478_v37 = vld [vmem:[#allocation66_spill] sm:$0xff] }
 0x44d   : > { %2983 = vmatmul.mubr.bf16.gmra.mxu1 %v4357_v7  ;;  %2887 = vmatmul.mubr.bf16.gmra.mxu0 %v4309_v50  ;;  %v4753_v7 = vld [vmem:[%s6285_s9 + $0x38] sm:$0xff]   ;;  %v8464_v50 = vld [vmem:[#allocation57_spill] sm:$0xff] }
 0x44e   : > { %5162 = vmatpush3.bf16.msra.mxu1 %v5795_v16  ;;  %2990 = vmatprep.mubr.bf16.mxu1 %v4362_v52  ;;  %v8462_v16 = vld [vmem:[#allocation42_spill] sm:$0xff]  ;;  %v4644_v52 = vunpack.c.h.bf16 %v4753_v7  ;;  %v4342_v33 = vcombine.high %v8465_v57, %v8464_v50 }
 0x44f   : > { %5163 = vmatprep.subr.bf16.mxu1 %v5796_v35  ;;  %2894 = vmatprep.mubr.bf16.mxu0 %v4314_v43  ;;  %v4328_v32 = vcombine.high %v8463_v22, %v8462_v16  ;;  %v4337_v35 = vcombine.low %v8461_v9, %v8460_v39  ;;  %v4643_v43 = vunpack.c.l.bf16 %v4753_v7  ;;  %v8480_v9 = vld [vmem:[#allocation70_spill] sm:$0xff] }
 0x450   : > { %5393 = vmatprep.subr.mxu0 %v4644_v52 }
 0x451   : > { %5394 = vmatpush3.msra.mxu0 %v4644_v52 }
 0x452   : > { %5164 = vmatpush3.bf16.msra.mxu1 %v5797_v8  ;;  %v4327_v8 = vcombine.low %v8463_v22, %v8462_v16  ;;  %5395 = vmatprep.subr.mxu0 %v4643_v43  ;;  %v8482_v16 = vld [vmem:[#allocation74_spill] sm:$0xff]  ;;  %v8483_v22 = vld [vmem:[#allocation72_spill] sm:$0xff] }
 0x453   : > { %5165 = vmatprep.subr.bf16.mxu1 %v5798_v45  ;;  %v4752_v45 = vld [vmem:[%s6285_s9 + $0x30] sm:$0xff]   ;;  %5396 = vmatpush3.msra.mxu0 %v4643_v43  ;;  %v4359_v52 = vcombine.low %v8483_v22, %v8482_v16 }
 0x454   : > { %v4640_v12 = vunpack.c.h.bf16 %v4752_v45  ;;  %v4639_v51 = vunpack.c.l.bf16 %v4752_v45 }
 0x455   : > { %2991 = vmatmul.mubr.bf16.gmra.mxu1 %v4361_v11  ;;  %2895 = vmatmul.mubr.bf16.gmra.mxu0 %v4313_v15  ;;  %v8466_v11 = vld [vmem:[#allocation46_spill] sm:$0xff]  ;;  %v8469_v15 = vld [vmem:[#allocation59_spill] sm:$0xff] }
 0x456   : > { %5166 = vmatpush3.bf16.msra.mxu1 %v5799_v29  ;;  %3031 = vmatprep.mubr.bf16.mxu1 %v4304_v1  ;;  %v8467_v29 = vld [vmem:[#allocation44_spill] sm:$0xff]  ;;  %v4341_v1 = vcombine.low %v8465_v57, %v8464_v50 }
 0x457   : > { %5167 = vmatprep.subr.bf16.mxu1 %v5800_v2  ;;  %2902 = vmatprep.mubr.bf16.mxu0 %v4318_v10  ;;  %v4332_v27 = vcombine.high %v8467_v29, %v8466_v11  ;;  %v8468_v2 = vld [vmem:[#allocation61_spill] sm:$0xff]  ;;  %v4751_v10 = vld [vmem:[%s6285_s9 + $0x28] sm:$0xff]   ;;  %v4331_v55 = vcombine.low %v8467_v29, %v8466_v11 }
 0x458   : > { %v4346_v48 = vcombine.high %v8469_v15, %v8468_v2  ;;  %5397 = vmatprep.subr.mxu0 %v4640_v12  ;;  %v8485_v50 = vld [vmem:[#allocation76_spill] sm:$0xff] }
 0x459   : > { %5398 = vmatpush3.msra.mxu0 %v4640_v12 }
 0x45a   : > { %5168 = vmatpush3.bf16.msra.mxu1 %v5801_v31  ;;  %5399 = vmatprep.subr.mxu0 %v4639_v51  ;;  %v4636_v31 = vunpack.c.h.bf16 %v4751_v10 }
 0x45b   : > { %5400 = vmatpush3.msra.mxu0 %v4639_v51 }
 0x45c   : > { %5401 = vmatprep.subr.mxu0 %v4636_v31 }
 0x45d   : > { %3032 = vmatmul.mubr.bf16.vlgmr.msra.gmra.mxu1 %v4303_v20  ;;  %2903 = vmatmul.mubr.bf16.gmra.mxu0 %v4317_v34  ;;  %v4635_v20 = vunpack.c.l.bf16 %v4751_v10  ;;  %v8471_v34 = vld [vmem:[#allocation48_spill] sm:$0xff] }
 0x45e   : > { %3039 = vmatprep.mubr.bf16.mxu1 %v4308_v42  ;;  %2910 = vmatprep.mubr.bf16.mxu0 %v4322_v17  ;;  %v8470_v42 = vld [vmem:[#allocation50_spill] sm:$0xff]  ;;  %v4345_v17 = vcombine.low %v8469_v15, %v8468_v2 }
 0x45f   : > { %v4336_v3 = vcombine.high %v8471_v34, %v8470_v42  ;;  %5402 = vmatpush3.msra.mxu0 %v4636_v31 }
 0x460   : > { %5403 = vmatprep.subr.mxu0 %v4635_v20 }
 0x461   : > { %5404 = vmatpush3.msra.mxu0 %v4635_v20 }
 0x462   : > { %5405 = vmatprep.subr.mxu0 %v4632_v40 }
 0x463   : > { %5406 = vmatpush3.msra.mxu0 %v4632_v40 }
 0x465   : > { %3040 = vmatmul.mubr.bf16.gmra.mxu1 %v4307_v4  ;;  %2911 = vmatmul.mubr.bf16.gmra.mxu0 %v4321_v6  ;;  %v4631_v4 = vunpack.c.l.bf16 %v4750_v63  ;;  %v4335_v6 = vcombine.low %v8471_v34, %v8470_v42 }
 0x466   : > { %3047 = vmatprep.mubr.bf16.mxu1 %v4312_v58  ;;  %2918 = vmatprep.mubr.bf16.mxu0 %v4326_v21  ;;  %v4627_v58 = vunpack.c.l.bf16 %v4749_v18  ;;  %v8473_v21 = vld [vmem:[#allocation52_spill] sm:$0xff] }
 0x467   : > { %5407 = vmatprep.subr.mxu0 %v4631_v4  ;;  %v4339_v0 = vcombine.low %v8473_v21, %v8472_v30 }
 0x468   : > { %5408 = vmatpush3.msra.mxu0 %v4631_v4 }
 0x469   : > { %5409 = vmatprep.subr.mxu0 %v4628_v59 }
 0x46a   : > { %5410 = vmatpush3.msra.mxu0 %v4628_v59 }
 0x46b   : > { %5411 = vmatprep.subr.mxu0 %v4627_v58 }
 0x46c   : > { %5412 = vmatpush3.msra.mxu0 %v4627_v58 }
 0x46d   : > { %3048 = vmatmul.mubr.bf16.gmra.mxu1 %v4311_v5  ;;  %2919 = vmatmul.mubr.bf16.gmra.mxu0 %v4325_v49  ;;  %v4340_v5 = vcombine.high %v8473_v21, %v8472_v30 }
 0x46e   : > { %3055 = vmatprep.mubr.bf16.mxu1 %v4316_v61  ;;  %2926 = vmatprep.mubr.bf16.mxu0 %v4330_v28  ;;  %v4747_v61 = vld [vmem:[%s6285_s9 + $0x8] sm:$0xff]   ;;  %v4614_v28 = vld [vmem:[%s6285_s9] sm:$0xff]   ;;  %s4430_s9 = sshll.u32 %s6305_s7, 2 }
 0x46f   : > { %5413 = vmatprep.subr.mxu0 %v4624_v54  ;;  %v4620_v49 = vunpack.c.h.bf16 %v4747_v61  ;;  %v4619_v47 = vunpack.c.l.bf16 %v4747_v61  ;;  %s7492_s15 = scalar_lea.vmem [#allocation2], %s4430_s9 }
 0x470   : > { %5414 = vmatpush3.msra.mxu0 %v4624_v54 }
 0x471   : > { %5415 = vmatprep.subr.mxu0 %v4623_v44 }
 0x472   : > { %5416 = vmatpush3.msra.mxu0 %v4623_v44 }
 0x473   : > { %5417 = vmatprep.subr.mxu0 %v4620_v49 }
 0x474   : > { %5418 = vmatpush3.msra.mxu0 %v4620_v49 }
 0x475   : > { %3056 = vmatmul.mubr.bf16.gmra.mxu1 %v4315_v23  ;;  %2927 = vmatmul.mubr.bf16.gmra.mxu0 %v4329_v24  ;;  %v8474_v23 = vld [vmem:[#allocation58_spill] sm:$0xff]  ;;  %v4615_v24 = vunpack.c.l.bf16 %v4614_v28 }
 0x476   : > { %3063 = vmatprep.mubr.bf16.mxu1 %v4320_v19  ;;  %2934 = vmatprep.mubr.bf16.mxu0 %v4334_v41  ;;  %v4344_v56 = vcombine.high %v8475_v26, %v8474_v23  ;;  %v4616_v19 = vunpack.c.h.bf16 %v4614_v28  ;;  %v4343_v25 = vcombine.low %v8475_v26, %v8474_v23  ;;  %v8477_v41 = vld [vmem:[#allocation60_spill] sm:$0xff] }
 0x477   : > { %5419 = vmatprep.subr.mxu0 %v4619_v47  ;;  %v4347_v62 = vcombine.low %v8477_v41, %v8476_v38 }
 0x478   : > { %5420 = vmatpush3.msra.mxu0 %v4619_v47 }
 0x479   : > { %5421 = vmatprep.subr.mxu0 %v4616_v19 }
 0x47a   : > { %5422 = vmatpush3.msra.mxu0 %v4616_v19 }
 0x47b   : > { %5423 = vmatprep.subr.mxu0 %v4615_v24 }
 0x47c   : > { %5424 = vmatpush3.msra.mxu0 %v4615_v24 }
 0x47d   : > { %3064 = vmatmul.mubr.bf16.gmra.mxu1 %v4319_v13  ;;  %2935 = vmatmul.mubr.bf16.gmra.mxu0 %v4333_v14  ;;  %v4348_v13 = vcombine.high %v8477_v41, %v8476_v38 }
 0x47e   : > { %3071 = vmatprep.mubr.bf16.mxu1 %v4324_v60  ;;  %2942 = vmatprep.mubr.bf16.mxu0 %v4338_v53  ;;  %v8479_v60 = vld [vmem:[#allocation64_spill] sm:$0xff] }
 0x47f   : > { %v4352_v14 = vcombine.high %v8479_v60, %v8478_v37  ;;  %v4351_v39 = vcombine.low %v8479_v60, %v8478_v37  ;;  %v8481_v53 = vld [vmem:[#allocation68_spill] sm:$0xff] }
 0x480   : > { %v4355_v7 = vcombine.low %v8481_v53, %v8480_v9 }
 0x485   : > { %3072 = vmatmul.mubr.bf16.gmra.mxu1 %v4323_v36  ;;  %2943 = vmatmul.mubr.bf16.gmra.mxu0 %v4337_v35  ;;  %v4356_v36 = vcombine.high %v8481_v53, %v8480_v9  ;;  %v8484_v35 = vld [vmem:[#allocation78_spill] sm:$0xff] }
 0x486   : > { %3079 = vmatprep.mubr.bf16.mxu1 %v4328_v32  ;;  %2950 = vmatprep.mubr.bf16.mxu0 %v4342_v33  ;;  %v4360_v32 = vcombine.high %v8483_v22, %v8482_v16  ;;  %v4364_v57 = vcombine.high %v8485_v50, %v8484_v35  ;;  %v4363_v33 = vcombine.low %v8485_v50, %v8484_v35 }
 0x48d   : > { %3080 = vmatmul.mubr.bf16.gmra.mxu1 %v4327_v8  ;;  %2951 = vmatmul.mubr.bf16.gmra.mxu0 %v4341_v1 }
 0x48e   : > { %3087 = vmatprep.mubr.bf16.mxu1 %v4332_v27  ;;  %2958 = vmatprep.mubr.bf16.mxu0 %v4346_v48 }
 0x495   : > { %3088 = vmatmul.mubr.bf16.gmra.mxu1 %v4331_v55  ;;  %2959 = vmatmul.mubr.bf16.gmra.mxu0 %v4345_v17 }
 0x496   : > { %3095 = vmatprep.mubr.bf16.mxu1 %v4336_v3 }
 0x49d   : > { %3096 = vmatmul.mubr.bf16.gmra.mxu1 %v4335_v6 }
 0x49e   : > { %3103 = vmatprep.mubr.bf16.mxu1 %v4340_v5 }
 0x4a5   : > { %3104 = vmatmul.mubr.bf16.gmra.mxu1 %v4339_v0 }
 0x4a6   : > { %3111 = vmatprep.mubr.bf16.mxu1 %v4344_v56 }
 0x4ad   : > { %3112 = vmatmul.mubr.bf16.gmra.mxu1 %v4343_v25 }
 0x4ae   : > { %3119 = vmatprep.mubr.bf16.mxu1 %v4348_v13 }
 0x4b5   : > { %3120 = vmatmul.mubr.bf16.gmra.mxu1 %v4347_v62 }
 0x4b6   : > { %3127 = vmatprep.mubr.bf16.mxu1 %v4352_v14 }
 0x4bd   : > { %3128 = vmatmul.mubr.bf16.gmra.mxu1 %v4351_v39 }
 0x4be   : > { %3135 = vmatprep.mubr.bf16.mxu1 %v4356_v36 }
 0x4c5   : > { %3136 = vmatmul.mubr.bf16.gmra.mxu1 %v4355_v7 }
 0x4c6   : > { %3143 = vmatprep.mubr.bf16.mxu1 %v4360_v32 }
 0x4cd   : > { %3144 = vmatmul.mubr.bf16.gmra.mxu1 %v4359_v52 }
 0x4ce   : > { %3151 = vmatprep.mubr.bf16.mxu1 %v4364_v57 }
 0x4d5   : > { %3152 = vmatmul.mubr.bf16.gmra.mxu1 %v4363_v33 }
 0x4fd   : > { %v5129_v43 = vpop.f32.mrf.mxu1  ;;  %v5057_v45 = vpop.f32.mrf.mxu0 }
 0x4ff   : > { %v5130_v8 = vpop.f32.mrf.mxu1  ;;  %v5058_v27 = vpop.f32.mrf.mxu0 }
 0x500   : > { %v7447_v11 = vadd.f32 %v5130_v8, %v5129_v43  ;;  %v5059_v19 = vadd.f32 %v5058_v27, %v5057_v45 }
 0x501   : > { %v5132_v29 = vpop.f32.mrf.mxu1  ;;  %v5060_v1 = vpop.f32.mrf.mxu0 }
 0x503   : > { %v5133_v12 = vpop.f32.mrf.mxu1  ;;  %v5061_v48 = vpop.f32.mrf.mxu0 }
 0x504   : > { %v7449_v2 = vadd.f32 %v5133_v12, %v5132_v29  ;;  %v5062_v37 = vadd.f32 %v5061_v48, %v5060_v1 }
 0x505   : > { %v5135_v15 = vpop.f32.mrf.mxu1  ;;  %v5063_v10 = vpop.f32.mrf.mxu0 }
 0x507   : > { %v5136_v51 = vpop.f32.mrf.mxu1  ;;  %v5064_v55 = vpop.f32.mrf.mxu0 }
 0x508   : > { %v7451_v31 = vadd.f32 %v5136_v51, %v5135_v15  ;;  %v5065_v7 = vadd.f32 %v5064_v55, %v5063_v10 }
 0x509   : > { %v5138_v20 = vpop.f32.mrf.mxu1  ;;  %v5066_v42 = vpop.f32.mrf.mxu0 }
 0x50b   : > { %v5139_v63 = vpop.f32.mrf.mxu1  ;;  %v5067_v40 = vpop.f32.mrf.mxu0 }
 0x50c   : > { %v7453_v34 = vadd.f32 %v5139_v63, %v5138_v20  ;;  %v5068_v57 = vadd.f32 %v5067_v40, %v5066_v42 }
 0x50d   : > { %v5141_v3 = vpop.f32.mrf.mxu1  ;;  %v5069_v4 = vpop.f32.mrf.mxu0 }
 0x50f   : > { %v5142_v17 = vpop.f32.mrf.mxu1  ;;  %v5070_v58 = vpop.f32.mrf.mxu0 }
 0x510   : > { %v7455_v18 = vadd.f32 %v5142_v17, %v5141_v3  ;;  %v5071_v12 = vadd.f32 %v5070_v58, %v5069_v4 }
 0x511   : > { %v5144_v59 = vpop.f32.mrf.mxu1  ;;  %v5072_v46 = vpop.f32.mrf.mxu0 }
 0x513   : > { %v5145_v6 = vpop.f32.mrf.mxu1  ;;  %v5073_v5 = vpop.f32.mrf.mxu0 }
 0x514   : > { %v7457_v30 = vadd.f32 %v5145_v6, %v5144_v59  ;;  %v5074_v55 = vadd.f32 %v5073_v5, %v5072_v46 }
 0x515   : > { %v5147_v21 = vpop.f32.mrf.mxu1  ;;  %v5075_v44 = vpop.f32.mrf.mxu0 }
 0x517   : > { %v5148_v54 = vpop.f32.mrf.mxu1  ;;  %v5076_v47 = vpop.f32.mrf.mxu0 }
 0x518   : > { %v7459_v61 = vadd.f32 %v5148_v54, %v5147_v21  ;;  %v5077_v6 = vadd.f32 %v5076_v47, %v5075_v44 }
 0x519   : > { %v5150_v49 = vpop.f32.mrf.mxu1  ;;  %v5078_v28 = vpop.f32.mrf.mxu0 }
 0x51b   : > { %v5151_v0 = vpop.f32.mrf.mxu1  ;;  %v5079_v56 = vpop.f32.mrf.mxu0 }
 0x51c   : > { %v7461_v23 = vadd.f32 %v5151_v0, %v5150_v49 }
 0x51d   : > { %v5169_v26 = vpop.f32.mrf.mxu1  ;;  %v5081_v25 = vpop.f32.mrf.mxu0 }
 0x51f   : > { %v5170_v24 = vpop.f32.mrf.mxu1  ;;  %v5082_v13 = vpop.f32.mrf.mxu0 }
 0x520   : > { %v5171_v38 = vadd.f32 %v5170_v24, %v5169_v26  ;;  %v5080_v26 = vadd.f32 %v5079_v56, %v5078_v28 }
 0x521   : > { %v5172_v41 = vpop.f32.mrf.mxu1  ;;  %v5084_v14 = vpop.f32.mrf.mxu0 }
 0x522   : > { %v3034_v62 = vadd.f32 %v5171_v38, %v5059_v19 }
 0x523   : > { %v5173_v60 = vpop.f32.mrf.mxu1  ;;  %v5085_v53 = vpop.f32.mrf.mxu0 }
 0x524   : > { %v5174_v39 = vadd.f32 %v5173_v60, %v5172_v41  ;;  %5425 = vmatprep.mubr.f32.mxu0 %v3034_v62  ;;  %v5083_v62 = vadd.f32 %v5082_v13, %v5081_v25 }
 0x525   : > { %v5175_v9 = vpop.f32.mrf.mxu1  ;;  %v5087_v22 = vpop.f32.mrf.mxu0 }
 0x526   : > { %v3037_v36 = vadd.f32 %v5174_v39, %v5062_v37 }
 0x527   : > { %v5176_v16 = vpop.f32.mrf.mxu1  ;;  %v5088_v35 = vpop.f32.mrf.mxu0 }
 0x528   : > { %v5177_v32 = vadd.f32 %v5176_v16, %v5175_v9  ;;  %5426 = vmatmul.mubr.f32.vlgmr.msra.gmra.mxu0 %v3037_v36  ;;  %v5086_v36 = vadd.f32 %v5085_v53, %v5084_v14 }
 0x529   : > { %v5178_v52 = vpop.f32.mrf.mxu1  ;;  %v5090_v43 = vpop.f32.mrf.mxu0 }
 0x52a   : > { %v3042_v50 = vadd.f32 %v5177_v32, %v5065_v7 }
 0x52b   : > { %v5179_v33 = vpop.f32.mrf.mxu1  ;;  %v5091_v29 = vpop.f32.mrf.mxu0 }
 0x52c   : > { %v5180_v8 = vadd.f32 %v5179_v33, %v5178_v52  ;;  %5428 = vmatprep.mubr.f32.mxu0 %v3042_v50  ;;  %v5089_v52 = vadd.f32 %v5088_v35, %v5087_v22 }
 0x52d   : > { %v5181_v45 = vpop.f32.mrf.mxu1  ;;  %v5093_v15 = vpop.f32.mrf.mxu0 }
 0x52e   : > { %v3045_v27 = vadd.f32 %v5180_v8, %v5068_v57  ;;  %v5092_v8 = vadd.f32 %v5091_v29, %v5090_v43 }
 0x52f   : > { %v5182_v1 = vpop.f32.mrf.mxu1  ;;  %v5094_v10 = vpop.f32.mrf.mxu0 }
 0x530   : > { %v5183_v48 = vadd.f32 %v5182_v1, %v5181_v45  ;;  %5429 = vmatmul.mubr.f32.gmra.mxu0 %v3045_v27  ;;  %v5095_v53 = vadd.f32 %v5094_v10, %v5093_v15 }
 0x531   : > { %v5184_v51 = vpop.f32.mrf.mxu1  ;;  %v5096_v3 = vpop.f32.mrf.mxu0 }
 0x532   : > { %v3050_v20 = vadd.f32 %v5183_v48, %v5071_v12 }
 0x533   : > { %v5185_v63 = vpop.f32.mrf.mxu1  ;;  %v5097_v40 = vpop.f32.mrf.mxu0 }
 0x534   : > { %v5186_v17 = vadd.f32 %v5185_v63, %v5184_v51  ;;  %5431 = vmatprep.mubr.f32.mxu0 %v3050_v20  ;;  %v5098_v35 = vadd.f32 %v5097_v40, %v5096_v3 }
 0x535   : > { %v5187_v42 = vpop.f32.mrf.mxu1  ;;  %v5099_v54 = vpop.f32.mrf.mxu0 }
 0x536   : > { %v3053_v59 = vadd.f32 %v5186_v17, %v5074_v55 }
 0x537   : > { %v5188_v21 = vpop.f32.mrf.mxu1  ;;  %v5100_v58 = vpop.f32.mrf.mxu0 }
 0x538   : > { %v5189_v49 = vadd.f32 %v5188_v21, %v5187_v42  ;;  %5432 = vmatmul.mubr.f32.gmra.mxu0 %v3053_v59  ;;  %v5101_v29 = vadd.f32 %v5100_v58, %v5099_v54 }
 0x539   : > { %v5190_v4 = vpop.f32.mrf.mxu1  ;;  %v5102_v24 = vpop.f32.mrf.mxu0 }
 0x53a   : > { %v3058_v0 = vadd.f32 %v5189_v49, %v5077_v6 }
 0x53b   : > { %v5191_v19 = vpop.f32.mrf.mxu1  ;;  %v5103_v5 = vpop.f32.mrf.mxu0 }
 0x53c   : > { %v5192_v38 = vadd.f32 %v5191_v19, %v5190_v4  ;;  %5434 = vmatprep.mubr.f32.mxu0 %v3058_v0  ;;  %v5104_v10 = vadd.f32 %v5103_v5, %v5102_v24 }
 0x53d   : > { %v5193_v46 = vpop.f32.mrf.mxu1  ;;  %v5105_v60 = vpop.f32.mrf.mxu0 }
 0x53e   : > { %v3061_v41 = vadd.f32 %v5192_v38, %v5080_v26 }
 0x53f   : > { %v5194_v37 = vpop.f32.mrf.mxu1  ;;  %v5106_v47 = vpop.f32.mrf.mxu0 }
 0x540   : > { %v5195_v39 = vadd.f32 %v5194_v37, %v5193_v46  ;;  %5435 = vmatmul.mubr.f32.gmra.mxu0 %v3061_v41  ;;  %v5107_v40 = vadd.f32 %v5106_v47, %v5105_v60 }
 0x541   : > { %v5196_v44 = vpop.f32.mrf.mxu1  ;;  %v5108_v16 = vpop.f32.mrf.mxu0 }
 0x542   : > { %v3066_v9 = vadd.f32 %v5195_v39, %v5083_v62 }
 0x543   : > { %v5197_v7 = vpop.f32.mrf.mxu1  ;;  %v5109_v57 = vpop.f32.mrf.mxu0 }
 0x544   : > { %v5198_v32 = vadd.f32 %v5197_v7, %v5196_v44  ;;  %5437 = vmatprep.mubr.f32.mxu0 %v3066_v9  ;;  %v5110_v58 = vadd.f32 %v5109_v57, %v5108_v16 }
 0x545   : > { %v5199_v28 = vpop.f32.mrf.mxu1  ;;  %v5111_v27 = vpop.f32.mrf.mxu0 }
 0x546   : > { %v3069_v56 = vadd.f32 %v5198_v32, %v5086_v36 }
 0x547   : > { %v5200_v50 = vpop.f32.mrf.mxu1  ;;  %v5112_v51 = vpop.f32.mrf.mxu0 }
 0x548   : > { %v5201_v33 = vadd.f32 %v5200_v50, %v5199_v28  ;;  %5438 = vmatmul.mubr.f32.gmra.mxu0 %v3069_v56  ;;  %v5113_v5 = vadd.f32 %v5112_v51, %v5111_v27 }
 0x549   : > { %v5202_v25 = vpop.f32.mrf.mxu1  ;;  %v5114_v17 = vpop.f32.mrf.mxu0 }
 0x54a   : > { %v3074_v13 = vadd.f32 %v5201_v33, %v5089_v52 }
 0x54b   : > { %v5203_v45 = vpop.f32.mrf.mxu1  ;;  %v5115_v21 = vpop.f32.mrf.mxu0 }
 0x54c   : > { %v5204_v12 = vadd.f32 %v5203_v45, %v5202_v25  ;;  %5440 = vmatprep.mubr.f32.mxu0 %v3074_v13  ;;  %v5116_v47 = vadd.f32 %v5115_v21, %v5114_v17 }
 0x54d   : > { %v5205_v1 = vpop.f32.mrf.mxu1  ;;  %v5117_v26 = vpop.f32.mrf.mxu0 }
 0x54e   : > { %v3077_v14 = vadd.f32 %v5204_v12, %v5092_v8 }
 0x54f   : > { %v5206_v48 = vpop.f32.mrf.mxu1  ;;  %v5118_v41 = vpop.f32.mrf.mxu0 }
 0x550   : > { %v5207_v20 = vadd.f32 %v5206_v48, %v5205_v1  ;;  %5441 = vmatmul.mubr.f32.gmra.mxu0 %v3077_v14  ;;  %v5119_v57 = vadd.f32 %v5118_v41, %v5117_v26 }
 0x551   : > { %v5208_v55 = vpop.f32.mrf.mxu1  ;;  %v5120_v44 = vpop.f32.mrf.mxu0 }
 0x552   : > { %v3082_v22 = vadd.f32 %v5207_v20, %v5095_v53 }
 0x553   : > { %v5209_v63 = vpop.f32.mrf.mxu1  ;;  %v5121_v32 = vpop.f32.mrf.mxu0 }
 0x554   : > { %v5210_v42 = vadd.f32 %v5209_v63, %v5208_v55  ;;  %5443 = vmatprep.mubr.f32.mxu0 %v3082_v22  ;;  %v5122_v1 = vadd.f32 %v5121_v32, %v5120_v44 }
 0x555   : > { %v5211_v59 = vpop.f32.mrf.mxu1  ;;  %v5123_v50 = vpop.f32.mrf.mxu0 }
 0x556   : > { %v3085_v43 = vadd.f32 %v5210_v42, %v5098_v35 }
 0x557   : > { %v5212_v6 = vpop.f32.mrf.mxu1  ;;  %v5124_v8 = vpop.f32.mrf.mxu0 }
 0x558   : > { %v5213_v49 = vadd.f32 %v5212_v6, %v5211_v59  ;;  %5444 = vmatmul.mubr.f32.gmra.mxu0 %v3085_v43  ;;  %v5125_v55 = vadd.f32 %v5124_v8, %v5123_v50 }
 0x559   : > { %v5214_v4 = vpop.f32.mrf.mxu1  ;;  %v5126_v53 = vpop.f32.mrf.mxu0 }
 0x55a   : > { %v3090_v15 = vadd.f32 %v5213_v49, %v5101_v29 }
 0x55b   : > { %v5215_v0 = vpop.f32.mrf.mxu1  ;;  %v5127_v35 = vpop.f32.mrf.mxu0 }
 0x55c   : > { %v5216_v19 = vadd.f32 %v5215_v0, %v5214_v4  ;;  %5446 = vmatprep.mubr.f32.mxu0 %v3090_v15  ;;  %v5128_v59 = vadd.f32 %v5127_v35, %v5126_v53 }
 0x55d   : > { %v5217_v38 = vpop.f32.mrf.mxu1 }
 0x55e   : > { %v3093_v3 = vadd.f32 %v5216_v19, %v5104_v10 }
 0x55f   : > { %v5218_v46 = vpop.f32.mrf.mxu1 }
 0x560   : > { %v5219_v62 = vadd.f32 %v5218_v46, %v5217_v38  ;;  %5447 = vmatmul.mubr.f32.gmra.mxu0 %v3093_v3 }
 0x561   : > { %v5220_v37 = vpop.f32.mrf.mxu1 }
 0x562   : > { %v3098_v54 = vadd.f32 %v5219_v62, %v5107_v40 }
 0x563   : > { %v5221_v39 = vpop.f32.mrf.mxu1 }
 0x564   : > { %v5222_v9 = vadd.f32 %v5221_v39, %v5220_v37  ;;  %5449 = vmatprep.mubr.f32.mxu0 %v3098_v54 }
 0x565   : > { %v5223_v36 = vpop.f32.mrf.mxu1 }
 0x566   : > { %v3101_v24 = vadd.f32 %v5222_v9, %v5110_v58 }
 0x567   : > { %v5224_v7 = vpop.f32.mrf.mxu1 }
 0x568   : > { %v5225_v28 = vadd.f32 %v5224_v7, %v5223_v36  ;;  %5450 = vmatmul.mubr.f32.gmra.mxu0 %v3101_v24 }
 0x569   : > { %v5226_v56 = vpop.f32.mrf.mxu1 }
 0x56a   : > { %v3106_v60 = vadd.f32 %v5225_v28, %v5113_v5 }
 0x56b   : > { %v5227_v52 = vpop.f32.mrf.mxu1 }
 0x56c   : > { %v5228_v33 = vadd.f32 %v5227_v52, %v5226_v56  ;;  %5452 = vmatprep.mubr.f32.mxu0 %v3106_v60 }
 0x56d   : > { %v5229_v25 = vpop.f32.mrf.mxu1 }
 0x56e   : > { %v3109_v16 = vadd.f32 %v5228_v33, %v5116_v47  ;;  %v7472_v47 = vld [vmem:[%s6298_s6] ss:$0 sm:$0xff]  ;;  %s3974_s6 = scalar_select %p3941_p2, 1, 0 }
 0x56f   : > { %v5230_v13 = vpop.f32.mrf.mxu1 }
 0x570   : > { %v5231_v45 = vadd.f32 %v5230_v13, %v5229_v25  ;;  %5453 = vmatmul.mubr.f32.gmra.mxu0 %v3109_v16 }
 0x571   : > { %v5232_v12 = vpop.f32.mrf.mxu1 }
 0x572   : > { %v3114_v27 = vadd.f32 %v5231_v45, %v5119_v57 }
 0x573   : > { %v5233_v14 = vpop.f32.mrf.mxu1 }
 0x574   : > { %v5234_v48 = vadd.f32 %v5233_v14, %v5232_v12  ;;  %5455 = vmatprep.mubr.f32.mxu0 %v3114_v27 }
 0x575   : > { %v5235_v51 = vpop.f32.mrf.mxu1 }
 0x576   : > { %v3117_v20 = vadd.f32 %v5234_v48, %v5122_v1 }
 0x577   : > { %v5236_v22 = vpop.f32.mrf.mxu1 }
 0x578   : > { %v5237_v63 = vadd.f32 %v5236_v22, %v5235_v51  ;;  %5456 = vmatmul.mubr.f32.gmra.mxu0 %v3117_v20 }
 0x579   : > { %v5238_v17 = vpop.f32.mrf.mxu1 }
 0x57a   : > { %v3122_v42 = vadd.f32 %v5237_v63, %v5125_v55 }
 0x57b   : > { %v5239_v43 = vpop.f32.mrf.mxu1 }
 0x57c   : > { %v5240_v29 = vadd.f32 %v5239_v43, %v5238_v17  ;;  %5458 = vmatprep.mubr.f32.mxu0 %v3122_v42 }
 0x57d   : > { %v5241_v6 = vpop.f32.mrf.mxu1 }
 0x57e   : > { %v3125_v21 = vadd.f32 %v5240_v29, %v5128_v59 }
 0x57f   : > { %v5242_v49 = vpop.f32.mrf.mxu1 }
 0x580   : > { %v5243_v4 = vadd.f32 %v5242_v49, %v5241_v6  ;;  %5459 = vmatmul.mubr.f32.gmra.mxu0 %v3125_v21 }
 0x581   : > { %v5244_v15 = vpop.f32.mrf.mxu1 }
 0x582   : > { %v3130_v10 = vadd.f32 %v5243_v4, %v7447_v11 }
 0x583   : > { %v5245_v0 = vpop.f32.mrf.mxu1 }
 0x584   : > { %v5246_v26 = vadd.f32 %v5245_v0, %v5244_v15  ;;  %5461 = vmatprep.mubr.f32.mxu0 %v3130_v10 }
 0x585   : > { %v5247_v19 = vpop.f32.mrf.mxu1 }
 0x586   : > { %v3133_v38 = vadd.f32 %v5246_v26, %v7449_v2 }
 0x587   : > { %v5248_v3 = vpop.f32.mrf.mxu1 }
 0x588   : > { %v5249_v40 = vadd.f32 %v5248_v3, %v5247_v19  ;;  %5462 = vmatmul.mubr.f32.gmra.mxu0 %v3133_v38 }
 0x589   : > { %v5250_v46 = vpop.f32.mrf.mxu1 }
 0x58a   : > { %v3138_v41 = vadd.f32 %v5249_v40, %v7451_v31 }
 0x58b   : > { %v5251_v62 = vpop.f32.mrf.mxu1 }
 0x58c   : > { %v5252_v37 = vadd.f32 %v5251_v62, %v5250_v46  ;;  %5464 = vmatprep.mubr.f32.mxu0 %v3138_v41 }
 0x58d   : > { %v5253_v54 = vpop.f32.mrf.mxu1 }
 0x58e   : > { %v3141_v58 = vadd.f32 %v5252_v37, %v7453_v34 }
 0x58f   : > { %v5254_v39 = vpop.f32.mrf.mxu1 }
 0x590   : > { %v5255_v11 = vadd.f32 %v5254_v39, %v5253_v54  ;;  %5465 = vmatmul.mubr.f32.gmra.mxu0 %v3141_v58 }
 0x591   : > { %v5256_v44 = vpop.f32.mrf.mxu1 }
 0x592   : > { %v3146_v9 = vadd.f32 %v5255_v11, %v7455_v18  ;;  %v3618_v18 = vlaneseq }
 0x593   : > { %v5257_v36 = vpop.f32.mrf.mxu1 }
 0x594   : > { %v5258_v2 = vadd.f32 %v5257_v36, %v5256_v44  ;;  %5467 = vmatprep.mubr.f32.mxu0 %v3146_v9  ;;  %v7474_v52 = vand.u32 127, %v3618_v18 }
 0x595   : > { %v5259_v24 = vpop.f32.mrf.mxu1 }
 0x596   : > { %v3149_v5 = vadd.f32 %v5258_v2, %v7457_v30  ;;  %vm3620_vm2 = vcmp.lt.s32.totalorder %v7474_v52, 8 }
 0x597   : > { %v5260_v31 = vpop.f32.mrf.mxu1 }
 0x598   : > { %v5261_v7 = vadd.f32 %v5260_v31, %v5259_v24  ;;  %5468 = vmatmul.mubr.f32.gmra.mxu0 %v3149_v5 }
 0x599   : > { %v5262_v32 = vpop.f32.mrf.mxu1 }
 0x59a   : > { %v3154_v34 = vadd.f32 %v5261_v7, %v7459_v61 }
 0x59b   : > { %v5263_v28 = vpop.f32.mrf.mxu1 }
 0x59c   : > { %v5264_v56 = vadd.f32 %v5263_v28, %v5262_v32  ;;  %5470 = vmatprep.mubr.f32.mxu0 %v3154_v34 }
 0x59e   : > { %v3157_v60 = vadd.f32 %v5264_v56, %v7461_v23 }
 0x5a0   : > { %5471 = vmatmul.mubr.f32.gmra.mxu0 %v3157_v60 }
 0x5e8   : > { %v5427_v50 = vpop.f32.mrf.mxu0 }
 0x5e9   : > { %v3271_v30 = vadd.f32 %v5427_v50, %v7472_v47 }
 0x5ea   : > { %v3265_v33 = vpop.f32.mrf.mxu0 }
 0x5eb   : > { %v7478_v25 = vmax.f32 %v3271_v30, 0.0  ;;  %v3266_v61 = vadd.f32 %v7472_v47, %v3265_v33 }
 0x5ed   : > { %v7482_v16 = vmax.f32 %v3266_v61, 0.0  ;;  %v7487_v23 = vsel %vm3620_vm2, %v7478_v25, -1e+30 }
 0x5ee   : > { %3655 = vmax.xlane.f32.xlu0 %v7487_v23 }
 0x5ef   : > { %v4648_v57 = vpack.c.bf16 %v7478_v25, %v7482_v16  ;;  %v7499_v45 = vsel %vm3620_vm2, %v7482_v16, -1e+30 }
 0x5f0   : > { %v5430_v13 = vpop.f32.mrf.mxu0 }
 0x5f1   : > { %4649 = vst [vmem:[%s7492_s15] sm:$0xff] %v4648_v57   ;;  %v3281_v8 = vadd.f32 %v5430_v13, %v7472_v47 }
 0x5f2   : > { %v3275_v12 = vpop.f32.mrf.mxu0  ;;  %3653 = vmax.xlane.f32.xlu0 %v7499_v45 }
 0x5f3   : > { %v7502_v27 = vmax.f32 %v3281_v8, 0.0  ;;  %v3276_v1 = vadd.f32 %v7472_v47, %v3275_v12 }
 0x5f5   : > { %v7505_v14 = vmax.f32 %v3276_v1, 0.0  ;;  %v7510_v53 = vsel %vm3620_vm2, %v7502_v27, -1e+30 }
 0x5f6   : > { %3659 = vmax.xlane.f32.xlu1 %v7510_v53 }
 0x5f7   : > { %v4653_v48 = vpack.c.bf16 %v7502_v27, %v7505_v14  ;;  %v7520_v55 = vsel %vm3620_vm2, %v7505_v14, -1e+30 }
 0x5f8   : > { %v5433_v51 = vpop.f32.mrf.mxu0 }
 0x5f9   : > { %4754 = vst [vmem:[%s7492_s15 + $0x8] sm:$0xff] %v4653_v48   ;;  %v3291_v20 = vadd.f32 %v5433_v51, %v7472_v47 }
 0x5fa   : > { %v3285_v22 = vpop.f32.mrf.mxu0  ;;  %3657 = vmax.xlane.f32.xlu1 %v7520_v55 }
 0x5fb   : > { %v7523_v35 = vmax.f32 %v3291_v20, 0.0  ;;  %v3286_v63 = vadd.f32 %v7472_v47, %v3285_v22 }
 0x5fd   : > { %v7526_v17 = vmax.f32 %v3286_v63, 0.0  ;;  %v7531_v42 = vsel %vm3620_vm2, %v7523_v35, -1e+30 }
 0x5fe   : > { %3663 = vmax.xlane.f32.xlu1 %v7531_v42 }
 0x5ff   : > { %v4658_v59 = vpack.c.bf16 %v7523_v35, %v7526_v17  ;;  %v7539_v43 = vsel %vm3620_vm2, %v7526_v17, -1e+30 }
 0x600   : > { %v5436_v29 = vpop.f32.mrf.mxu0  ;;  %3661 = vmax.xlane.f32.xlu0 %v7539_v43 }
 0x601   : > { %4755 = vst [vmem:[%s7492_s15 + $0x10] sm:$0xff] %v4658_v59   ;;  %v3301_v6 = vadd.f32 %v5436_v29, %v7472_v47 }
 0x602   : > { %v3295_v21 = vpop.f32.mrf.mxu0 }
 0x603   : > { %v7544_v49 = vmax.f32 %v3301_v6, 0.0  ;;  %v3296_v4 = vadd.f32 %v7472_v47, %v3295_v21 }
 0x605   : > { %v7547_v15 = vmax.f32 %v3296_v4, 0.0  ;;  %v7552_v10 = vsel %vm3620_vm2, %v7544_v49, -1e+30 }
 0x606   : > { %3667 = vmax.xlane.f32.xlu1 %v7552_v10 }
 0x607   : > { %v4663_v0 = vpack.c.bf16 %v7544_v49, %v7547_v15  ;;  %v7560_v26 = vsel %vm3620_vm2, %v7547_v15, -1e+30 }
 0x608   : > { %v5439_v19 = vpop.f32.mrf.mxu0  ;;  %3665 = vmax.xlane.f32.xlu0 %v7560_v26 }
 0x609   : > { %4756 = vst [vmem:[%s7492_s15 + $0x18] sm:$0xff] %v4663_v0   ;;  %v3311_v38 = vadd.f32 %v5439_v19, %v7472_v47 }
 0x60a   : > { %v3305_v3 = vpop.f32.mrf.mxu0 }
 0x60b   : > { %v7565_v40 = vmax.f32 %v3311_v38, 0.0  ;;  %v3306_v46 = vadd.f32 %v7472_v47, %v3305_v3 }
 0x60d   : > { %v7568_v41 = vmax.f32 %v3306_v46, 0.0  ;;  %v7573_v62 = vsel %vm3620_vm2, %v7565_v40, -1e+30 }
 0x60e   : > { %3671 = vmax.xlane.f32.xlu1 %v7573_v62 }
 0x60f   : > { %v4668_v37 = vpack.c.bf16 %v7565_v40, %v7568_v41  ;;  %v7581_v54 = vsel %vm3620_vm2, %v7568_v41, -1e+30 }
 0x610   : > { %v5442_v58 = vpop.f32.mrf.mxu0  ;;  %3669 = vmax.xlane.f32.xlu0 %v7581_v54 }
 0x611   : > { %4757 = vst [vmem:[%s7492_s15 + $0x20] sm:$0xff] %v4668_v37   ;;  %v3321_v39 = vadd.f32 %v5442_v58, %v7472_v47 }
 0x612   : > { %v3315_v11 = vpop.f32.mrf.mxu0 }
 0x613   : > { %v7586_v44 = vmax.f32 %v3321_v39, 0.0  ;;  %v3316_v9 = vadd.f32 %v7472_v47, %v3315_v11 }
 0x615   : > { %v7589_v36 = vmax.f32 %v3316_v9, 0.0  ;;  %v7594_v2 = vsel %vm3620_vm2, %v7586_v44, -1e+30 }
 0x616   : > { %3675 = vmax.xlane.f32.xlu1 %v7594_v2 }
 0x617   : > { %v4673_v24 = vpack.c.bf16 %v7586_v44, %v7589_v36  ;;  %v7602_v5 = vsel %vm3620_vm2, %v7589_v36, -1e+30 }
 0x618   : > { %v5445_v31 = vpop.f32.mrf.mxu0  ;;  %3673 = vmax.xlane.f32.xlu0 %v7602_v5 }
 0x619   : > { %4758 = vst [vmem:[%s7492_s15 + $0x28] sm:$0xff] %v4673_v24   ;;  %v3331_v7 = vadd.f32 %v5445_v31, %v7472_v47 }
 0x61a   : > { %v3325_v32 = vpop.f32.mrf.mxu0 }
 0x61b   : > { %v7607_v34 = vmax.f32 %v3331_v7, 0.0  ;;  %v3326_v28 = vadd.f32 %v7472_v47, %v3325_v32 }
 0x61d   : > { %v7610_v56 = vmax.f32 %v3326_v28, 0.0  ;;  %v7615_v60 = vsel %vm3620_vm2, %v7607_v34, -1e+30 }
 0x61e   : > { %3679 = vmax.xlane.f32.xlu1 %v7615_v60 }
 0x61f   : > { %v4678_v18 = vpack.c.bf16 %v7607_v34, %v7610_v56  ;;  %v7623_v50 = vsel %vm3620_vm2, %v7610_v56, -1e+30 }
 0x620   : > { %v5448_v30 = vpop.f32.mrf.mxu0  ;;  %3677 = vmax.xlane.f32.xlu0 %v7623_v50 }
 0x621   : > { %4759 = vst [vmem:[%s7492_s15 + $0x30] sm:$0xff] %v4678_v18   ;;  %v3341_v33 = vadd.f32 %v5448_v30, %v7472_v47 }
 0x622   : > { %v3335_v61 = vpop.f32.mrf.mxu0 }
 0x623   : > { %v7628_v57 = vmax.f32 %v3341_v33, 0.0  ;;  %v3336_v13 = vadd.f32 %v7472_v47, %v3335_v61 }
 0x625   : > { %v7631_v8 = vmax.f32 %v3336_v13, 0.0  ;;  %v7636_v12 = vsel %vm3620_vm2, %v7628_v57, -1e+30 }
 0x626   : > { %3683 = vmax.xlane.f32.xlu1 %v7636_v12 }
 0x627   : > { %v4683_v1 = vpack.c.bf16 %v7628_v57, %v7631_v8  ;;  %v7644_v48 = vsel %vm3620_vm2, %v7631_v8, -1e+30 }
 0x628   : > { %v5451_v51 = vpop.f32.mrf.mxu0  ;;  %3681 = vmax.xlane.f32.xlu0 %v7644_v48 }
 0x629   : > { %4760 = vst [vmem:[%s7492_s15 + $0x38] sm:$0xff] %v4683_v1   ;;  %v3351_v20 = vadd.f32 %v5451_v51, %v7472_v47 }
 0x62a   : > { %v3345_v22 = vpop.f32.mrf.mxu0 }
 0x62b   : > { %v7649_v63 = vmax.f32 %v3351_v20, 0.0  ;;  %v3346_v59 = vadd.f32 %v7472_v47, %v3345_v22 }
 0x62d   : > { %v7652_v29 = vmax.f32 %v3346_v59, 0.0  ;;  %v7657_v6 = vsel %vm3620_vm2, %v7649_v63, -1e+30 }
 0x62e   : > { %3687 = vmax.xlane.f32.xlu1 %v7657_v6 }
 0x62f   : > { %v4688_v21 = vpack.c.bf16 %v7649_v63, %v7652_v29  ;;  %v7665_v4 = vsel %vm3620_vm2, %v7652_v29, -1e+30 }
 0x630   : > { %v5454_v0 = vpop.f32.mrf.mxu0  ;;  %3685 = vmax.xlane.f32.xlu0 %v7665_v4 }
 0x631   : > { %4761 = vst [vmem:[%s7492_s15 + $0x40] sm:$0xff] %v4688_v21   ;;  %v3361_v19 = vadd.f32 %v5454_v0, %v7472_v47 }
 0x632   : > { %v3355_v38 = vpop.f32.mrf.mxu0 }
 0x633   : > { %v7670_v3 = vmax.f32 %v3361_v19, 0.0  ;;  %v3356_v46 = vadd.f32 %v7472_v47, %v3355_v38 }
 0x635   : > { %v7673_v37 = vmax.f32 %v3356_v46, 0.0  ;;  %v7678_v58 = vsel %vm3620_vm2, %v7670_v3, -1e+30 }
 0x636   : > { %3691 = vmax.xlane.f32.xlu1 %v7678_v58 }
 0x637   : > { %v4693_v39 = vpack.c.bf16 %v7670_v3, %v7673_v37  ;;  %v7686_v11 = vsel %vm3620_vm2, %v7673_v37, -1e+30 }
 0x638   : > { %v5457_v9 = vpop.f32.mrf.mxu0  ;;  %3689 = vmax.xlane.f32.xlu0 %v7686_v11 }
 0x639   : > { %4762 = vst [vmem:[%s7492_s15 + $0x48] sm:$0xff] %v4693_v39   ;;  %v3371_v24 = vadd.f32 %v5457_v9, %v7472_v47 }
 0x63a   : > { %v3365_v31 = vpop.f32.mrf.mxu0 }
 0x63b   : > { %v7691_v7 = vmax.f32 %v3371_v24, 0.0  ;;  %v3366_v32 = vadd.f32 %v7472_v47, %v3365_v31 }
 0x63d   : > { %8486 = vst [vmem:[#allocation91_spill] sm:$0xff] %v7691_v7  ;;  %v7694_v28 = vmax.f32 %v3366_v32, 0.0  ;;  %v7699_v18 = vsel %vm3620_vm2, %v7691_v7, -1e+30 }
 0x63e   : > { %3695 = vmax.xlane.f32.xlu1 %v7699_v18 }
 0x63f   : > { %8487 = vst [vmem:[#allocation92_spill] sm:$0xff] %v7694_v28  ;;  %v4698_v30 = vpack.c.bf16 %v7691_v7, %v7694_v28  ;;  %v7707_v33 = vsel %vm3620_vm2, %v7694_v28, -1e+30 }
 0x640   : > { %v5460_v61 = vpop.f32.mrf.mxu0  ;;  %3693 = vmax.xlane.f32.xlu0 %v7707_v33 }
 0x641   : > { %4763 = vst [vmem:[%s7492_s15 + $0x50] sm:$0xff] %v4698_v30   ;;  %v3381_v13 = vadd.f32 %v5460_v61, %v7472_v47 }
 0x642   : > { %v3375_v1 = vpop.f32.mrf.mxu0 }
 0x643   : > { %v7712_v51 = vmax.f32 %v3381_v13, 0.0  ;;  %v3376_v20 = vadd.f32 %v7472_v47, %v3375_v1 }
 0x645   : > { %8488 = vst [vmem:[#allocation93_spill] sm:$0xff] %v7712_v51  ;;  %v7715_v22 = vmax.f32 %v3376_v20, 0.0  ;;  %v7720_v59 = vsel %vm3620_vm2, %v7712_v51, -1e+30 }
 0x646   : > { %3699 = vmax.xlane.f32.xlu1 %v7720_v59 }
 0x647   : > { %8489 = vst [vmem:[#allocation94_spill] sm:$0xff] %v7715_v22  ;;  %v4703_v21 = vpack.c.bf16 %v7712_v51, %v7715_v22  ;;  %v7728_v0 = vsel %vm3620_vm2, %v7715_v22, -1e+30 }
 0x648   : > { %v5463_v19 = vpop.f32.mrf.mxu0  ;;  %3697 = vmax.xlane.f32.xlu0 %v7728_v0 }
 0x649   : > { %4764 = vst [vmem:[%s7492_s15 + $0x58] sm:$0xff] %v4703_v21   ;;  %v3391_v38 = vadd.f32 %v5463_v19, %v7472_v47 }
 0x64a   : > { %v3385_v46 = vpop.f32.mrf.mxu0 }
 0x64b   : > { %v7733_v39 = vmax.f32 %v3391_v38, 0.0  ;;  %v3386_v9 = vadd.f32 %v7472_v47, %v3385_v46 }
 0x64d   : > { %8490 = vst [vmem:[#allocation95_spill] sm:$0xff] %v7733_v39  ;;  %v7736_v24 = vmax.f32 %v3386_v9, 0.0  ;;  %v7741_v31 = vsel %vm3620_vm2, %v7733_v39, -1e+30 }
 0x64e   : > { %3703 = vmax.xlane.f32.xlu1 %v7741_v31 }
 0x64f   : > { %8491 = vst [vmem:[#allocation96_spill] sm:$0xff] %v7736_v24  ;;  %v4708_v32 = vpack.c.bf16 %v7733_v39, %v7736_v24  ;;  %v7749_v30 = vsel %vm3620_vm2, %v7736_v24, -1e+30 }
 0x650   : > { %v5466_v61 = vpop.f32.mrf.mxu0  ;;  %3701 = vmax.xlane.f32.xlu0 %v7749_v30 }
 0x651   : > { %4765 = vst [vmem:[%s7492_s15 + $0x60] sm:$0xff] %v4708_v32   ;;  %v3401_v13 = vadd.f32 %v5466_v61, %v7472_v47 }
 0x652   : > { %v3395_v1 = vpop.f32.mrf.mxu0 }
 0x653   : > { %v7754_v20 = vmax.f32 %v3401_v13, 0.0  ;;  %v3396_v21 = vadd.f32 %v7472_v47, %v3395_v1 }
 0x655   : > { %8492 = vst [vmem:[#allocation97_spill] sm:$0xff] %v7754_v20  ;;  %v7757_v19 = vmax.f32 %v3396_v21, 0.0  ;;  %v7762_v38 = vsel %vm3620_vm2, %v7754_v20, -1e+30 }
 0x656   : > { %3707 = vmax.xlane.f32.xlu1 %v7762_v38 }
 0x657   : > { %8493 = vst [vmem:[#allocation98_spill] sm:$0xff] %v7757_v19  ;;  %v4713_v46 = vpack.c.bf16 %v7754_v20, %v7757_v19  ;;  %v7770_v9 = vsel %vm3620_vm2, %v7757_v19, -1e+30 }
 0x658   : > { %v5469_v32 = vpop.f32.mrf.mxu0  ;;  %3705 = vmax.xlane.f32.xlu0 %v7770_v9 }
 0x659   : > { %4766 = vst [vmem:[%s7492_s15 + $0x68] sm:$0xff] %v4713_v46   ;;  %v3411_v61 = vadd.f32 %v5469_v32, %v7472_v47 }
 0x65a   : > { %v3405_v13 = vpop.f32.mrf.mxu0 }
 0x65b   : > { %v7775_v1 = vmax.f32 %v3411_v61, 0.0  ;;  %v3406_v21 = vadd.f32 %v7472_v47, %v3405_v13 }
 0x65d   : > { %8494 = vst [vmem:[#allocation99_spill] sm:$0xff] %v7775_v1  ;;  %v7778_v24 = vmax.f32 %v3406_v21, 0.0  ;;  %v7783_v20 = vsel %vm3620_vm2, %v7775_v1, -1e+30 }
 0x65e   : > { %3711 = vmax.xlane.f32.xlu1 %v7783_v20 }
 0x65f   : > { %8495 = vst [vmem:[#allocation100_spill] sm:$0xff] %v7778_v24  ;;  %v4718_v46 = vpack.c.bf16 %v7775_v1, %v7778_v24  ;;  %v7791_v32 = vsel %vm3620_vm2, %v7778_v24, -1e+30 }
 0x660   : > { %v5472_v61 = vpop.f32.mrf.mxu0  ;;  %3709 = vmax.xlane.f32.xlu0 %v7791_v32 }
 0x661   : > { %4767 = vst [vmem:[%s7492_s15 + $0x70] sm:$0xff] %v4718_v46   ;;  %v3421_v13 = vadd.f32 %v5472_v61, %v7472_v47 }
 0x662   : > { %v3415_v21 = vpop.f32.mrf.mxu0 }
 0x663   : > { %v7796_v19 = vmax.f32 %v3421_v13, 0.0  ;;  %v3416_v39 = vadd.f32 %v7472_v47, %v3415_v21 }
 0x665   : > { %8496 = vst [vmem:[#allocation101_spill] sm:$0xff] %v7796_v19  ;;  %v7799_v22 = vmax.f32 %v3416_v39, 0.0  ;;  %v7804_v1 = vsel %vm3620_vm2, %v7796_v19, -1e+30 }
 0x666   : > { %3715 = vmax.xlane.f32.xlu1 %v7804_v1 }
 0x667   : > { %8497 = vst [vmem:[#allocation102_spill] sm:$0xff] %v7799_v22  ;;  %v4723_v24 = vpack.c.bf16 %v7796_v19, %v7799_v22  ;;  %v7812_v46 = vsel %vm3620_vm2, %v7799_v22, -1e+30 }
 0x668   : > { %3713 = vmax.xlane.f32.xlu0 %v7812_v46 }
 0x669   : > { %4768 = vst [vmem:[%s7492_s15 + $0x78] sm:$0xff] %v4723_v24  }
 0x677   : > { %v3656_v47 = vpop.xlane.xlu0 %3655 }
 0x678   : > { %v7817_v39 = vsub.f32 %v7487_v23, %v3656_v47 }
 0x67a   : > { %v3751_v61 = vmul.f32 1.442695, %v7817_v39 }
 0x67b   : > { %v3654_v13 = vpop.xlane.xlu0 %3653 }
 0x67c   : > { %5802 = vpow2.f32 %v3751_v61  ;;  %v7821_v21 = vsub.f32 %v7499_v45, %v3654_v13 }
 0x67e   : > { %v3749_v19 = vmul.f32 1.442695, %v7821_v21 }
 0x67f   : > { %v3660_v51 = vpop.xlane.xlu1 %3659 }
 0x680   : > { %5804 = vpow2.f32 %v3749_v19  ;;  %v7825_v52 = vsub.f32 %v7510_v53, %v3660_v51 }
 0x682   : > { %v3755_v24 = vmul.f32 1.442695, %v7825_v52 }
 0x683   : > { %v3658_v22 = vpop.xlane.xlu1 %3657 }
 0x684   : > { %5806 = vpow2.f32 %v3755_v24  ;;  %v7829_v23 = vsub.f32 %v7520_v55, %v3658_v22 }
 0x686   : > { %v3753_v47 = vmul.f32 1.442695, %v7829_v23 }
 0x687   : > { %v3664_v61 = vpop.xlane.xlu1 %3663 }
 0x688   : > { %5808 = vpow2.f32 %v3753_v47  ;;  %v7833_v45 = vsub.f32 %v7531_v42, %v3664_v61 }
 0x689   : > { %v5803_v13 = vpop.eup %5802  ;;  %v3662_v28 = vpop.xlane.xlu0 %3661 }
 0x68a   : > { %v3759_v19 = vmul.f32 1.442695, %v7833_v45  ;;  %v7837_v53 = vsub.f32 %v7539_v43, %v3662_v28  ;;  %3815 = vadd.xlane.f32.xlu1 %v5803_v13 }
 0x68c   : > { %5810 = vpow2.f32 %v3759_v19  ;;  %v3757_v51 = vmul.f32 1.442695, %v7837_v53 }
 0x68d   : > { %v5805_v55 = vpop.eup %5804 }
 0x68e   : > { %5812 = vpow2.f32 %v3757_v51  ;;  %3813 = vadd.xlane.f32.xlu0 %v5805_v55 }
 0x68f   : > { %v3668_v22 = vpop.xlane.xlu1 %3667 }
 0x690   : > { %v7841_v24 = vsub.f32 %v7552_v10, %v3668_v22 }
 0x691   : > { %v5807_v42 = vpop.eup %5806  ;;  %v3666_v47 = vpop.xlane.xlu0 %3665 }
 0x692   : > { %v3763_v61 = vmul.f32 1.442695, %v7841_v24  ;;  %v7845_v7 = vsub.f32 %v7560_v26, %v3666_v47  ;;  %3819 = vadd.xlane.f32.xlu1 %v5807_v42 }
 0x694   : > { %5814 = vpow2.f32 %v3763_v61  ;;  %v3761_v43 = vmul.f32 1.442695, %v7845_v7 }
 0x695   : > { %v5809_v28 = vpop.eup %5808 }
 0x696   : > { %5816 = vpow2.f32 %v3761_v43  ;;  %3817 = vadd.xlane.f32.xlu0 %v5809_v28 }
 0x697   : > { %v3672_v13 = vpop.xlane.xlu1 %3671 }
 0x698   : > { %v7849_v19 = vsub.f32 %v7573_v62, %v3672_v13 }
 0x699   : > { %v5811_v10 = vpop.eup %5810  ;;  %v3670_v51 = vpop.xlane.xlu0 %3669 }
 0x69a   : > { %v3767_v55 = vmul.f32 1.442695, %v7849_v19  ;;  %v7853_v22 = vsub.f32 %v7581_v54, %v3670_v51  ;;  %3823 = vadd.xlane.f32.xlu1 %v5811_v10 }
 0x69b   : > { %v5813_v26 = vpop.eup %5812 }
 0x69c   : > { %5818 = vpow2.f32 %v3767_v55  ;;  %v3765_v42 = vmul.f32 1.442695, %v7853_v22  ;;  %3821 = vadd.xlane.f32.xlu0 %v5813_v26 }
 0x69e   : > { %5820 = vpow2.f32 %v3765_v42 }
 0x69f   : > { %v3676_v47 = vpop.xlane.xlu1 %3675 }
 0x6a0   : > { %v7857_v61 = vsub.f32 %v7594_v2, %v3676_v47 }
 0x6a1   : > { %v5815_v62 = vpop.eup %5814  ;;  %v3674_v43 = vpop.xlane.xlu0 %3673 }
 0x6a2   : > { %v3771_v28 = vmul.f32 1.442695, %v7857_v61  ;;  %v7861_v13 = vsub.f32 %v7602_v5, %v3674_v43  ;;  %3827 = vadd.xlane.f32.xlu1 %v5815_v62 }
 0x6a3   : > { %v5817_v54 = vpop.eup %5816 }
 0x6a4   : > { %5822 = vpow2.f32 %v3771_v28  ;;  %v3769_v10 = vmul.f32 1.442695, %v7861_v13  ;;  %3825 = vadd.xlane.f32.xlu0 %v5817_v54 }
 0x6a6   : > { %5824 = vpow2.f32 %v3769_v10 }
 0x6a7   : > { %v3680_v51 = vpop.xlane.xlu1 %3679 }
 0x6a8   : > { %v7865_v55 = vsub.f32 %v7615_v60, %v3680_v51 }
 0x6a9   : > { %v5819_v2 = vpop.eup %5818  ;;  %v3678_v26 = vpop.xlane.xlu0 %3677 }
 0x6aa   : > { %v3775_v42 = vmul.f32 1.442695, %v7865_v55  ;;  %v7869_v47 = vsub.f32 %v7623_v50, %v3678_v26  ;;  %3831 = vadd.xlane.f32.xlu1 %v5819_v2 }
 0x6ab   : > { %v5821_v5 = vpop.eup %5820 }
 0x6ac   : > { %5826 = vpow2.f32 %v3775_v42  ;;  %v3773_v62 = vmul.f32 1.442695, %v7869_v47  ;;  %3829 = vadd.xlane.f32.xlu0 %v5821_v5 }
 0x6ae   : > { %5828 = vpow2.f32 %v3773_v62 }
 0x6af   : > { %v3684_v43 = vpop.xlane.xlu1 %3683 }
 0x6b0   : > { %v7873_v28 = vsub.f32 %v7636_v12, %v3684_v43 }
 0x6b1   : > { %v5823_v60 = vpop.eup %5822  ;;  %v3682_v54 = vpop.xlane.xlu0 %3681 }
 0x6b2   : > { %v3779_v10 = vmul.f32 1.442695, %v7873_v28  ;;  %v7877_v51 = vsub.f32 %v7644_v48, %v3682_v54  ;;  %3835 = vadd.xlane.f32.xlu1 %v5823_v60 }
 0x6b3   : > { %v5825_v50 = vpop.eup %5824 }
 0x6b4   : > { %5830 = vpow2.f32 %v3779_v10  ;;  %v3777_v2 = vmul.f32 1.442695, %v7877_v51  ;;  %3833 = vadd.xlane.f32.xlu0 %v5825_v50 }
 0x6b6   : > { %5832 = vpow2.f32 %v3777_v2 }
 0x6b7   : > { %v3688_v26 = vpop.xlane.xlu1 %3687 }
 0x6b8   : > { %v7881_v42 = vsub.f32 %v7657_v6, %v3688_v26 }
 0x6b9   : > { %v5827_v12 = vpop.eup %5826  ;;  %v3686_v5 = vpop.xlane.xlu0 %3685 }
 0x6ba   : > { %v3783_v62 = vmul.f32 1.442695, %v7881_v42  ;;  %v7885_v43 = vsub.f32 %v7665_v4, %v3686_v5  ;;  %3839 = vadd.xlane.f32.xlu1 %v5827_v12 }
 0x6bb   : > { %v5829_v48 = vpop.eup %5828 }
 0x6bc   : > { %5834 = vpow2.f32 %v3783_v62  ;;  %v3781_v60 = vmul.f32 1.442695, %v7885_v43  ;;  %3837 = vadd.xlane.f32.xlu0 %v5829_v48 }
 0x6be   : > { %5836 = vpow2.f32 %v3781_v60 }
 0x6bf   : > { %v3692_v54 = vpop.xlane.xlu1 %3691 }
 0x6c0   : > { %v7889_v10 = vsub.f32 %v7678_v58, %v3692_v54 }
 0x6c1   : > { %v5831_v6 = vpop.eup %5830  ;;  %v3690_v50 = vpop.xlane.xlu0 %3689 }
 0x6c2   : > { %v3787_v2 = vmul.f32 1.442695, %v7889_v10  ;;  %v7893_v26 = vsub.f32 %v7686_v11, %v3690_v50  ;;  %3843 = vadd.xlane.f32.xlu1 %v5831_v6 }
 0x6c3   : > { %v5833_v4 = vpop.eup %5832 }
 0x6c4   : > { %5838 = vpow2.f32 %v3787_v2  ;;  %v3785_v12 = vmul.f32 1.442695, %v7893_v26  ;;  %3841 = vadd.xlane.f32.xlu0 %v5833_v4 }
 0x6c6   : > { %5840 = vpow2.f32 %v3785_v12 }
 0x6c7   : > { %v3696_v5 = vpop.xlane.xlu1 %3695 }
 0x6c8   : > { %v7897_v62 = vsub.f32 %v7699_v18, %v3696_v5 }
 0x6c9   : > { %v5835_v58 = vpop.eup %5834  ;;  %v3694_v48 = vpop.xlane.xlu0 %3693 }
 0x6ca   : > { %v3791_v60 = vmul.f32 1.442695, %v7897_v62  ;;  %v7901_v54 = vsub.f32 %v7707_v33, %v3694_v48  ;;  %3847 = vadd.xlane.f32.xlu1 %v5835_v58 }
 0x6cb   : > { %v5837_v11 = vpop.eup %5836 }
 0x6cc   : > { %5842 = vpow2.f32 %v3791_v60  ;;  %v3789_v6 = vmul.f32 1.442695, %v7901_v54  ;;  %3845 = vadd.xlane.f32.xlu0 %v5837_v11 }
 0x6ce   : > { %5844 = vpow2.f32 %v3789_v6 }
 0x6cf   : > { %v3700_v50 = vpop.xlane.xlu1 %3699 }
 0x6d0   : > { %v7905_v2 = vsub.f32 %v7720_v59, %v3700_v50 }
 0x6d1   : > { %v5839_v18 = vpop.eup %5838  ;;  %v3698_v4 = vpop.xlane.xlu0 %3697 }
 0x6d2   : > { %v3795_v12 = vmul.f32 1.442695, %v7905_v2  ;;  %v7909_v5 = vsub.f32 %v7728_v0, %v3698_v4  ;;  %3851 = vadd.xlane.f32.xlu1 %v5839_v18 }
 0x6d3   : > { %v5841_v33 = vpop.eup %5840 }
 0x6d4   : > { %5846 = vpow2.f32 %v3795_v12  ;;  %v3793_v58 = vmul.f32 1.442695, %v7909_v5  ;;  %3849 = vadd.xlane.f32.xlu0 %v5841_v33 }
 0x6d6   : > { %5848 = vpow2.f32 %v3793_v58 }
 0x6d7   : > { %v3704_v48 = vpop.xlane.xlu1 %3703 }
 0x6d8   : > { %v7913_v60 = vsub.f32 %v7741_v31, %v3704_v48 }
 0x6d9   : > { %v5843_v59 = vpop.eup %5842  ;;  %v3702_v11 = vpop.xlane.xlu0 %3701 }
 0x6da   : > { %v3799_v6 = vmul.f32 1.442695, %v7913_v60  ;;  %v7917_v50 = vsub.f32 %v7749_v30, %v3702_v11  ;;  %3855 = vadd.xlane.f32.xlu1 %v5843_v59 }
 0x6db   : > { %v5845_v0 = vpop.eup %5844 }
 0x6dc   : > { %5850 = vpow2.f32 %v3799_v6  ;;  %v3797_v18 = vmul.f32 1.442695, %v7917_v50  ;;  %3853 = vadd.xlane.f32.xlu0 %v5845_v0 }
 0x6de   : > { %5852 = vpow2.f32 %v3797_v18 }
 0x6df   : > { %v3708_v4 = vpop.xlane.xlu1 %3707 }
 0x6e0   : > { %v7921_v12 = vsub.f32 %v7762_v38, %v3708_v4 }
 0x6e1   : > { %v5847_v31 = vpop.eup %5846  ;;  %v3706_v33 = vpop.xlane.xlu0 %3705 }
 0x6e2   : > { %v3803_v58 = vmul.f32 1.442695, %v7921_v12  ;;  %v7925_v48 = vsub.f32 %v7770_v9, %v3706_v33  ;;  %3859 = vadd.xlane.f32.xlu1 %v5847_v31 }
 0x6e3   : > { %v5849_v30 = vpop.eup %5848 }
 0x6e4   : > { %5854 = vpow2.f32 %v3803_v58  ;;  %v3801_v59 = vmul.f32 1.442695, %v7925_v48  ;;  %3857 = vadd.xlane.f32.xlu0 %v5849_v30 }
 0x6e6   : > { %5856 = vpow2.f32 %v3801_v59 }
 0x6e7   : > { %v3712_v11 = vpop.xlane.xlu1 %3711 }
 0x6e8   : > { %v7929_v6 = vsub.f32 %v7783_v20, %v3712_v11 }
 0x6e9   : > { %v5851_v38 = vpop.eup %5850  ;;  %v3710_v0 = vpop.xlane.xlu0 %3709 }
 0x6ea   : > { %v3807_v18 = vmul.f32 1.442695, %v7929_v6  ;;  %v7933_v4 = vsub.f32 %v7791_v32, %v3710_v0  ;;  %3863 = vadd.xlane.f32.xlu1 %v5851_v38 }
 0x6eb   : > { %v5853_v9 = vpop.eup %5852 }
 0x6ec   : > { %5858 = vpow2.f32 %v3807_v18  ;;  %v3805_v31 = vmul.f32 1.442695, %v7933_v4  ;;  %3861 = vadd.xlane.f32.xlu0 %v5853_v9 }
 0x6ee   : > { %5860 = vpow2.f32 %v3805_v31 }
 0x6ef   : > { %v3716_v33 = vpop.xlane.xlu1 %3715 }
 0x6f0   : > { %v7937_v58 = vsub.f32 %v7804_v1, %v3716_v33 }
 0x6f1   : > { %v5855_v20 = vpop.eup %5854  ;;  %v3714_v30 = vpop.xlane.xlu0 %3713 }
 0x6f2   : > { %v3811_v59 = vmul.f32 1.442695, %v7937_v58  ;;  %v7941_v11 = vsub.f32 %v7812_v46, %v3714_v30  ;;  %3867 = vadd.xlane.f32.xlu1 %v5855_v20  ;;  %v3975_v30 = vstv %s3974_s6 }
 0x6f3   : > { %v5857_v32 = vpop.eup %5856  ;;  %vm7945_vm3 = vcmp.eq.s32.totalorder %v3975_v30, 1 }
 0x6f4   : > { %5862 = vpow2.f32 %v3811_v59  ;;  %v3809_v38 = vmul.f32 1.442695, %v7941_v11  ;;  %3865 = vadd.xlane.f32.xlu0 %v5857_v32 }
 0x6f6   : > { %5864 = vpow2.f32 %v3809_v38 }
 0x6f9   : > { %v5859_v0 = vpop.eup %5858 }
 0x6fa   : > { %3871 = vadd.xlane.f32.xlu1 %v5859_v0 }
 0x6fb   : > { %v5861_v18 = vpop.eup %5860 }
 0x6fc   : > { %3869 = vadd.xlane.f32.xlu0 %v5861_v18 }
 0x701   : > { %v5863_v1 = vpop.eup %5862 }
 0x702   : > { %3875 = vadd.xlane.f32.xlu1 %v5863_v1 }
 0x703   : > { %v5865_v9 = vpop.eup %5864 }
 0x704   : > { %3873 = vadd.xlane.f32.xlu0 %v5865_v9 }
 0x713   : > { %v3816_v31 = vpop.xlane.xlu1 %3815 }
 0x714   : > { %5866 = vlog2.f32 %v3816_v31 }
 0x717   : > { %v3814_v46 = vpop.xlane.xlu0 %3813 }
 0x718   : > { %5868 = vlog2.f32 %v3814_v46 }
 0x71b   : > { %v3820_v33 = vpop.xlane.xlu1 %3819 }
 0x71c   : > { %5870 = vlog2.f32 %v3820_v33 }
 0x71f   : > { %v3818_v20 = vpop.xlane.xlu0 %3817 }
 0x720   : > { %5872 = vlog2.f32 %v3818_v20 }
 0x721   : > { %v5867_v59 = vpop.eup %5866 }
 0x722   : > { %v3880_v32 = vmul.f32 0.6931472, %v5867_v59 }
 0x723   : > { %v3824_v0 = vpop.xlane.xlu1 %3823 }
 0x724   : > { %v3943_v18 = vsub.f32 %v7817_v39, %v3880_v32  ;;  %5874 = vlog2.f32 %v3824_v0 }
 0x725   : > { %v5869_v1 = vpop.eup %5868  ;;  %v3822_v9 = vpop.xlane.xlu0 %3821 }
 0x726   : > { %v3978_v31 = vsel %vm7945_vm3, %v3943_v18, %v7478_v25  ;;  %v3878_v46 = vmul.f32 0.6931472, %v5869_v1  ;;  %5876 = vlog2.f32 %v3822_v9 }
 0x727   : > { %4011 = vst [vmem:[%s7954_s19 + $0x8] sm:$0xff] %v3978_v31 }
 0x728   : > { %v3942_v33 = vsub.f32 %v7821_v21, %v3878_v46 }
 0x729   : > { %v5871_v20 = vpop.eup %5870 }
 0x72a   : > { %v3977_v39 = vsel %vm7945_vm3, %v3942_v33, %v7482_v16  ;;  %v3884_v30 = vmul.f32 0.6931472, %v5871_v20 }
 0x72b   : > { %4010 = vst [vmem:[%s7954_s19] sm:$0xff] %v3977_v39  ;;  %v3828_v59 = vpop.xlane.xlu1 %3827 }
 0x72c   : > { %v3945_v25 = vsub.f32 %v7825_v52, %v3884_v30  ;;  %5878 = vlog2.f32 %v3828_v59 }
 0x72d   : > { %v5873_v32 = vpop.eup %5872  ;;  %v3826_v0 = vpop.xlane.xlu0 %3825 }
 0x72e   : > { %v3980_v18 = vsel %vm7945_vm3, %v3945_v25, %v7502_v27  ;;  %v3882_v1 = vmul.f32 0.6931472, %v5873_v32  ;;  %5880 = vlog2.f32 %v3826_v0 }
 0x72f   : > { %4013 = vst [vmem:[%s7954_s19 + $0x18] sm:$0xff] %v3980_v18 }
 0x730   : > { %v3944_v21 = vsub.f32 %v7829_v23, %v3882_v1 }
 0x731   : > { %v5875_v16 = vpop.eup %5874 }
 0x732   : > { %v3979_v9 = vsel %vm7945_vm3, %v3944_v21, %v7505_v14  ;;  %v3888_v52 = vmul.f32 0.6931472, %v5875_v16 }
 0x733   : > { %v5877_v31 = vpop.eup %5876  ;;  %4012 = vst [vmem:[%s7954_s19 + $0x10] sm:$0xff] %v3979_v9  ;;  %v3832_v46 = vpop.xlane.xlu1 %3831 }
 0x734   : > { %v3947_v33 = vsub.f32 %v7833_v45, %v3888_v52  ;;  %v3886_v20 = vmul.f32 0.6931472, %v5877_v31  ;;  %5882 = vlog2.f32 %v3832_v46 }
 0x735   : > { %v3830_v27 = vpop.xlane.xlu0 %3829 }
 0x736   : > { %v3982_v39 = vsel %vm7945_vm3, %v3947_v33, %v7523_v35  ;;  %v3946_v23 = vsub.f32 %v7837_v53, %v3886_v20  ;;  %5884 = vlog2.f32 %v3830_v27 }
 0x737   : > { %4015 = vst [vmem:[%s7954_s19 + $0x28] sm:$0xff] %v3982_v39 }
 0x738   : > { %v3981_v14 = vsel %vm7945_vm3, %v3946_v23, %v7526_v17 }
 0x739   : > { %v5879_v30 = vpop.eup %5878  ;;  %4014 = vst [vmem:[%s7954_s19 + $0x20] sm:$0xff] %v3981_v14 }
 0x73a   : > { %v3892_v45 = vmul.f32 0.6931472, %v5879_v30 }
 0x73b   : > { %v5881_v59 = vpop.eup %5880  ;;  %v3836_v25 = vpop.xlane.xlu1 %3835 }
 0x73c   : > { %v3949_v32 = vsub.f32 %v7841_v24, %v3892_v45  ;;  %v3890_v0 = vmul.f32 0.6931472, %v5881_v59  ;;  %5886 = vlog2.f32 %v3836_v25 }
 0x73d   : > { %v3834_v35 = vpop.xlane.xlu0 %3833 }
 0x73e   : > { %v3984_v53 = vsel %vm7945_vm3, %v3949_v32, %v7544_v49  ;;  %v3948_v18 = vsub.f32 %v7845_v7, %v3890_v0  ;;  %5888 = vlog2.f32 %v3834_v35 }
 0x73f   : > { %4017 = vst [vmem:[%s7954_s19 + $0x38] sm:$0xff] %v3984_v53 }
 0x740   : > { %v3983_v17 = vsel %vm7945_vm3, %v3948_v18, %v7547_v15 }
 0x741   : > { %v5883_v1 = vpop.eup %5882  ;;  %4016 = vst [vmem:[%s7954_s19 + $0x30] sm:$0xff] %v3983_v17 }
 0x742   : > { %v3896_v24 = vmul.f32 0.6931472, %v5883_v1 }
 0x743   : > { %v5885_v21 = vpop.eup %5884  ;;  %v3840_v16 = vpop.xlane.xlu1 %3839 }
 0x744   : > { %v3951_v9 = vsub.f32 %v7849_v19, %v3896_v24  ;;  %v3894_v52 = vmul.f32 0.6931472, %v5885_v21  ;;  %5890 = vlog2.f32 %v3840_v16 }
 0x745   : > { %v3838_v49 = vpop.xlane.xlu0 %3837 }
 0x746   : > { %v3986_v7 = vsel %vm7945_vm3, %v3951_v9, %v7565_v40  ;;  %v3950_v31 = vsub.f32 %v7853_v22, %v3894_v52  ;;  %5892 = vlog2.f32 %v3838_v49 }
 0x747   : > { %4019 = vst [vmem:[%s7954_s19 + $0x48] sm:$0xff] %v3986_v7 }
 0x748   : > { %v3985_v15 = vsel %vm7945_vm3, %v3950_v31, %v7568_v41 }
 0x749   : > { %v5887_v46 = vpop.eup %5886  ;;  %4018 = vst [vmem:[%s7954_s19 + $0x40] sm:$0xff] %v3985_v15 }
 0x74a   : > { %v3900_v19 = vmul.f32 0.6931472, %v5887_v46 }
 0x74b   : > { %v5889_v33 = vpop.eup %5888  ;;  %v3844_v20 = vpop.xlane.xlu1 %3843 }
 0x74c   : > { %v3953_v27 = vsub.f32 %v7857_v61, %v3900_v19  ;;  %v3898_v39 = vmul.f32 0.6931472, %v5889_v33  ;;  %5894 = vlog2.f32 %v3844_v20 }
 0x74d   : > { %v3842_v40 = vpop.xlane.xlu0 %3841 }
 0x74e   : > { %v3988_v22 = vsel %vm7945_vm3, %v3953_v27, %v7586_v44  ;;  %v3952_v23 = vsub.f32 %v7861_v13, %v3898_v39  ;;  %5896 = vlog2.f32 %v3842_v40 }
 0x74f   : > { %4021 = vst [vmem:[%s7954_s19 + $0x58] sm:$0xff] %v3988_v22 }
 0x750   : > { %v3987_v41 = vsel %vm7945_vm3, %v3952_v23, %v7589_v36  ;;  %v8500_v23 = vld [vmem:[#allocation91_spill] sm:$0xff] }
 0x751   : > { %v5891_v14 = vpop.eup %5890  ;;  %4020 = vst [vmem:[%s7954_s19 + $0x50] sm:$0xff] %v3987_v41 }
 0x752   : > { %v3904_v61 = vmul.f32 0.6931472, %v5891_v14 }
 0x753   : > { %v5893_v30 = vpop.eup %5892  ;;  %v3848_v45 = vpop.xlane.xlu1 %3847 }
 0x754   : > { %v3955_v59 = vsub.f32 %v7865_v55, %v3904_v61  ;;  %v3902_v25 = vmul.f32 0.6931472, %v5893_v30  ;;  %5898 = vlog2.f32 %v3848_v45 }
 0x755   : > { %v3846_v44 = vpop.xlane.xlu0 %3845 }
 0x756   : > { %v3990_v13 = vsel %vm7945_vm3, %v3955_v59, %v7607_v34  ;;  %v3954_v32 = vsub.f32 %v7869_v47, %v3902_v25  ;;  %5900 = vlog2.f32 %v3846_v44 }
 0x757   : > { %4023 = vst [vmem:[%s7954_s19 + $0x68] sm:$0xff] %v3990_v13  ;;  %v8502_v13 = vld [vmem:[#allocation93_spill] sm:$0xff] }
 0x758   : > { %v3989_v36 = vsel %vm7945_vm3, %v3954_v32, %v7610_v56 }
 0x759   : > { %v5895_v0 = vpop.eup %5894  ;;  %4022 = vst [vmem:[%s7954_s19 + $0x60] sm:$0xff] %v3989_v36  ;;  %v8503_v36 = vld [vmem:[#allocation94_spill] sm:$0xff] }
 0x75a   : > { %v3908_v55 = vmul.f32 0.6931472, %v5895_v0 }
 0x75b   : > { %v5897_v35 = vpop.eup %5896  ;;  %v3852_v53 = vpop.xlane.xlu1 %3851 }
 0x75c   : > { %v3957_v18 = vsub.f32 %v7873_v28, %v3908_v55  ;;  %v3906_v17 = vmul.f32 0.6931472, %v5897_v35  ;;  %5902 = vlog2.f32 %v3852_v53 }
 0x75d   : > { %v3850_v34 = vpop.xlane.xlu0 %3849 }
 0x75e   : > { %v3992_v47 = vsel %vm7945_vm3, %v3957_v18, %v7628_v57  ;;  %v3956_v1 = vsub.f32 %v7877_v51, %v3906_v17  ;;  %5904 = vlog2.f32 %v3850_v34 }
 0x75f   : > { %4025 = vst [vmem:[%s7954_s19 + $0x78] sm:$0xff] %v3992_v47  ;;  %v8504_v47 = vld [vmem:[#allocation95_spill] sm:$0xff] }
 0x760   : > { %v3991_v56 = vsel %vm7945_vm3, %v3956_v1, %v7631_v8 }
 0x761   : > { %v5899_v24 = vpop.eup %5898  ;;  %4024 = vst [vmem:[%s7954_s19 + $0x70] sm:$0xff] %v3991_v56  ;;  %v8505_v56 = vld [vmem:[#allocation96_spill] sm:$0xff] }
 0x762   : > { %v3912_v28 = vmul.f32 0.6931472, %v5899_v24 }
 0x763   : > { %v5901_v21 = vpop.eup %5900  ;;  %v3856_v16 = vpop.xlane.xlu1 %3855 }
 0x764   : > { %v3959_v9 = vsub.f32 %v7881_v42, %v3912_v28  ;;  %v3910_v52 = vmul.f32 0.6931472, %v5901_v21  ;;  %5906 = vlog2.f32 %v3856_v16 }
 0x765   : > { %v3854_v57 = vpop.xlane.xlu0 %3853 }
 0x766   : > { %v3994_v51 = vsel %vm7945_vm3, %v3959_v9, %v7649_v63  ;;  %v3958_v49 = vsub.f32 %v7885_v43, %v3910_v52  ;;  %5908 = vlog2.f32 %v3854_v57 }
 0x767   : > { %4027 = vst [vmem:[%s7954_s19 + $0x88] sm:$0xff] %v3994_v51 }
 0x768   : > { %v3993_v8 = vsel %vm7945_vm3, %v3958_v49, %v7652_v29 }
 0x769   : > { %v5903_v7 = vpop.eup %5902  ;;  %4026 = vst [vmem:[%s7954_s19 + $0x80] sm:$0xff] %v3993_v8  ;;  %v8507_v8 = vld [vmem:[#allocation98_spill] sm:$0xff] }
 0x76a   : > { %v3916_v42 = vmul.f32 0.6931472, %v5903_v7 }
 0x76b   : > { %v5905_v31 = vpop.eup %5904  ;;  %v3860_v15 = vpop.xlane.xlu1 %3859 }
 0x76c   : > { %v3961_v46 = vsub.f32 %v7889_v10, %v3916_v42  ;;  %v3914_v19 = vmul.f32 0.6931472, %v5905_v31  ;;  %5910 = vlog2.f32 %v3860_v15 }
 0x76d   : > { %v3858_v63 = vpop.xlane.xlu0 %3857 }
 0x76e   : > { %v3996_v43 = vsel %vm7945_vm3, %v3961_v46, %v7670_v3  ;;  %v3960_v33 = vsub.f32 %v7893_v26, %v3914_v19  ;;  %5912 = vlog2.f32 %v3858_v63  ;;  %v8508_v19 = vld [vmem:[#allocation99_spill] sm:$0xff] }
 0x76f   : > { %4029 = vst [vmem:[%s7954_s19 + $0x98] sm:$0xff] %v3996_v43  ;;  %v8509_v43 = vld [vmem:[#allocation100_spill] sm:$0xff] }
 0x770   : > { %v3995_v29 = vsel %vm7945_vm3, %v3960_v33, %v7673_v37  ;;  %v8501_v37 = vld [vmem:[#allocation92_spill] sm:$0xff] }
 0x771   : > { %v5907_v20 = vpop.eup %5906  ;;  %4028 = vst [vmem:[%s7954_s19 + $0x90] sm:$0xff] %v3995_v29 }
 0x772   : > { %v3920_v10 = vmul.f32 0.6931472, %v5907_v20 }
 0x773   : > { %v5909_v27 = vpop.eup %5908  ;;  %v3864_v39 = vpop.xlane.xlu1 %3863 }
 0x774   : > { %v3963_v40 = vsub.f32 %v7897_v62, %v3920_v10  ;;  %v3918_v22 = vmul.f32 0.6931472, %v5909_v27  ;;  %5914 = vlog2.f32 %v3864_v39  ;;  %v8510_v39 = vld [vmem:[#allocation101_spill] sm:$0xff] }
 0x775   : > { %v3862_v3 = vpop.xlane.xlu0 %3861 }
 0x776   : > { %v3998_v26 = vsel %vm7945_vm3, %v3963_v40, %v8500_v23  ;;  %v3962_v41 = vsub.f32 %v7901_v54, %v3918_v22  ;;  %5916 = vlog2.f32 %v3862_v3 }
 0x777   : > { %4031 = vst [vmem:[%s7954_s19 + $0xa8] sm:$0xff] %v3998_v26 }
 0x778   : > { %v3997_v14 = vsel %vm7945_vm3, %v3962_v41, %v8501_v37 }
 0x779   : > { %v5911_v61 = vpop.eup %5910  ;;  %4030 = vst [vmem:[%s7954_s19 + $0xa0] sm:$0xff] %v3997_v14 }
 0x77a   : > { %v3924_v62 = vmul.f32 0.6931472, %v5911_v61 }
 0x77b   : > { %v5913_v30 = vpop.eup %5912  ;;  %v3868_v45 = vpop.xlane.xlu1 %3867 }
 0x77c   : > { %v3965_v59 = vsub.f32 %v7905_v2, %v3924_v62  ;;  %v3922_v25 = vmul.f32 0.6931472, %v5913_v30  ;;  %5918 = vlog2.f32 %v3868_v45 }
 0x77d   : > { %v3866_v44 = vpop.xlane.xlu0 %3865 }
 0x77e   : > { %v4000_v54 = vsel %vm7945_vm3, %v3965_v59, %v8502_v13  ;;  %v3964_v32 = vsub.f32 %v7909_v5, %v3922_v25  ;;  %5920 = vlog2.f32 %v3866_v44 }
 0x77f   : > { %4033 = vst [vmem:[%s7954_s19 + $0xb8] sm:$0xff] %v4000_v54 }
 0x780   : > { %v3999_v0 = vsel %vm7945_vm3, %v3964_v32, %v8503_v36 }
 0x781   : > { %v5915_v55 = vpop.eup %5914  ;;  %4032 = vst [vmem:[%s7954_s19 + $0xb0] sm:$0xff] %v3999_v0 }
 0x782   : > { %v3928_v2 = vmul.f32 0.6931472, %v5915_v55 }
 0x783   : > { %v5917_v35 = vpop.eup %5916  ;;  %v3872_v53 = vpop.xlane.xlu1 %3871 }
 0x784   : > { %v3967_v18 = vsub.f32 %v7913_v60, %v3928_v2  ;;  %v3926_v17 = vmul.f32 0.6931472, %v5917_v35  ;;  %5922 = vlog2.f32 %v3872_v53 }
 0x785   : > { %v3870_v34 = vpop.xlane.xlu0 %3869 }
 0x786   : > { %v4002_v5 = vsel %vm7945_vm3, %v3967_v18, %v8504_v47  ;;  %v3966_v1 = vsub.f32 %v7917_v50, %v3926_v17  ;;  %5924 = vlog2.f32 %v3870_v34  ;;  %v8506_v50 = vld [vmem:[#allocation97_spill] sm:$0xff] }
 0x787   : > { %4035 = vst [vmem:[%s7954_s19 + $0xc8] sm:$0xff] %v4002_v5 }
 0x788   : > { %v4001_v24 = vsel %vm7945_vm3, %v3966_v1, %v8505_v56 }
 0x789   : > { %v5919_v28 = vpop.eup %5918  ;;  %4034 = vst [vmem:[%s7954_s19 + $0xc0] sm:$0xff] %v4001_v24 }
 0x78a   : > { %v3932_v60 = vmul.f32 0.6931472, %v5919_v28 }
 0x78b   : > { %v5921_v21 = vpop.eup %5920  ;;  %v3876_v16 = vpop.xlane.xlu1 %3875 }
 0x78c   : > { %v3969_v9 = vsub.f32 %v7921_v12, %v3932_v60  ;;  %v3930_v52 = vmul.f32 0.6931472, %v5921_v21  ;;  %5926 = vlog2.f32 %v3876_v16 }
 0x78d   : > { %v3874_v57 = vpop.xlane.xlu0 %3873 }
 0x78e   : > { %v4004_v51 = vsel %vm7945_vm3, %v3969_v9, %v8506_v50  ;;  %v3968_v49 = vsub.f32 %v7925_v48, %v3930_v52  ;;  %5928 = vlog2.f32 %v3874_v57 }
 0x78f   : > { %4037 = vst [vmem:[%s7954_s19 + $0xd8] sm:$0xff] %v4004_v51 }
 0x790   : > { %v4003_v7 = vsel %vm7945_vm3, %v3968_v49, %v8507_v8 }
 0x791   : > { %v5923_v42 = vpop.eup %5922  ;;  %4036 = vst [vmem:[%s7954_s19 + $0xd0] sm:$0xff] %v4003_v7 }
 0x792   : > { %v3936_v12 = vmul.f32 0.6931472, %v5923_v42 }
 0x793   : > { %v5925_v31 = vpop.eup %5924 }
 0x794   : > { %v3971_v15 = vsub.f32 %v7929_v6, %v3936_v12  ;;  %v3934_v46 = vmul.f32 0.6931472, %v5925_v31 }
 0x796   : > { %v4006_v63 = vsel %vm7945_vm3, %v3971_v15, %v8508_v19  ;;  %v3970_v48 = vsub.f32 %v7933_v4, %v3934_v46  ;;  %v8511_v4 = vld [vmem:[#allocation102_spill] sm:$0xff] }
 0x797   : > { %4039 = vst [vmem:[%s7954_s19 + $0xe8] sm:$0xff] %v4006_v63 }
 0x798   : > { %v4005_v33 = vsel %vm7945_vm3, %v3970_v48, %v8509_v43 }
 0x799   : > { %v5927_v29 = vpop.eup %5926  ;;  %4038 = vst [vmem:[%s7954_s19 + $0xe0] sm:$0xff] %v4005_v33 }
 0x79a   : > { %v3940_v20 = vmul.f32 0.6931472, %v5927_v29 }
 0x79b   : > { %v5929_v10 = vpop.eup %5928 }
 0x79c   : > { %v3973_v27 = vsub.f32 %v7937_v58, %v3940_v20  ;;  %v3938_v6 = vmul.f32 0.6931472, %v5929_v10 }
 0x79e   : > { %v4008_v40 = vsel %vm7945_vm3, %v3973_v27, %v8510_v39  ;;  %v3972_v22 = vsub.f32 %v7941_v11, %v3938_v6 }
 0x79f   : > { %4041 = vst [vmem:[%s7954_s19 + $0xf8] sm:$0xff] %v4008_v40 }
 0x7a0   : > { %v4007_v3 = vsel %vm7945_vm3, %v3972_v22, %v8511_v4 }
 0x7a1   : > { %4040 = vst [vmem:[%s7954_s19 + $0xf0] sm:$0xff] %v4007_v3 }
 0x7a2 PF: > { %p5535_p3 = scmp.eq.s32.totalorder %s6188_s23, 5  ;;  %s6121_s24 = smov [#allocation10]  }
 0x7a3   : > { %s4048_s7 = sshll.u32 %s6121_s24, 4  ;;  %s4049_s7 = int_to_ptr.vmem [resolvable:$true] %s4048_s7 }
 0x7a4   : > { %s6010_s8 = scalar_lea.vmem %s4049_s7, 8192  ;;  %p6017_p12 = scmp.lt.s32.totalorder %s4049_s7, %s4049_s7 }
 0x7a5   : > { %p6011_p6 = scmp.ne.s32.totalorder %s4049_s7, %s6010_s8  ;;  %p6018_p11 = scmp.lt.s32.totalorder %s6010_s8, %s6010_s8 }
 0x7a7   : > { %p6012_p13 = pnand %p6011_p6, %p5535_p3  ;;  %p6019_p7 = por %p6018_p11, %p6017_p12 }
 0x7a9   : > { %p6013_p8 = pneg %p6012_p13 }
 0x7ab   : > { %p6020_p9 = pnand %p6019_p7, %p6013_p8 }
 0x7ad   : > { %6023 = shalt.err (!%p6020_p9)
}
 0x7ae   : > { %s6122_s10 = smov 128   ;;  %s6123_s28 = smov 8  }
 0x7af   : > { %5516 = dma.vmem_to_hbm [thread:$0]  (%p5535_p3), %s4049_s7, 8192, %s8152_s4, [#allocation6], %s6122_s10, %s6122_s10, %s6123_s28  }
 0x7b0   : > { %6079 = dma.done.wait (%p5535_p3), [#allocation6], 8192  }
 0x7b1   : > { %6081 = vsyncadd (%p5535_p3), [#allocation6], 4294959104 }
 0x7b2 PF: > { %s17_s22 = sadd.s32 1, %s6112_s22   ;;  %s8512_s15 = smov %s6088_s16 }
 0x7b3   : > { %p14_p4 = scmp.ge.s32.totalorder %s17_s22, 8   ;;  %s8513_s16 = smov %s6092_s17 }
 0x7b4   : > { %s8514_s17 = smov %s6271_s30  ;;  %s8515_s18 = smov %s6104_s20 }
 0x7b5   : > { %s8516_s19 = smov %s6108_s21  ;;  %s8517_s20 = smov %s8520_s26 }
 0x7b6   : > { %s8518_s21 = smov %s8524_s27  ;;  %16 = sbr.rel (!%p14_p4) target bundleno = 6 (0x6), region = 100 }
 0x7bb   :  { %4064 = vsyncpa [#allocation5], 1 }
 0x7bc   :  { %4066 = vsyncpa [#allocation5 + $0x1], 1 }
 0x7bd   :  { %4067 = vsyncpa [#allocation8], 1 }
 0x7be   :  { %4068 = vsyncpa [#allocation6], 1 }
 0x7bf   :  { %4070 = vsyncpa [#allocation6 + $0x1], 1 }

</bundles_post_ra>
